<compile_context>
chip_gen: v5e
topology: v5e:2x2
jax: 0.10.0
libtpu: 0.0.40
codegen_flags: <defaults>
</compile_context>

<pallas_src>
import functools

import jax
import jax.numpy as jnp
from jax.experimental import pallas as pl
from jax.experimental.pallas import tpu as pltpu


def _round_up(x, m):
    return (x + m - 1) // m * m


# ----------------------------------------------------------------------------
# Pallas kernel: out = ReLU( sum_t x[rows + off_t] @ W_t + bias )
# ----------------------------------------------------------------------------
def _conv_bn_relu_kernel(x_ref, w_ref, b_ref, o_ref, acc_ref, *, tile_m, offsets):
    # x_ref:   (M_in, Cin_p)  f32, fully-resident flattened padded NDHWC volume
    # w_ref:   (taps, Cin_p, tile_n) bf16, BN scale already folded in
    # b_ref:   (1, tile_n)    f32 folded BN bias
    # o_ref:   (tile_m, tile_n) f32 output tile (lane-dense, tile_n % 128 == 0)
    # acc_ref: (tile_m, tile_n) f32 VMEM scratch accumulator
    base = pl.multiple_of(pl.program_id(0) * tile_m, tile_m)
    acc_ref[...] = jnp.zeros_like(acc_ref)
    for t, off in enumerate(offsets):          # static unroll over ks^3 taps
        lhs = x_ref[pl.ds(base + off, tile_m), :].astype(jnp.bfloat16)
        acc_ref[...] += jnp.dot(lhs, w_ref[t],
                                preferred_element_type=jnp.float32)
    o_ref[...] = jnp.maximum(acc_ref[...] + b_ref[...], 0.0).astype(o_ref.dtype)


# ----------------------------------------------------------------------------
# Wrapper: BasicConvolutionBlock forward (dense-grid equivalent, stride=1)
# ----------------------------------------------------------------------------
def basic_convolution_block(x, weight, gamma, beta, running_mean, running_var,
                            *, eps=1e-5, ks=3, dilation=1,
                            tile_m=256, tile_n=128):
    """x: (N, D, H, W, C_in) channels-last f32; weight: (C_out, C_in, ks,ks,ks).

    Returns (N, D, H, W, C_out) f32, channels-last (kept channels-last across
    the block stack - no NCDHW transposes).
    """
    assert ks % 2 == 1, "only odd kernel sizes with stride=1 supported here"
    N, D, H, W, C_in = x.shape
    C_out = weight.shape[0]
    pad = dilation * (ks // 2)
    Dp, Hp, Wp = D + 2 * pad, H + 2 * pad, W + 2 * pad
    taps = ks ** 3

    # ---- fold eval-mode BatchNorm into the conv ----
    scale = gamma / jnp.sqrt(running_var + eps)                  # (C_out,)
    bias = (beta - running_mean * scale).astype(jnp.float32)     # (C_out,)
    w_dhwio = jnp.transpose(weight, (2, 3, 4, 1, 0)).astype(jnp.float32)
    w_folded = (w_dhwio * scale).astype(jnp.bfloat16)            # (ks,ks,ks,I,O)

    # ---- pad channels so the output is lane-dense (C_out -> mult of 128) ----
    Cin_p = _round_up(C_in, 8)
    Cout_p = _round_up(max(C_out, tile_n), tile_n)
    w_taps = jnp.zeros((taps, Cin_p, Cout_p), jnp.bfloat16)
    w_taps = w_taps.at[:, :C_in, :C_out].set(w_folded.reshape(taps, C_in, C_out))
    bias_p = jnp.zeros((1, Cout_p), jnp.float32).at[:, :C_out].set(bias[None, :])

    # ---- zero-pad spatially once and flatten to (rows, Cin_p) ----
    xp = jnp.pad(x.astype(jnp.float32),
                 ((0, 0), (pad, pad), (pad, pad), (pad, pad), (0, Cin_p - C_in)))
    Mp = N * Dp * Hp * Wp
    x_flat = xp.reshape(Mp, Cin_p)

    # Row offset of tap (kd,kh,kw) in the flattened padded volume.  Output row
    # i is indexed by the top-left corner of its window, so valid outputs live
    # at padded coords [:D, :H, :W] and never read across samples.
    offsets = tuple(kd * dilation * Hp * Wp + kh * dilation * Wp + kw * dilation
                    for kd in range(ks) for kh in range(ks) for kw in range(ks))
    max_off = offsets[-1]

    M_out = pl.cdiv(Mp, tile_m) * tile_m            # no divisibility assert
    M_in = M_out + _round_up(max_off, 8)            # halo so pl.ds never OOBs
    x_flat = jnp.pad(x_flat, ((0, M_in - Mp), (0, 0)))

    grid = (M_out // tile_m, Cout_p // tile_n)
    kernel = functools.partial(_conv_bn_relu_kernel,
                               tile_m=tile_m, offsets=offsets)

    cost = pl.CostEstimate(
        flops=2 * M_out * taps * Cin_p * Cout_p,
        transcendentals=0,
        bytes_accessed=(x_flat.size * 4 + w_taps.size * 2 + bias_p.size * 4
                        + M_out * Cout_p * 4))

    out_flat = pl.pallas_call(
        kernel,
        out_shape=jax.ShapeDtypeStruct((M_out, Cout_p), jnp.float32),
        grid=grid,
        in_specs=[
            pl.BlockSpec((M_in, Cin_p), lambda i, j: (0, 0)),          # resident
            pl.BlockSpec((taps, Cin_p, tile_n), lambda i, j: (0, 0, j)),
            pl.BlockSpec((1, tile_n), lambda i, j: (0, j)),
        ],
        out_specs=pl.BlockSpec((tile_m, tile_n), lambda i, j: (i, j)),
        scratch_shapes=[pltpu.VMEM((tile_m, tile_n), jnp.float32)],
        compiler_params=pltpu.CompilerParams(
            dimension_semantics=("parallel", "parallel"),
            vmem_limit_bytes=32 * 1024 * 1024,
        ),
        cost_estimate=cost,
    )(x_flat, w_taps, bias_p)

    out = out_flat[:Mp].reshape(N, Dp, Hp, Wp, Cout_p)
    return out[:, :D, :H, :W, :C_out]


# ----------------------------------------------------------------------------
# Reference (pure JAX, same bf16 operand quantization, f32 accumulate)
# ----------------------------------------------------------------------------
def reference(x, weight, gamma, beta, running_mean, running_var,
              eps=1e-5, dilation=1):
    scale = gamma / jnp.sqrt(running_var + eps)
    bias = beta - running_mean * scale
    w_dhwio = jnp.transpose(weight, (2, 3, 4, 1, 0)).astype(jnp.float32)
    w_folded = (w_dhwio * scale).astype(jnp.bfloat16).astype(jnp.float32)
    x_q = x.astype(jnp.bfloat16).astype(jnp.float32)
    y = jax.lax.conv_general_dilated(
        x_q, w_folded, window_strides=(1, 1, 1), padding="SAME",
        rhs_dilation=(dilation,) * 3,
        dimension_numbers=("NDHWC", "DHWIO", "NDHWC"))
    return jnp.maximum(y + bias[None, None, None, None, :], 0.0)


if __name__ == "__main__":
    # Small shapes: batch=2, inc=4, outc=8, spatial 8^3, ks=3, stride=1, dil=1
    N, INC, OUTC, S, KS = 2, 4, 8, 8, 3

    key = jax.random.PRNGKey(0)
    kx, kw, kg, kb, km, kv = jax.random.split(key, 6)

    x = jax.random.normal(kx, (N, S, S, S, INC), dtype=jnp.float32)   # NDHWC
    weight = jax.random.normal(kw, (OUTC, INC, KS, KS, KS), dtype=jnp.float32) * 0.1
    gamma = 1.0 + 0.1 * jax.random.normal(kg, (OUTC,), dtype=jnp.float32)
    beta = 0.1 * jax.random.normal(kb, (OUTC,), dtype=jnp.float32)
    running_mean = 0.1 * jax.random.normal(km, (OUTC,), dtype=jnp.float32)
    running_var = 1.0 + jnp.abs(jax.random.normal(kv, (OUTC,), dtype=jnp.float32))

    out = basic_convolution_block(x, weight, gamma, beta,
                                  running_mean, running_var, ks=KS)
    out = jax.block_until_ready(out)

    ref = jax.block_until_ready(
        reference(x, weight, gamma, beta, running_mean, running_var))

    assert out.shape == (N, S, S, S, OUTC)
    err = float(jnp.max(jnp.abs(out - ref)))
    assert err < 1e-3, f"max abs err {err}"

    print("KERNEL_OK")
</pallas_src>

<mosaic_0001>
module attributes {stable_mosaic.version = 11 : i64} {
  func.func @_conv_bn_relu_kernel(%arg0: i32, %arg1: i32, %arg2: memref<2272x8xf32, #tpu.memory_space<vmem>>, %arg3: memref<27x8x128xbf16, #tpu.memory_space<vmem>>, %arg4: memref<1x128xf32, #tpu.memory_space<vmem>>, %arg5: memref<256x128xf32, #tpu.memory_space<vmem>>, %arg6: memref<256x128xf32, #tpu.memory_space<vmem>>) attributes {dimension_semantics = [#tpu.dimension_semantics<parallel>, #tpu.dimension_semantics<parallel>], iteration_bounds = array<i64: 8, 1>, scalar_prefetch = 0 : i64, scratch_operands = 1 : i64, tpu.core_type = #tpu.core_type<tc>, window_params = [{pipeline_mode = #tpu.pipeline_mode<synchronous>, transform_indices = @transform_0, window_bounds = array<i64: 2272, 8>}, {transform_indices = @transform_1, window_bounds = array<i64: 27, 8, 128>}, {transform_indices = @transform_2, window_bounds = array<i64: 1, 128>}, {transform_indices = @transform_3, window_bounds = array<i64: 256, 128>}]} {
    %c256_i32 = arith.constant 256 : i32
    %0 = arith.muli %arg0, %c256_i32 : i32
    %1 = tpu.assume_multiple %0, 256 : i32
    %cst = arith.constant 0.000000e+00 : f32
    %2 = vector.broadcast %cst : f32 to vector<256x128xf32>
    %c0 = arith.constant 0 : index
    %c0_0 = arith.constant 0 : index
    %3 = vector.load %arg6[%c0, %c0_0] : memref<256x128xf32, #tpu.memory_space<vmem>>, vector<256x128xf32>
    tpu.vector_store %arg6[%c0, %c0_0], %2 {strides = array<i32>} : memref<256x128xf32, #tpu.memory_space<vmem>>, vector<256x128xf32>,
    %c0_i32 = arith.constant 0 : i32
    %4 = arith.addi %1, %c0_i32 : i32
    %5 = arith.index_cast %4 : i32 to index
    %c0_1 = arith.constant 0 : index
    %6 = vector.load %arg2[%5, %c0_1] : memref<2272x8xf32, #tpu.memory_space<vmem>>, vector<256x8xf32>
    %7 = arith.truncf %6 : vector<256x8xf32> to vector<256x8xbf16>
    %c0_2 = arith.constant 0 : index
    %c0_3 = arith.constant 0 : index
    %8 = vector.load %arg6[%c0_2, %c0_3] : memref<256x128xf32, #tpu.memory_space<vmem>>, vector<256x128xf32>
    %c0_4 = arith.constant 0 : index
    %c0_5 = arith.constant 0 : index
    %c0_6 = arith.constant 0 : index
    %9 = vector.load %arg3[%c0_4, %c0_5, %c0_6] : memref<27x8x128xbf16, #tpu.memory_space<vmem>>, vector<1x8x128xbf16>
    %10 = vector.shape_cast %9 : vector<1x8x128xbf16> to vector<8x128xbf16>
    %cst_7 = arith.constant dense<0.000000e+00> : vector<256x128xf32>
    %11 = tpu.matmul %7, %10, %cst_7 {dimension_numbers = #tpu.dot_dimension_numbers<[1], [0], [0], [1], [0, 0, 1, 1], [], []>} : vector<256x8xbf16>, vector<8x128xbf16>, vector<256x128xf32> -> vector<256x128xf32>
    %12 = arith.addf %8, %11 : vector<256x128xf32>
    %c0_8 = arith.constant 0 : index
    %c0_9 = arith.constant 0 : index
    %13 = vector.load %arg6[%c0_8, %c0_9] : memref<256x128xf32, #tpu.memory_space<vmem>>, vector<256x128xf32>
    tpu.vector_store %arg6[%c0_8, %c0_9], %12 {strides = array<i32>} : memref<256x128xf32, #tpu.memory_space<vmem>>, vector<256x128xf32>,
    %c1_i32 = arith.constant 1 : i32
    %14 = arith.addi %1, %c1_i32 : i32
    %15 = arith.index_cast %14 : i32 to index
    %c0_10 = arith.constant 0 : index
    %16 = vector.load %arg2[%15, %c0_10] : memref<2272x8xf32, #tpu.memory_space<vmem>>, vector<256x8xf32>
    %17 = arith.truncf %16 : vector<256x8xf32> to vector<256x8xbf16>
    %c0_11 = arith.constant 0 : index
    %c0_12 = arith.constant 0 : index
    %18 = vector.load %arg6[%c0_11, %c0_12] : memref<256x128xf32, #tpu.memory_space<vmem>>, vector<256x128xf32>
    %c1 = arith.constant 1 : index
    %c0_13 = arith.constant 0 : index
    %c0_14 = arith.constant 0 : index
    %19 = vector.load %arg3[%c1, %c0_13, %c0_14] : memref<27x8x128xbf16, #tpu.memory_space<vmem>>, vector<1x8x128xbf16>
    %20 = vector.shape_cast %19 : vector<1x8x128xbf16> to vector<8x128xbf16>
    %cst_15 = arith.constant dense<0.000000e+00> : vector<256x128xf32>
    %21 = tpu.matmul %17, %20, %cst_15 {dimension_numbers = #tpu.dot_dimension_numbers<[1], [0], [0], [1], [0, 0, 1, 1], [], []>} : vector<256x8xbf16>, vector<8x128xbf16>, vector<256x128xf32> -> vector<256x128xf32>
    %22 = arith.addf %18, %21 : vector<256x128xf32>
    %c0_16 = arith.constant 0 : index
    %c0_17 = arith.constant 0 : index
    %23 = vector.load %arg6[%c0_16, %c0_17] : memref<256x128xf32, #tpu.memory_space<vmem>>, vector<256x128xf32>
    tpu.vector_store %arg6[%c0_16, %c0_17], %22 {strides = array<i32>} : memref<256x128xf32, #tpu.memory_space<vmem>>, vector<256x128xf32>,
    %c2_i32 = arith.constant 2 : i32
    %24 = arith.addi %1, %c2_i32 : i32
    %25 = arith.index_cast %24 : i32 to index
    %c0_18 = arith.constant 0 : index
    %26 = vector.load %arg2[%25, %c0_18] : memref<2272x8xf32, #tpu.memory_space<vmem>>, vector<256x8xf32>
    %27 = arith.truncf %26 : vector<256x8xf32> to vector<256x8xbf16>
    %c0_19 = arith.constant 0 : index
    %c0_20 = arith.constant 0 : index
    %28 = vector.load %arg6[%c0_19, %c0_20] : memref<256x128xf32, #tpu.memory_space<vmem>>, vector<256x128xf32>
    %c2 = arith.constant 2 : index
    %c0_21 = arith.constant 0 : index
    %c0_22 = arith.constant 0 : index
    %29 = vector.load %arg3[%c2, %c0_21, %c0_22] : memref<27x8x128xbf16, #tpu.memory_space<vmem>>, vector<1x8x128xbf16>
    %30 = vector.shape_cast %29 : vector<1x8x128xbf16> to vector<8x128xbf16>
    %cst_23 = arith.constant dense<0.000000e+00> : vector<256x128xf32>
    %31 = tpu.matmul %27, %30, %cst_23 {dimension_numbers = #tpu.dot_dimension_numbers<[1], [0], [0], [1], [0, 0, 1, 1], [], []>} : vector<256x8xbf16>, vector<8x128xbf16>, vector<256x128xf32> -> vector<256x128xf32>
    %32 = arith.addf %28, %31 : vector<256x128xf32>
    %c0_24 = arith.constant 0 : index
    %c0_25 = arith.constant 0 : index
    %33 = vector.load %arg6[%c0_24, %c0_25] : memref<256x128xf32, #tpu.memory_space<vmem>>, vector<256x128xf32>
    tpu.vector_store %arg6[%c0_24, %c0_25], %32 {strides = array<i32>} : memref<256x128xf32, #tpu.memory_space<vmem>>, vector<256x128xf32>,
    %c10_i32 = arith.constant 10 : i32
    %34 = arith.addi %1, %c10_i32 : i32
    %35 = arith.index_cast %34 : i32 to index
    %c0_26 = arith.constant 0 : index
    %36 = vector.load %arg2[%35, %c0_26] : memref<2272x8xf32, #tpu.memory_space<vmem>>, vector<256x8xf32>
    %37 = arith.truncf %36 : vector<256x8xf32> to vector<256x8xbf16>
    %c0_27 = arith.constant 0 : index
    %c0_28 = arith.constant 0 : index
    %38 = vector.load %arg6[%c0_27, %c0_28] : memref<256x128xf32, #tpu.memory_space<vmem>>, vector<256x128xf32>
    %c3 = arith.constant 3 : index
    %c0_29 = arith.constant 0 : index
    %c0_30 = arith.constant 0 : index
    %39 = vector.load %arg3[%c3, %c0_29, %c0_30] : memref<27x8x128xbf16, #tpu.memory_space<vmem>>, vector<1x8x128xbf16>
    %40 = vector.shape_cast %39 : vector<1x8x128xbf16> to vector<8x128xbf16>
    %cst_31 = arith.constant dense<0.000000e+00> : vector<256x128xf32>
    %41 = tpu.matmul %37, %40, %cst_31 {dimension_numbers = #tpu.dot_dimension_numbers<[1], [0], [0], [1], [0, 0, 1, 1], [], []>} : vector<256x8xbf16>, vector<8x128xbf16>, vector<256x128xf32> -> vector<256x128xf32>
    %42 = arith.addf %38, %41 : vector<256x128xf32>
    %c0_32 = arith.constant 0 : index
    %c0_33 = arith.constant 0 : index
    %43 = vector.load %arg6[%c0_32, %c0_33] : memref<256x128xf32, #tpu.memory_space<vmem>>, vector<256x128xf32>
    tpu.vector_store %arg6[%c0_32, %c0_33], %42 {strides = array<i32>} : memref<256x128xf32, #tpu.memory_space<vmem>>, vector<256x128xf32>,
    %c11_i32 = arith.constant 11 : i32
    %44 = arith.addi %1, %c11_i32 : i32
    %45 = arith.index_cast %44 : i32 to index
    %c0_34 = arith.constant 0 : index
    %46 = vector.load %arg2[%45, %c0_34] : memref<2272x8xf32, #tpu.memory_space<vmem>>, vector<256x8xf32>
    %47 = arith.truncf %46 : vector<256x8xf32> to vector<256x8xbf16>
    %c0_35 = arith.constant 0 : index
    %c0_36 = arith.constant 0 : index
    %48 = vector.load %arg6[%c0_35, %c0_36] : memref<256x128xf32, #tpu.memory_space<vmem>>, vector<256x128xf32>
    %c4 = arith.constant 4 : index
    %c0_37 = arith.constant 0 : index
    %c0_38 = arith.constant 0 : index
    %49 = vector.load %arg3[%c4, %c0_37, %c0_38] : memref<27x8x128xbf16, #tpu.memory_space<vmem>>, vector<1x8x128xbf16>
    %50 = vector.shape_cast %49 : vector<1x8x128xbf16> to vector<8x128xbf16>
    %cst_39 = arith.constant dense<0.000000e+00> : vector<256x128xf32>
    %51 = tpu.matmul %47, %50, %cst_39 {dimension_numbers = #tpu.dot_dimension_numbers<[1], [0], [0], [1], [0, 0, 1, 1], [], []>} : vector<256x8xbf16>, vector<8x128xbf16>, vector<256x128xf32> -> vector<256x128xf32>
    %52 = arith.addf %48, %51 : vector<256x128xf32>
    %c0_40 = arith.constant 0 : index
    %c0_41 = arith.constant 0 : index
    %53 = vector.load %arg6[%c0_40, %c0_41] : memref<256x128xf32, #tpu.memory_space<vmem>>, vector<256x128xf32>
    tpu.vector_store %arg6[%c0_40, %c0_41], %52 {strides = array<i32>} : memref<256x128xf32, #tpu.memory_space<vmem>>, vector<256x128xf32>,
    %c12_i32 = arith.constant 12 : i32
    %54 = arith.addi %1, %c12_i32 : i32
    %55 = arith.index_cast %54 : i32 to index
    %c0_42 = arith.constant 0 : index
    %56 = vector.load %arg2[%55, %c0_42] : memref<2272x8xf32, #tpu.memory_space<vmem>>, vector<256x8xf32>
    %57 = arith.truncf %56 : vector<256x8xf32> to vector<256x8xbf16>
    %c0_43 = arith.constant 0 : index
    %c0_44 = arith.constant 0 : index
    %58 = vector.load %arg6[%c0_43, %c0_44] : memref<256x128xf32, #tpu.memory_space<vmem>>, vector<256x128xf32>
    %c5 = arith.constant 5 : index
    %c0_45 = arith.constant 0 : index
    %c0_46 = arith.constant 0 : index
    %59 = vector.load %arg3[%c5, %c0_45, %c0_46] : memref<27x8x128xbf16, #tpu.memory_space<vmem>>, vector<1x8x128xbf16>
    %60 = vector.shape_cast %59 : vector<1x8x128xbf16> to vector<8x128xbf16>
    %cst_47 = arith.constant dense<0.000000e+00> : vector<256x128xf32>
    %61 = tpu.matmul %57, %60, %cst_47 {dimension_numbers = #tpu.dot_dimension_numbers<[1], [0], [0], [1], [0, 0, 1, 1], [], []>} : vector<256x8xbf16>, vector<8x128xbf16>, vector<256x128xf32> -> vector<256x128xf32>
    %62 = arith.addf %58, %61 : vector<256x128xf32>
    %c0_48 = arith.constant 0 : index
    %c0_49 = arith.constant 0 : index
    %63 = vector.load %arg6[%c0_48, %c0_49] : memref<256x128xf32, #tpu.memory_space<vmem>>, vector<256x128xf32>
    tpu.vector_store %arg6[%c0_48, %c0_49], %62 {strides = array<i32>} : memref<256x128xf32, #tpu.memory_space<vmem>>, vector<256x128xf32>,
    %c20_i32 = arith.constant 20 : i32
    %64 = arith.addi %1, %c20_i32 : i32
    %65 = arith.index_cast %64 : i32 to index
    %c0_50 = arith.constant 0 : index
    %66 = vector.load %arg2[%65, %c0_50] : memref<2272x8xf32, #tpu.memory_space<vmem>>, vector<256x8xf32>
    %67 = arith.truncf %66 : vector<256x8xf32> to vector<256x8xbf16>
    %c0_51 = arith.constant 0 : index
    %c0_52 = arith.constant 0 : index
    %68 = vector.load %arg6[%c0_51, %c0_52] : memref<256x128xf32, #tpu.memory_space<vmem>>, vector<256x128xf32>
    %c6 = arith.constant 6 : index
    %c0_53 = arith.constant 0 : index
    %c0_54 = arith.constant 0 : index
    %69 = vector.load %arg3[%c6, %c0_53, %c0_54] : memref<27x8x128xbf16, #tpu.memory_space<vmem>>, vector<1x8x128xbf16>
    %70 = vector.shape_cast %69 : vector<1x8x128xbf16> to vector<8x128xbf16>
    %cst_55 = arith.constant dense<0.000000e+00> : vector<256x128xf32>
    %71 = tpu.matmul %67, %70, %cst_55 {dimension_numbers = #tpu.dot_dimension_numbers<[1], [0], [0], [1], [0, 0, 1, 1], [], []>} : vector<256x8xbf16>, vector<8x128xbf16>, vector<256x128xf32> -> vector<256x128xf32>
    %72 = arith.addf %68, %71 : vector<256x128xf32>
    %c0_56 = arith.constant 0 : index
    %c0_57 = arith.constant 0 : index
    %73 = vector.load %arg6[%c0_56, %c0_57] : memref<256x128xf32, #tpu.memory_space<vmem>>, vector<256x128xf32>
    tpu.vector_store %arg6[%c0_56, %c0_57], %72 {strides = array<i32>} : memref<256x128xf32, #tpu.memory_space<vmem>>, vector<256x128xf32>,
    %c21_i32 = arith.constant 21 : i32
    %74 = arith.addi %1, %c21_i32 : i32
    %75 = arith.index_cast %74 : i32 to index
    %c0_58 = arith.constant 0 : index
    %76 = vector.load %arg2[%75, %c0_58] : memref<2272x8xf32, #tpu.memory_space<vmem>>, vector<256x8xf32>
    %77 = arith.truncf %76 : vector<256x8xf32> to vector<256x8xbf16>
    %c0_59 = arith.constant 0 : index
    %c0_60 = arith.constant 0 : index
    %78 = vector.load %arg6[%c0_59, %c0_60] : memref<256x128xf32, #tpu.memory_space<vmem>>, vector<256x128xf32>
    %c7 = arith.constant 7 : index
    %c0_61 = arith.constant 0 : index
    %c0_62 = arith.constant 0 : index
    %79 = vector.load %arg3[%c7, %c0_61, %c0_62] : memref<27x8x128xbf16, #tpu.memory_space<vmem>>, vector<1x8x128xbf16>
    %80 = vector.shape_cast %79 : vector<1x8x128xbf16> to vector<8x128xbf16>
    %cst_63 = arith.constant dense<0.000000e+00> : vector<256x128xf32>
    %81 = tpu.matmul %77, %80, %cst_63 {dimension_numbers = #tpu.dot_dimension_numbers<[1], [0], [0], [1], [0, 0, 1, 1], [], []>} : vector<256x8xbf16>, vector<8x128xbf16>, vector<256x128xf32> -> vector<256x128xf32>
    %82 = arith.addf %78, %81 : vector<256x128xf32>
    %c0_64 = arith.constant 0 : index
    %c0_65 = arith.constant 0 : index
    %83 = vector.load %arg6[%c0_64, %c0_65] : memref<256x128xf32, #tpu.memory_space<vmem>>, vector<256x128xf32>
    tpu.vector_store %arg6[%c0_64, %c0_65], %82 {strides = array<i32>} : memref<256x128xf32, #tpu.memory_space<vmem>>, vector<256x128xf32>,
    %c22_i32 = arith.constant 22 : i32
    %84 = arith.addi %1, %c22_i32 : i32
    %85 = arith.index_cast %84 : i32 to index
    %c0_66 = arith.constant 0 : index
    %86 = vector.load %arg2[%85, %c0_66] : memref<2272x8xf32, #tpu.memory_space<vmem>>, vector<256x8xf32>
    %87 = arith.truncf %86 : vector<256x8xf32> to vector<256x8xbf16>
    %c0_67 = arith.constant 0 : index
    %c0_68 = arith.constant 0 : index
    %88 = vector.load %arg6[%c0_67, %c0_68] : memref<256x128xf32, #tpu.memory_space<vmem>>, vector<256x128xf32>
    %c8 = arith.constant 8 : index
    %c0_69 = arith.constant 0 : index
    %c0_70 = arith.constant 0 : index
    %89 = vector.load %arg3[%c8, %c0_69, %c0_70] : memref<27x8x128xbf16, #tpu.memory_space<vmem>>, vector<1x8x128xbf16>
    %90 = vector.shape_cast %89 : vector<1x8x128xbf16> to vector<8x128xbf16>
    %cst_71 = arith.constant dense<0.000000e+00> : vector<256x128xf32>
    %91 = tpu.matmul %87, %90, %cst_71 {dimension_numbers = #tpu.dot_dimension_numbers<[1], [0], [0], [1], [0, 0, 1, 1], [], []>} : vector<256x8xbf16>, vector<8x128xbf16>, vector<256x128xf32> -> vector<256x128xf32>
    %92 = arith.addf %88, %91 : vector<256x128xf32>
    %c0_72 = arith.constant 0 : index
    %c0_73 = arith.constant 0 : index
    %93 = vector.load %arg6[%c0_72, %c0_73] : memref<256x128xf32, #tpu.memory_space<vmem>>, vector<256x128xf32>
    tpu.vector_store %arg6[%c0_72, %c0_73], %92 {strides = array<i32>} : memref<256x128xf32, #tpu.memory_space<vmem>>, vector<256x128xf32>,
    %c100_i32 = arith.constant 100 : i32
    %94 = arith.addi %1, %c100_i32 : i32
    %95 = arith.index_cast %94 : i32 to index
    %c0_74 = arith.constant 0 : index
    %96 = vector.load %arg2[%95, %c0_74] : memref<2272x8xf32, #tpu.memory_space<vmem>>, vector<256x8xf32>
    %97 = arith.truncf %96 : vector<256x8xf32> to vector<256x8xbf16>
    %c0_75 = arith.constant 0 : index
    %c0_76 = arith.constant 0 : index
    %98 = vector.load %arg6[%c0_75, %c0_76] : memref<256x128xf32, #tpu.memory_space<vmem>>, vector<256x128xf32>
    %c9 = arith.constant 9 : index
    %c0_77 = arith.constant 0 : index
    %c0_78 = arith.constant 0 : index
    %99 = vector.load %arg3[%c9, %c0_77, %c0_78] : memref<27x8x128xbf16, #tpu.memory_space<vmem>>, vector<1x8x128xbf16>
    %100 = vector.shape_cast %99 : vector<1x8x128xbf16> to vector<8x128xbf16>
    %cst_79 = arith.constant dense<0.000000e+00> : vector<256x128xf32>
    %101 = tpu.matmul %97, %100, %cst_79 {dimension_numbers = #tpu.dot_dimension_numbers<[1], [0], [0], [1], [0, 0, 1, 1], [], []>} : vector<256x8xbf16>, vector<8x128xbf16>, vector<256x128xf32> -> vector<256x128xf32>
    %102 = arith.addf %98, %101 : vector<256x128xf32>
    %c0_80 = arith.constant 0 : index
    %c0_81 = arith.constant 0 : index
    %103 = vector.load %arg6[%c0_80, %c0_81] : memref<256x128xf32, #tpu.memory_space<vmem>>, vector<256x128xf32>
    tpu.vector_store %arg6[%c0_80, %c0_81], %102 {strides = array<i32>} : memref<256x128xf32, #tpu.memory_space<vmem>>, vector<256x128xf32>,
    %c101_i32 = arith.constant 101 : i32
    %104 = arith.addi %1, %c101_i32 : i32
    %105 = arith.index_cast %104 : i32 to index
    %c0_82 = arith.constant 0 : index
    %106 = vector.load %arg2[%105, %c0_82] : memref<2272x8xf32, #tpu.memory_space<vmem>>, vector<256x8xf32>
    %107 = arith.truncf %106 : vector<256x8xf32> to vector<256x8xbf16>
    %c0_83 = arith.constant 0 : index
    %c0_84 = arith.constant 0 : index
    %108 = vector.load %arg6[%c0_83, %c0_84] : memref<256x128xf32, #tpu.memory_space<vmem>>, vector<256x128xf32>
    %c10 = arith.constant 10 : index
    %c0_85 = arith.constant 0 : index
    %c0_86 = arith.constant 0 : index
    %109 = vector.load %arg3[%c10, %c0_85, %c0_86] : memref<27x8x128xbf16, #tpu.memory_space<vmem>>, vector<1x8x128xbf16>
    %110 = vector.shape_cast %109 : vector<1x8x128xbf16> to vector<8x128xbf16>
    %cst_87 = arith.constant dense<0.000000e+00> : vector<256x128xf32>
    %111 = tpu.matmul %107, %110, %cst_87 {dimension_numbers = #tpu.dot_dimension_numbers<[1], [0], [0], [1], [0, 0, 1, 1], [], []>} : vector<256x8xbf16>, vector<8x128xbf16>, vector<256x128xf32> -> vector<256x128xf32>
    %112 = arith.addf %108, %111 : vector<256x128xf32>
    %c0_88 = arith.constant 0 : index
    %c0_89 = arith.constant 0 : index
    %113 = vector.load %arg6[%c0_88, %c0_89] : memref<256x128xf32, #tpu.memory_space<vmem>>, vector<256x128xf32>
    tpu.vector_store %arg6[%c0_88, %c0_89], %112 {strides = array<i32>} : memref<256x128xf32, #tpu.memory_space<vmem>>, vector<256x128xf32>,
    %c102_i32 = arith.constant 102 : i32
    %114 = arith.addi %1, %c102_i32 : i32
    %115 = arith.index_cast %114 : i32 to index
    %c0_90 = arith.constant 0 : index
    %116 = vector.load %arg2[%115, %c0_90] : memref<2272x8xf32, #tpu.memory_space<vmem>>, vector<256x8xf32>
    %117 = arith.truncf %116 : vector<256x8xf32> to vector<256x8xbf16>
    %c0_91 = arith.constant 0 : index
    %c0_92 = arith.constant 0 : index
    %118 = vector.load %arg6[%c0_91, %c0_92] : memref<256x128xf32, #tpu.memory_space<vmem>>, vector<256x128xf32>
    %c11 = arith.constant 11 : index
    %c0_93 = arith.constant 0 : index
    %c0_94 = arith.constant 0 : index
    %119 = vector.load %arg3[%c11, %c0_93, %c0_94] : memref<27x8x128xbf16, #tpu.memory_space<vmem>>, vector<1x8x128xbf16>
    %120 = vector.shape_cast %119 : vector<1x8x128xbf16> to vector<8x128xbf16>
    %cst_95 = arith.constant dense<0.000000e+00> : vector<256x128xf32>
    %121 = tpu.matmul %117, %120, %cst_95 {dimension_numbers = #tpu.dot_dimension_numbers<[1], [0], [0], [1], [0, 0, 1, 1], [], []>} : vector<256x8xbf16>, vector<8x128xbf16>, vector<256x128xf32> -> vector<256x128xf32>
    %122 = arith.addf %118, %121 : vector<256x128xf32>
    %c0_96 = arith.constant 0 : index
    %c0_97 = arith.constant 0 : index
    %123 = vector.load %arg6[%c0_96, %c0_97] : memref<256x128xf32, #tpu.memory_space<vmem>>, vector<256x128xf32>
    tpu.vector_store %arg6[%c0_96, %c0_97], %122 {strides = array<i32>} : memref<256x128xf32, #tpu.memory_space<vmem>>, vector<256x128xf32>,
    %c110_i32 = arith.constant 110 : i32
    %124 = arith.addi %1, %c110_i32 : i32
    %125 = arith.index_cast %124 : i32 to index
    %c0_98 = arith.constant 0 : index
    %126 = vector.load %arg2[%125, %c0_98] : memref<2272x8xf32, #tpu.memory_space<vmem>>, vector<256x8xf32>
    %127 = arith.truncf %126 : vector<256x8xf32> to vector<256x8xbf16>
    %c0_99 = arith.constant 0 : index
    %c0_100 = arith.constant 0 : index
    %128 = vector.load %arg6[%c0_99, %c0_100] : memref<256x128xf32, #tpu.memory_space<vmem>>, vector<256x128xf32>
    %c12 = arith.constant 12 : index
    %c0_101 = arith.constant 0 : index
    %c0_102 = arith.constant 0 : index
    %129 = vector.load %arg3[%c12, %c0_101, %c0_102] : memref<27x8x128xbf16, #tpu.memory_space<vmem>>, vector<1x8x128xbf16>
    %130 = vector.shape_cast %129 : vector<1x8x128xbf16> to vector<8x128xbf16>
    %cst_103 = arith.constant dense<0.000000e+00> : vector<256x128xf32>
    %131 = tpu.matmul %127, %130, %cst_103 {dimension_numbers = #tpu.dot_dimension_numbers<[1], [0], [0], [1], [0, 0, 1, 1], [], []>} : vector<256x8xbf16>, vector<8x128xbf16>, vector<256x128xf32> -> vector<256x128xf32>
    %132 = arith.addf %128, %131 : vector<256x128xf32>
    %c0_104 = arith.constant 0 : index
    %c0_105 = arith.constant 0 : index
    %133 = vector.load %arg6[%c0_104, %c0_105] : memref<256x128xf32, #tpu.memory_space<vmem>>, vector<256x128xf32>
    tpu.vector_store %arg6[%c0_104, %c0_105], %132 {strides = array<i32>} : memref<256x128xf32, #tpu.memory_space<vmem>>, vector<256x128xf32>,
    %c111_i32 = arith.constant 111 : i32
    %134 = arith.addi %1, %c111_i32 : i32
    %135 = arith.index_cast %134 : i32 to index
    %c0_106 = arith.constant 0 : index
    %136 = vector.load %arg2[%135, %c0_106] : memref<2272x8xf32, #tpu.memory_space<vmem>>, vector<256x8xf32>
    %137 = arith.truncf %136 : vector<256x8xf32> to vector<256x8xbf16>
    %c0_107 = arith.constant 0 : index
    %c0_108 = arith.constant 0 : index
    %138 = vector.load %arg6[%c0_107, %c0_108] : memref<256x128xf32, #tpu.memory_space<vmem>>, vector<256x128xf32>
    %c13 = arith.constant 13 : index
    %c0_109 = arith.constant 0 : index
    %c0_110 = arith.constant 0 : index
    %139 = vector.load %arg3[%c13, %c0_109, %c0_110] : memref<27x8x128xbf16, #tpu.memory_space<vmem>>, vector<1x8x128xbf16>
    %140 = vector.shape_cast %139 : vector<1x8x128xbf16> to vector<8x128xbf16>
    %cst_111 = arith.constant dense<0.000000e+00> : vector<256x128xf32>
    %141 = tpu.matmul %137, %140, %cst_111 {dimension_numbers = #tpu.dot_dimension_numbers<[1], [0], [0], [1], [0, 0, 1, 1], [], []>} : vector<256x8xbf16>, vector<8x128xbf16>, vector<256x128xf32> -> vector<256x128xf32>
    %142 = arith.addf %138, %141 : vector<256x128xf32>
    %c0_112 = arith.constant 0 : index
    %c0_113 = arith.constant 0 : index
    %143 = vector.load %arg6[%c0_112, %c0_113] : memref<256x128xf32, #tpu.memory_space<vmem>>, vector<256x128xf32>
    tpu.vector_store %arg6[%c0_112, %c0_113], %142 {strides = array<i32>} : memref<256x128xf32, #tpu.memory_space<vmem>>, vector<256x128xf32>,
    %c112_i32 = arith.constant 112 : i32
    %144 = arith.addi %1, %c112_i32 : i32
    %145 = arith.index_cast %144 : i32 to index
    %c0_114 = arith.constant 0 : index
    %146 = vector.load %arg2[%145, %c0_114] : memref<2272x8xf32, #tpu.memory_space<vmem>>, vector<256x8xf32>
    %147 = arith.truncf %146 : vector<256x8xf32> to vector<256x8xbf16>
    %c0_115 = arith.constant 0 : index
    %c0_116 = arith.constant 0 : index
    %148 = vector.load %arg6[%c0_115, %c0_116] : memref<256x128xf32, #tpu.memory_space<vmem>>, vector<256x128xf32>
    %c14 = arith.constant 14 : index
    %c0_117 = arith.constant 0 : index
    %c0_118 = arith.constant 0 : index
    %149 = vector.load %arg3[%c14, %c0_117, %c0_118] : memref<27x8x128xbf16, #tpu.memory_space<vmem>>, vector<1x8x128xbf16>
    %150 = vector.shape_cast %149 : vector<1x8x128xbf16> to vector<8x128xbf16>
    %cst_119 = arith.constant dense<0.000000e+00> : vector<256x128xf32>
    %151 = tpu.matmul %147, %150, %cst_119 {dimension_numbers = #tpu.dot_dimension_numbers<[1], [0], [0], [1], [0, 0, 1, 1], [], []>} : vector<256x8xbf16>, vector<8x128xbf16>, vector<256x128xf32> -> vector<256x128xf32>
    %152 = arith.addf %148, %151 : vector<256x128xf32>
    %c0_120 = arith.constant 0 : index
    %c0_121 = arith.constant 0 : index
    %153 = vector.load %arg6[%c0_120, %c0_121] : memref<256x128xf32, #tpu.memory_space<vmem>>, vector<256x128xf32>
    tpu.vector_store %arg6[%c0_120, %c0_121], %152 {strides = array<i32>} : memref<256x128xf32, #tpu.memory_space<vmem>>, vector<256x128xf32>,
    %c120_i32 = arith.constant 120 : i32
    %154 = arith.addi %1, %c120_i32 : i32
    %155 = arith.index_cast %154 : i32 to index
    %c0_122 = arith.constant 0 : index
    %156 = vector.load %arg2[%155, %c0_122] : memref<2272x8xf32, #tpu.memory_space<vmem>>, vector<256x8xf32>
    %157 = arith.truncf %156 : vector<256x8xf32> to vector<256x8xbf16>
    %c0_123 = arith.constant 0 : index
    %c0_124 = arith.constant 0 : index
    %158 = vector.load %arg6[%c0_123, %c0_124] : memref<256x128xf32, #tpu.memory_space<vmem>>, vector<256x128xf32>
    %c15 = arith.constant 15 : index
    %c0_125 = arith.constant 0 : index
    %c0_126 = arith.constant 0 : index
    %159 = vector.load %arg3[%c15, %c0_125, %c0_126] : memref<27x8x128xbf16, #tpu.memory_space<vmem>>, vector<1x8x128xbf16>
    %160 = vector.shape_cast %159 : vector<1x8x128xbf16> to vector<8x128xbf16>
    %cst_127 = arith.constant dense<0.000000e+00> : vector<256x128xf32>
    %161 = tpu.matmul %157, %160, %cst_127 {dimension_numbers = #tpu.dot_dimension_numbers<[1], [0], [0], [1], [0, 0, 1, 1], [], []>} : vector<256x8xbf16>, vector<8x128xbf16>, vector<256x128xf32> -> vector<256x128xf32>
    %162 = arith.addf %158, %161 : vector<256x128xf32>
    %c0_128 = arith.constant 0 : index
    %c0_129 = arith.constant 0 : index
    %163 = vector.load %arg6[%c0_128, %c0_129] : memref<256x128xf32, #tpu.memory_space<vmem>>, vector<256x128xf32>
    tpu.vector_store %arg6[%c0_128, %c0_129], %162 {strides = array<i32>} : memref<256x128xf32, #tpu.memory_space<vmem>>, vector<256x128xf32>,
    %c121_i32 = arith.constant 121 : i32
    %164 = arith.addi %1, %c121_i32 : i32
    %165 = arith.index_cast %164 : i32 to index
    %c0_130 = arith.constant 0 : index
    %166 = vector.load %arg2[%165, %c0_130] : memref<2272x8xf32, #tpu.memory_space<vmem>>, vector<256x8xf32>
    %167 = arith.truncf %166 : vector<256x8xf32> to vector<256x8xbf16>
    %c0_131 = arith.constant 0 : index
    %c0_132 = arith.constant 0 : index
    %168 = vector.load %arg6[%c0_131, %c0_132] : memref<256x128xf32, #tpu.memory_space<vmem>>, vector<256x128xf32>
    %c16 = arith.constant 16 : index
    %c0_133 = arith.constant 0 : index
    %c0_134 = arith.constant 0 : index
    %169 = vector.load %arg3[%c16, %c0_133, %c0_134] : memref<27x8x128xbf16, #tpu.memory_space<vmem>>, vector<1x8x128xbf16>
    %170 = vector.shape_cast %169 : vector<1x8x128xbf16> to vector<8x128xbf16>
    %cst_135 = arith.constant dense<0.000000e+00> : vector<256x128xf32>
    %171 = tpu.matmul %167, %170, %cst_135 {dimension_numbers = #tpu.dot_dimension_numbers<[1], [0], [0], [1], [0, 0, 1, 1], [], []>} : vector<256x8xbf16>, vector<8x128xbf16>, vector<256x128xf32> -> vector<256x128xf32>
    %172 = arith.addf %168, %171 : vector<256x128xf32>
    %c0_136 = arith.constant 0 : index
    %c0_137 = arith.constant 0 : index
    %173 = vector.load %arg6[%c0_136, %c0_137] : memref<256x128xf32, #tpu.memory_space<vmem>>, vector<256x128xf32>
    tpu.vector_store %arg6[%c0_136, %c0_137], %172 {strides = array<i32>} : memref<256x128xf32, #tpu.memory_space<vmem>>, vector<256x128xf32>,
    %c122_i32 = arith.constant 122 : i32
    %174 = arith.addi %1, %c122_i32 : i32
    %175 = arith.index_cast %174 : i32 to index
    %c0_138 = arith.constant 0 : index
    %176 = vector.load %arg2[%175, %c0_138] : memref<2272x8xf32, #tpu.memory_space<vmem>>, vector<256x8xf32>
    %177 = arith.truncf %176 : vector<256x8xf32> to vector<256x8xbf16>
    %c0_139 = arith.constant 0 : index
    %c0_140 = arith.constant 0 : index
    %178 = vector.load %arg6[%c0_139, %c0_140] : memref<256x128xf32, #tpu.memory_space<vmem>>, vector<256x128xf32>
    %c17 = arith.constant 17 : index
    %c0_141 = arith.constant 0 : index
    %c0_142 = arith.constant 0 : index
    %179 = vector.load %arg3[%c17, %c0_141, %c0_142] : memref<27x8x128xbf16, #tpu.memory_space<vmem>>, vector<1x8x128xbf16>
    %180 = vector.shape_cast %179 : vector<1x8x128xbf16> to vector<8x128xbf16>
    %cst_143 = arith.constant dense<0.000000e+00> : vector<256x128xf32>
    %181 = tpu.matmul %177, %180, %cst_143 {dimension_numbers = #tpu.dot_dimension_numbers<[1], [0], [0], [1], [0, 0, 1, 1], [], []>} : vector<256x8xbf16>, vector<8x128xbf16>, vector<256x128xf32> -> vector<256x128xf32>
    %182 = arith.addf %178, %181 : vector<256x128xf32>
    %c0_144 = arith.constant 0 : index
    %c0_145 = arith.constant 0 : index
    %183 = vector.load %arg6[%c0_144, %c0_145] : memref<256x128xf32, #tpu.memory_space<vmem>>, vector<256x128xf32>
    tpu.vector_store %arg6[%c0_144, %c0_145], %182 {strides = array<i32>} : memref<256x128xf32, #tpu.memory_space<vmem>>, vector<256x128xf32>,
    %c200_i32 = arith.constant 200 : i32
    %184 = arith.addi %1, %c200_i32 : i32
    %185 = arith.index_cast %184 : i32 to index
    %c0_146 = arith.constant 0 : index
    %186 = vector.load %arg2[%185, %c0_146] : memref<2272x8xf32, #tpu.memory_space<vmem>>, vector<256x8xf32>
    %187 = arith.truncf %186 : vector<256x8xf32> to vector<256x8xbf16>
    %c0_147 = arith.constant 0 : index
    %c0_148 = arith.constant 0 : index
    %188 = vector.load %arg6[%c0_147, %c0_148] : memref<256x128xf32, #tpu.memory_space<vmem>>, vector<256x128xf32>
    %c18 = arith.constant 18 : index
    %c0_149 = arith.constant 0 : index
    %c0_150 = arith.constant 0 : index
    %189 = vector.load %arg3[%c18, %c0_149, %c0_150] : memref<27x8x128xbf16, #tpu.memory_space<vmem>>, vector<1x8x128xbf16>
    %190 = vector.shape_cast %189 : vector<1x8x128xbf16> to vector<8x128xbf16>
    %cst_151 = arith.constant dense<0.000000e+00> : vector<256x128xf32>
    %191 = tpu.matmul %187, %190, %cst_151 {dimension_numbers = #tpu.dot_dimension_numbers<[1], [0], [0], [1], [0, 0, 1, 1], [], []>} : vector<256x8xbf16>, vector<8x128xbf16>, vector<256x128xf32> -> vector<256x128xf32>
    %192 = arith.addf %188, %191 : vector<256x128xf32>
    %c0_152 = arith.constant 0 : index
    %c0_153 = arith.constant 0 : index
    %193 = vector.load %arg6[%c0_152, %c0_153] : memref<256x128xf32, #tpu.memory_space<vmem>>, vector<256x128xf32>
    tpu.vector_store %arg6[%c0_152, %c0_153], %192 {strides = array<i32>} : memref<256x128xf32, #tpu.memory_space<vmem>>, vector<256x128xf32>,
    %c201_i32 = arith.constant 201 : i32
    %194 = arith.addi %1, %c201_i32 : i32
    %195 = arith.index_cast %194 : i32 to index
    %c0_154 = arith.constant 0 : index
    %196 = vector.load %arg2[%195, %c0_154] : memref<2272x8xf32, #tpu.memory_space<vmem>>, vector<256x8xf32>
    %197 = arith.truncf %196 : vector<256x8xf32> to vector<256x8xbf16>
    %c0_155 = arith.constant 0 : index
    %c0_156 = arith.constant 0 : index
    %198 = vector.load %arg6[%c0_155, %c0_156] : memref<256x128xf32, #tpu.memory_space<vmem>>, vector<256x128xf32>
    %c19 = arith.constant 19 : index
    %c0_157 = arith.constant 0 : index
    %c0_158 = arith.constant 0 : index
    %199 = vector.load %arg3[%c19, %c0_157, %c0_158] : memref<27x8x128xbf16, #tpu.memory_space<vmem>>, vector<1x8x128xbf16>
    %200 = vector.shape_cast %199 : vector<1x8x128xbf16> to vector<8x128xbf16>
    %cst_159 = arith.constant dense<0.000000e+00> : vector<256x128xf32>
    %201 = tpu.matmul %197, %200, %cst_159 {dimension_numbers = #tpu.dot_dimension_numbers<[1], [0], [0], [1], [0, 0, 1, 1], [], []>} : vector<256x8xbf16>, vector<8x128xbf16>, vector<256x128xf32> -> vector<256x128xf32>
    %202 = arith.addf %198, %201 : vector<256x128xf32>
    %c0_160 = arith.constant 0 : index
    %c0_161 = arith.constant 0 : index
    %203 = vector.load %arg6[%c0_160, %c0_161] : memref<256x128xf32, #tpu.memory_space<vmem>>, vector<256x128xf32>
    tpu.vector_store %arg6[%c0_160, %c0_161], %202 {strides = array<i32>} : memref<256x128xf32, #tpu.memory_space<vmem>>, vector<256x128xf32>,
    %c202_i32 = arith.constant 202 : i32
    %204 = arith.addi %1, %c202_i32 : i32
    %205 = arith.index_cast %204 : i32 to index
    %c0_162 = arith.constant 0 : index
    %206 = vector.load %arg2[%205, %c0_162] : memref<2272x8xf32, #tpu.memory_space<vmem>>, vector<256x8xf32>
    %207 = arith.truncf %206 : vector<256x8xf32> to vector<256x8xbf16>
    %c0_163 = arith.constant 0 : index
    %c0_164 = arith.constant 0 : index
    %208 = vector.load %arg6[%c0_163, %c0_164] : memref<256x128xf32, #tpu.memory_space<vmem>>, vector<256x128xf32>
    %c20 = arith.constant 20 : index
    %c0_165 = arith.constant 0 : index
    %c0_166 = arith.constant 0 : index
    %209 = vector.load %arg3[%c20, %c0_165, %c0_166] : memref<27x8x128xbf16, #tpu.memory_space<vmem>>, vector<1x8x128xbf16>
    %210 = vector.shape_cast %209 : vector<1x8x128xbf16> to vector<8x128xbf16>
    %cst_167 = arith.constant dense<0.000000e+00> : vector<256x128xf32>
    %211 = tpu.matmul %207, %210, %cst_167 {dimension_numbers = #tpu.dot_dimension_numbers<[1], [0], [0], [1], [0, 0, 1, 1], [], []>} : vector<256x8xbf16>, vector<8x128xbf16>, vector<256x128xf32> -> vector<256x128xf32>
    %212 = arith.addf %208, %211 : vector<256x128xf32>
    %c0_168 = arith.constant 0 : index
    %c0_169 = arith.constant 0 : index
    %213 = vector.load %arg6[%c0_168, %c0_169] : memref<256x128xf32, #tpu.memory_space<vmem>>, vector<256x128xf32>
    tpu.vector_store %arg6[%c0_168, %c0_169], %212 {strides = array<i32>} : memref<256x128xf32, #tpu.memory_space<vmem>>, vector<256x128xf32>,
    %c210_i32 = arith.constant 210 : i32
    %214 = arith.addi %1, %c210_i32 : i32
    %215 = arith.index_cast %214 : i32 to index
    %c0_170 = arith.constant 0 : index
    %216 = vector.load %arg2[%215, %c0_170] : memref<2272x8xf32, #tpu.memory_space<vmem>>, vector<256x8xf32>
    %217 = arith.truncf %216 : vector<256x8xf32> to vector<256x8xbf16>
    %c0_171 = arith.constant 0 : index
    %c0_172 = arith.constant 0 : index
    %218 = vector.load %arg6[%c0_171, %c0_172] : memref<256x128xf32, #tpu.memory_space<vmem>>, vector<256x128xf32>
    %c21 = arith.constant 21 : index
    %c0_173 = arith.constant 0 : index
    %c0_174 = arith.constant 0 : index
    %219 = vector.load %arg3[%c21, %c0_173, %c0_174] : memref<27x8x128xbf16, #tpu.memory_space<vmem>>, vector<1x8x128xbf16>
    %220 = vector.shape_cast %219 : vector<1x8x128xbf16> to vector<8x128xbf16>
    %cst_175 = arith.constant dense<0.000000e+00> : vector<256x128xf32>
    %221 = tpu.matmul %217, %220, %cst_175 {dimension_numbers = #tpu.dot_dimension_numbers<[1], [0], [0], [1], [0, 0, 1, 1], [], []>} : vector<256x8xbf16>, vector<8x128xbf16>, vector<256x128xf32> -> vector<256x128xf32>
    %222 = arith.addf %218, %221 : vector<256x128xf32>
    %c0_176 = arith.constant 0 : index
    %c0_177 = arith.constant 0 : index
    %223 = vector.load %arg6[%c0_176, %c0_177] : memref<256x128xf32, #tpu.memory_space<vmem>>, vector<256x128xf32>
    tpu.vector_store %arg6[%c0_176, %c0_177], %222 {strides = array<i32>} : memref<256x128xf32, #tpu.memory_space<vmem>>, vector<256x128xf32>,
    %c211_i32 = arith.constant 211 : i32
    %224 = arith.addi %1, %c211_i32 : i32
    %225 = arith.index_cast %224 : i32 to index
    %c0_178 = arith.constant 0 : index
    %226 = vector.load %arg2[%225, %c0_178] : memref<2272x8xf32, #tpu.memory_space<vmem>>, vector<256x8xf32>
    %227 = arith.truncf %226 : vector<256x8xf32> to vector<256x8xbf16>
    %c0_179 = arith.constant 0 : index
    %c0_180 = arith.constant 0 : index
    %228 = vector.load %arg6[%c0_179, %c0_180] : memref<256x128xf32, #tpu.memory_space<vmem>>, vector<256x128xf32>
    %c22 = arith.constant 22 : index
    %c0_181 = arith.constant 0 : index
    %c0_182 = arith.constant 0 : index
    %229 = vector.load %arg3[%c22, %c0_181, %c0_182] : memref<27x8x128xbf16, #tpu.memory_space<vmem>>, vector<1x8x128xbf16>
    %230 = vector.shape_cast %229 : vector<1x8x128xbf16> to vector<8x128xbf16>
    %cst_183 = arith.constant dense<0.000000e+00> : vector<256x128xf32>
    %231 = tpu.matmul %227, %230, %cst_183 {dimension_numbers = #tpu.dot_dimension_numbers<[1], [0], [0], [1], [0, 0, 1, 1], [], []>} : vector<256x8xbf16>, vector<8x128xbf16>, vector<256x128xf32> -> vector<256x128xf32>
    %232 = arith.addf %228, %231 : vector<256x128xf32>
    %c0_184 = arith.constant 0 : index
    %c0_185 = arith.constant 0 : index
    %233 = vector.load %arg6[%c0_184, %c0_185] : memref<256x128xf32, #tpu.memory_space<vmem>>, vector<256x128xf32>
    tpu.vector_store %arg6[%c0_184, %c0_185], %232 {strides = array<i32>} : memref<256x128xf32, #tpu.memory_space<vmem>>, vector<256x128xf32>,
    %c212_i32 = arith.constant 212 : i32
    %234 = arith.addi %1, %c212_i32 : i32
    %235 = arith.index_cast %234 : i32 to index
    %c0_186 = arith.constant 0 : index
    %236 = vector.load %arg2[%235, %c0_186] : memref<2272x8xf32, #tpu.memory_space<vmem>>, vector<256x8xf32>
    %237 = arith.truncf %236 : vector<256x8xf32> to vector<256x8xbf16>
    %c0_187 = arith.constant 0 : index
    %c0_188 = arith.constant 0 : index
    %238 = vector.load %arg6[%c0_187, %c0_188] : memref<256x128xf32, #tpu.memory_space<vmem>>, vector<256x128xf32>
    %c23 = arith.constant 23 : index
    %c0_189 = arith.constant 0 : index
    %c0_190 = arith.constant 0 : index
    %239 = vector.load %arg3[%c23, %c0_189, %c0_190] : memref<27x8x128xbf16, #tpu.memory_space<vmem>>, vector<1x8x128xbf16>
    %240 = vector.shape_cast %239 : vector<1x8x128xbf16> to vector<8x128xbf16>
    %cst_191 = arith.constant dense<0.000000e+00> : vector<256x128xf32>
    %241 = tpu.matmul %237, %240, %cst_191 {dimension_numbers = #tpu.dot_dimension_numbers<[1], [0], [0], [1], [0, 0, 1, 1], [], []>} : vector<256x8xbf16>, vector<8x128xbf16>, vector<256x128xf32> -> vector<256x128xf32>
    %242 = arith.addf %238, %241 : vector<256x128xf32>
    %c0_192 = arith.constant 0 : index
    %c0_193 = arith.constant 0 : index
    %243 = vector.load %arg6[%c0_192, %c0_193] : memref<256x128xf32, #tpu.memory_space<vmem>>, vector<256x128xf32>
    tpu.vector_store %arg6[%c0_192, %c0_193], %242 {strides = array<i32>} : memref<256x128xf32, #tpu.memory_space<vmem>>, vector<256x128xf32>,
    %c220_i32 = arith.constant 220 : i32
    %244 = arith.addi %1, %c220_i32 : i32
    %245 = arith.index_cast %244 : i32 to index
    %c0_194 = arith.constant 0 : index
    %246 = vector.load %arg2[%245, %c0_194] : memref<2272x8xf32, #tpu.memory_space<vmem>>, vector<256x8xf32>
    %247 = arith.truncf %246 : vector<256x8xf32> to vector<256x8xbf16>
    %c0_195 = arith.constant 0 : index
    %c0_196 = arith.constant 0 : index
    %248 = vector.load %arg6[%c0_195, %c0_196] : memref<256x128xf32, #tpu.memory_space<vmem>>, vector<256x128xf32>
    %c24 = arith.constant 24 : index
    %c0_197 = arith.constant 0 : index
    %c0_198 = arith.constant 0 : index
    %249 = vector.load %arg3[%c24, %c0_197, %c0_198] : memref<27x8x128xbf16, #tpu.memory_space<vmem>>, vector<1x8x128xbf16>
    %250 = vector.shape_cast %249 : vector<1x8x128xbf16> to vector<8x128xbf16>
    %cst_199 = arith.constant dense<0.000000e+00> : vector<256x128xf32>
    %251 = tpu.matmul %247, %250, %cst_199 {dimension_numbers = #tpu.dot_dimension_numbers<[1], [0], [0], [1], [0, 0, 1, 1], [], []>} : vector<256x8xbf16>, vector<8x128xbf16>, vector<256x128xf32> -> vector<256x128xf32>
    %252 = arith.addf %248, %251 : vector<256x128xf32>
    %c0_200 = arith.constant 0 : index
    %c0_201 = arith.constant 0 : index
    %253 = vector.load %arg6[%c0_200, %c0_201] : memref<256x128xf32, #tpu.memory_space<vmem>>, vector<256x128xf32>
    tpu.vector_store %arg6[%c0_200, %c0_201], %252 {strides = array<i32>} : memref<256x128xf32, #tpu.memory_space<vmem>>, vector<256x128xf32>,
    %c221_i32 = arith.constant 221 : i32
    %254 = arith.addi %1, %c221_i32 : i32
    %255 = arith.index_cast %254 : i32 to index
    %c0_202 = arith.constant 0 : index
    %256 = vector.load %arg2[%255, %c0_202] : memref<2272x8xf32, #tpu.memory_space<vmem>>, vector<256x8xf32>
    %257 = arith.truncf %256 : vector<256x8xf32> to vector<256x8xbf16>
    %c0_203 = arith.constant 0 : index
    %c0_204 = arith.constant 0 : index
    %258 = vector.load %arg6[%c0_203, %c0_204] : memref<256x128xf32, #tpu.memory_space<vmem>>, vector<256x128xf32>
    %c25 = arith.constant 25 : index
    %c0_205 = arith.constant 0 : index
    %c0_206 = arith.constant 0 : index
    %259 = vector.load %arg3[%c25, %c0_205, %c0_206] : memref<27x8x128xbf16, #tpu.memory_space<vmem>>, vector<1x8x128xbf16>
    %260 = vector.shape_cast %259 : vector<1x8x128xbf16> to vector<8x128xbf16>
    %cst_207 = arith.constant dense<0.000000e+00> : vector<256x128xf32>
    %261 = tpu.matmul %257, %260, %cst_207 {dimension_numbers = #tpu.dot_dimension_numbers<[1], [0], [0], [1], [0, 0, 1, 1], [], []>} : vector<256x8xbf16>, vector<8x128xbf16>, vector<256x128xf32> -> vector<256x128xf32>
    %262 = arith.addf %258, %261 : vector<256x128xf32>
    %c0_208 = arith.constant 0 : index
    %c0_209 = arith.constant 0 : index
    %263 = vector.load %arg6[%c0_208, %c0_209] : memref<256x128xf32, #tpu.memory_space<vmem>>, vector<256x128xf32>
    tpu.vector_store %arg6[%c0_208, %c0_209], %262 {strides = array<i32>} : memref<256x128xf32, #tpu.memory_space<vmem>>, vector<256x128xf32>,
    %c222_i32 = arith.constant 222 : i32
    %264 = arith.addi %1, %c222_i32 : i32
    %265 = arith.index_cast %264 : i32 to index
    %c0_210 = arith.constant 0 : index
    %266 = vector.load %arg2[%265, %c0_210] : memref<2272x8xf32, #tpu.memory_space<vmem>>, vector<256x8xf32>
    %267 = arith.truncf %266 : vector<256x8xf32> to vector<256x8xbf16>
    %c0_211 = arith.constant 0 : index
    %c0_212 = arith.constant 0 : index
    %268 = vector.load %arg6[%c0_211, %c0_212] : memref<256x128xf32, #tpu.memory_space<vmem>>, vector<256x128xf32>
    %c26 = arith.constant 26 : index
    %c0_213 = arith.constant 0 : index
    %c0_214 = arith.constant 0 : index
    %269 = vector.load %arg3[%c26, %c0_213, %c0_214] : memref<27x8x128xbf16, #tpu.memory_space<vmem>>, vector<1x8x128xbf16>
    %270 = vector.shape_cast %269 : vector<1x8x128xbf16> to vector<8x128xbf16>
    %cst_215 = arith.constant dense<0.000000e+00> : vector<256x128xf32>
    %271 = tpu.matmul %267, %270, %cst_215 {dimension_numbers = #tpu.dot_dimension_numbers<[1], [0], [0], [1], [0, 0, 1, 1], [], []>} : vector<256x8xbf16>, vector<8x128xbf16>, vector<256x128xf32> -> vector<256x128xf32>
    %272 = arith.addf %268, %271 : vector<256x128xf32>
    %c0_216 = arith.constant 0 : index
    %c0_217 = arith.constant 0 : index
    %273 = vector.load %arg6[%c0_216, %c0_217] : memref<256x128xf32, #tpu.memory_space<vmem>>, vector<256x128xf32>
    tpu.vector_store %arg6[%c0_216, %c0_217], %272 {strides = array<i32>} : memref<256x128xf32, #tpu.memory_space<vmem>>, vector<256x128xf32>,
    %c0_218 = arith.constant 0 : index
    %c0_219 = arith.constant 0 : index
    %274 = vector.load %arg6[%c0_218, %c0_219] : memref<256x128xf32, #tpu.memory_space<vmem>>, vector<256x128xf32>
    %c0_220 = arith.constant 0 : index
    %c0_221 = arith.constant 0 : index
    %275 = vector.load %arg4[%c0_220, %c0_221] : memref<1x128xf32, #tpu.memory_space<vmem>>, vector<1x128xf32>
    %276 = vector.broadcast %275 : vector<1x128xf32> to vector<256x128xf32>
    %277 = arith.addf %274, %276 : vector<256x128xf32>
    %cst_222 = arith.constant 0.000000e+00 : f32
    %278 = vector.broadcast %cst_222 : f32 to vector<256x128xf32>
    %279 = arith.maximumf %277, %278 : vector<256x128xf32>
    %c0_223 = arith.constant 0 : index
    %c0_224 = arith.constant 0 : index
    %280 = vector.load %arg5[%c0_223, %c0_224] : memref<256x128xf32, #tpu.memory_space<vmem>>, vector<256x128xf32>
    tpu.vector_store %arg5[%c0_223, %c0_224], %279 {strides = array<i32>} : memref<256x128xf32, #tpu.memory_space<vmem>>, vector<256x128xf32>,
    return
  }
  func.func @transform_0(%arg0: i32, %arg1: i32) -> (i32, i32) {
    %c0_i32 = arith.constant 0 : i32
    %c0_i32_0 = arith.constant 0 : i32
    %c0_i32_1 = arith.constant 0 : i32
    return %c0_i32, %c0_i32_0 : i32, i32
  }
  func.func @transform_1(%arg0: i32, %arg1: i32) -> (i32, i32, i32) {
    %c0_i32 = arith.constant 0 : i32
    %c0_i32_0 = arith.constant 0 : i32
    %c0_i32_1 = arith.constant 0 : i32
    return %c0_i32, %c0_i32_0, %arg1 : i32, i32, i32
  }
  func.func @transform_2(%arg0: i32, %arg1: i32) -> (i32, i32) {
    %c0_i32 = arith.constant 0 : i32
    %c0_i32_0 = arith.constant 0 : i32
    return %c0_i32, %arg1 : i32, i32
  }
  func.func @transform_3(%arg0: i32, %arg1: i32) -> (i32, i32) {
    %c0_i32 = arith.constant 0 : i32
    return %arg0, %arg1 : i32, i32
  }
}

</mosaic_0001>

<bundles_post_ra>
// kernel: tpu_custom_call.1
= control target key start
LH: loop header
LB: loop body
LE: loop exit
PB: predicated region body
PF: predicated region fallthrough
CT: control target
= control target key end

     0   :  { %8 = vsyncpa [#allocation4], 0  ;;  %s12347_s0 = inlined_call_operand.vmem [shape: f32[2272,8], index: 0, kind: input, shape index: {}]   ;;  %s12348_s1 = inlined_call_operand.vmem [shape: bf16[27,8,128], index: 1, kind: input, shape index: {}]   ;;  %s12349_s2 = inlined_call_operand.vmem [shape: f32[1,128], index: 2, kind: input, shape index: {}]   ;;  %s12350_s3 = inlined_call_operand.hbm [shape: f32[2048,128], index: 3, kind: output, shape index: {}]  }
   0x1   :  { %10 = vsyncpa [#allocation4 + $0x1], 0  ;;  %s9814_s12 = smov 0   ;;  %s9816_s13 = smov 0  }
   0x2   :  { %s9818_s14 = smov 0   ;;  %s9820_s15 = smov 0  }
   0x3   :  { %s9822_s16 = smov 0   ;;  %s9824_s17 = smov 0  }
   0x4 LB: > { %s8321_s18 = sadd.s32 4294967295, %s9790_s17   ;;  %s8322_s19 = sadd.s32 4294967294, %s9790_s17   ;;  %s9790_s17 = sphi %s9824_s17, %s16_s17   ;;  %s9786_s16 = sphi %s9822_s16, %s12522_s16   ;;  %s9782_s15 = sphi %s9820_s15, %s12521_s15   ;;  %s9778_s14 = sphi %s9818_s14, %s12520_s14   ;;  %s9774_s13 = sphi %s9816_s13, %s12519_s13   ;;  %s9770_s12 = sphi %s9814_s12, %s12518_s12  }
   0x5   : > { %s28_s20 = sadd.s32 1, %s9786_s16  ;;  %s110_s21 = sadd.s32 1, %s9778_s14 }
   0x6   : > { %p30_p0 = scmp.ge.s32.totalorder %s28_s20, 8  ;;  %p120_p1 = scmp.ne.s32.totalorder %s9778_s14, %s9774_s13 }
   0x7   : > { %p121_p2 = scmp.eq.s32.totalorder %s8321_s18, 7  ;;  %p126_p3 = scmp.ne.s32.totalorder %s9774_s13, %s9770_s12 }
   0x8   : > { %s12524_s20 = smov (%p30_p0, %s28_s20), 0  ;;  %p127_p5 = scmp.eq.s32.totalorder %s8322_s19, 7 }
   0x9   : > { %p9854_p4 = por %p121_p2, %p120_p1  ;;  %s105_s23 = ssub.s32 %s9786_s16, %s12524_s20 }
   0xa   : > { %p8326_p6 = scmp.ge.s32.totalorder %s9790_s17, 1  ;;  %p108_p7 = scmp.eq.s32.totalorder %s105_s23, 0 }
   0xb   : > { %p9861_p8 = por %p127_p5, %p126_p3  ;;  %p161_p9 = scmp.lt.s32.totalorder %s9790_s17, 9 }
   0xc   : > { %s9867_s25 = scalar_select %p108_p7, %s9778_s14, %s110_s21  }
   0xd   : > { %p162_p10 = pnand %p8326_p6, %p161_p9 }
   0xf   : > { %165 = sbr.rel (%p162_p10) target bundleno = 1895 (0x767), region = 32 }
  0x14   : > { %v310_v0 = vld [vmem:[%s12348_s1] sm:$0xf]  ;;  %vm360_vm0 = vcmask 1043456   ;;  %v8378_v1 = vld [vmem:[%s12348_s1 + $0x4] sm:$0xf]  ;;  %s8328_s30 = sshll.u32 %s9782_s15, 8 }
  0x15   : > { %v362_v2 = vsel %vm360_vm0, %v310_v0, 0  ;;  %v650_v3 = vsel %vm360_vm0, %v8378_v1, 0  ;;  %v8428_v4 = vld [vmem:[%s12348_s1 + $0x8] sm:$0xf]  ;;  %s9886_s8 = scalar_lea.vmem %s12347_s0, %s8328_s30  ;;  %vm311_vm1 = vcmask 64512   ;;  %s184_s18 = sand.u32 1, %s9774_s13  }
  0x16   : > { %371 = vmatpush.bf16.msra.mxu0 %v362_v2  ;;  %9651 = vmatpush.bf16.msra.mxu3 %v362_v2  ;;  %v938_v5 = vsel %vm360_vm0, %v8428_v4, 0  ;;  %v230_v6 = vld [vmem:[%s9886_s8] sm:$0xff]  ;;  %v231_v7 = vld [vmem:[%s9886_s8 + $0x8] sm:$0xff]  ;;  %v8628_v17 = vld [vmem:[%s12348_s1 + $0x18] sm:$0xf]  ;;  %s8327_s23 = sshll.u32 %s184_s18, 8  ;;  %s8150_s28 = scalar_lea.hbm %s12350_s3, %s8328_s30 }
  0x17   : > { %v254_v8 = vld [vmem:[%s9886_s8 + $0xc0] sm:$0xff]  ;;  %659 = vmatpush.bf16.msra.mxu1 %v650_v3  ;;  %947 = vmatpush.bf16.msra.mxu2 %v938_v5  ;;  %v262_v9 = vpack.c.bf16 %v231_v7, %v230_v6  ;;  %v255_v10 = vld [vmem:[%s9886_s8 + $0xc8] sm:$0xff]  ;;  %v2090_v19 = vsel %vm360_vm0, %v8628_v17, 0  ;;  %v8528_v20 = vld [vmem:[%s12348_s1 + $0x10] sm:$0xf]  ;;  %s12149_s26 = scalar_lea.vmem [#allocation3], %s8327_s23 }
  0x18   : > { %v8346_v11 = vld [vmem:[%s9886_s8 + $0x1] sm:$0xff]  ;;  %v8347_v12 = vld [vmem:[%s9886_s8 + $0x9] sm:$0xff]  ;;  %v274_v13 = vpack.c.bf16 %v255_v10, %v254_v8  ;;  %v8578_v21 = vld [vmem:[%s12348_s1 + $0x14] sm:$0xf]  ;;  %v1514_v22 = vsel %vm360_vm0, %v8528_v20, 0  ;;  %s8151_s29 = sshll.u32 %s12149_s26, 4  ;;  %s8152_s29 = int_to_ptr.vmem [resolvable:$true] %s8151_s29 }
  0x19   : > { %v551_v14 = vpack.c.bf16 %v8347_v12, %v8346_v11  ;;  %v8396_v15 = vld [vmem:[%s9886_s8 + $0x2] sm:$0xff]  ;;  %v9897_v16 = vld [vmem:[%s9886_s8 + $0xa] sm:$0xff]  ;;  %8329 = vmatmul.msk.bf16.vlgmr.msra.gmra.mxu0 %vm311_vm1, %v262_v9  ;;  %v1802_v23 = vsel %vm360_vm0, %v8578_v21, 0  ;;  %v233_v25 = vld [vmem:[%s9886_s8 + $0x18] sm:$0xff]  ;;  %s8153_s4 = sshll.u32 %s8150_s28, 4  ;;  %s8138_s5 = scalar_lea.sflag [#allocation4], %s184_s18  ;;  %s8154_s4 = int_to_ptr.hbm [resolvable:$true] %s8153_s4 }
  0x1a   : > { %9652 = vmatpush.bf16.msrb.mxu3 %v650_v3  ;;  %v839_v18 = vpack.c.bf16 %v9897_v16, %v8396_v15  ;;  %1523 = vmatpush.bf16.msrb.mxu0 %v1514_v22  ;;  %v232_v24 = vld [vmem:[%s9886_s8 + $0x10] sm:$0xff]  ;;  %v257_v27 = vld [vmem:[%s9886_s8 + $0xd8] sm:$0xff]  ;;  %v234_v36 = vld [vmem:[%s9886_s8 + $0x20] sm:$0xff]  ;;  %s9726_s15 = sshra.s32 %s8154_s4, 4  ;;  %s9732_s9 = scalar_lea.hbm %s12350_s3, 2048  ;;  %s9727_s15 = int_to_ptr.hbm [resolvable:$true] %s9726_s15 }
  0x1b   : > { %8341 = vmatmul.msk.bf16.vlgmr.msra.gmra.mxu3 %vm311_vm1, %v274_v13  ;;  %8379 = vmatmul.msk.bf16.vlgmr.msra.gmra.mxu1 %vm311_vm1, %v551_v14  ;;  %v256_v26 = vld [vmem:[%s9886_s8 + $0xd0] sm:$0xff]  ;;  %v8349_v29 = vld [vmem:[%s9886_s8 + $0x19] sm:$0xff]  ;;  %v263_v32 = vpack.c.bf16 %v233_v25, %v232_v24  ;;  %v235_v37 = vld [vmem:[%s9886_s8 + $0x28] sm:$0xff]  ;;  %s9728_s6 = scalar_lea.hbm %s9727_s15, 256  ;;  %p9733_p0 = scmp.lt.s32.totalorder %s9727_s15, %s12350_s3 }
  0x1c   : > { %8429 = vmatmul.msk.bf16.vlgmr.msra.gmra.mxu2 %vm311_vm1, %v839_v18  ;;  %1811 = vmatpush.bf16.msrb.mxu1 %v1802_v23  ;;  %v8348_v28 = vld [vmem:[%s9886_s8 + $0x11] sm:$0xff]  ;;  %v9926_v31 = vld [vmem:[%s9886_s8 + $0x1a] sm:$0xff]  ;;  %v275_v33 = vpack.c.bf16 %v257_v27, %v256_v26  ;;  %v259_v39 = vld [vmem:[%s9886_s8 + $0xe8] sm:$0xff]  ;;  %v264_v44 = vpack.c.bf16 %v235_v37, %v234_v36  ;;  %p9729_p11 = scmp.ne.s32.totalorder %s9727_s15, %s9728_s6  ;;  %p9734_p1 = scmp.lt.s32.totalorder %s9732_s9, %s9728_s6 }
  0x1d   : > { %2099 = vmatpush.bf16.msrb.mxu2 %v2090_v19  ;;  %v9923_v30 = vld [vmem:[%s9886_s8 + $0x12] sm:$0xff]  ;;  %v552_v34 = vpack.c.bf16 %v8349_v29, %v8348_v28  ;;  %v258_v38 = vld [vmem:[%s9886_s8 + $0xe0] sm:$0xff]  ;;  %v8351_v41 = vld [vmem:[%s9886_s8 + $0x29] sm:$0xff] }
  0x1e   : > { %9653 = vmatpush.bf16.msra.mxu3 %v938_v5  ;;  %v840_v35 = vpack.c.bf16 %v9926_v31, %v9923_v30  ;;  %v8350_v40 = vld [vmem:[%s9886_s8 + $0x21] sm:$0xff]  ;;  %v9944_v43 = vld [vmem:[%s9886_s8 + $0x2a] sm:$0xff]  ;;  %v276_v45 = vpack.c.bf16 %v259_v39, %v258_v38  ;;  %v237_v49 = vld [vmem:[%s9886_s8 + $0x38] sm:$0xff]  ;;  %p9730_p12 = pnand %p9729_p11, %p9854_p4  ;;  %p9735_p2 = por %p9734_p1, %p9733_p0 }
  0x1f   : > { %v9941_v42 = vld [vmem:[%s9886_s8 + $0x22] sm:$0xff]  ;;  %v553_v46 = vpack.c.bf16 %v8351_v41, %v8350_v40  ;;  %v236_v48 = vld [vmem:[%s9886_s8 + $0x30] sm:$0xff]  ;;  %v261_v51 = vld [vmem:[%s9886_s8 + $0xf8] sm:$0xff] }
  0x20   : > { %v841_v47 = vpack.c.bf16 %v9944_v43, %v9941_v42  ;;  %v260_v50 = vld [vmem:[%s9886_s8 + $0xf0] sm:$0xff]  ;;  %v8353_v53 = vld [vmem:[%s9886_s8 + $0x39] sm:$0xff]  ;;  %v265_v56 = vpack.c.bf16 %v237_v49, %v236_v48  ;;  %v239_v61 = vld [vmem:[%s9886_s8 + $0x48] sm:$0xff]  ;;  %p9731_p13 = pneg %p9730_p12 }
  0x21   : > { %v8352_v52 = vld [vmem:[%s9886_s8 + $0x31] sm:$0xff]  ;;  %v9962_v55 = vld [vmem:[%s9886_s8 + $0x3a] sm:$0xff]  ;;  %v277_v57 = vpack.c.bf16 %v261_v51, %v260_v50  ;;  %v8355_v63 = vld [vmem:[%s9886_s8 + $0x49] sm:$0xff] }
  0x22   : > { %v9959_v54 = vld [vmem:[%s9886_s8 + $0x32] sm:$0xff]  ;;  %v554_v58 = vpack.c.bf16 %v8353_v53, %v8352_v52  ;;  %v238_v60 = vld [vmem:[%s9886_s8 + $0x40] sm:$0xff]  ;;  %v8371_v1 = vld [vmem:[%s9886_s8 + $0xc9] sm:$0xff]  ;;  %p9736_p3 = pnand %p9735_p2, %p9731_p13 }
  0x23   : > { %v842_v59 = vpack.c.bf16 %v9962_v55, %v9959_v54  ;;  %v8354_v62 = vld [vmem:[%s9886_s8 + $0x41] sm:$0xff]  ;;  %v9980_v3 = vld [vmem:[%s9886_s8 + $0x4a] sm:$0xff]  ;;  %v266_v4 = vpack.c.bf16 %v239_v61, %v238_v60  ;;  %v241_v9 = vld [vmem:[%s9886_s8 + $0x58] sm:$0xff] }
  0x24   : > { %v8370_v0 = vld [vmem:[%s9886_s8 + $0xc1] sm:$0xff]  ;;  %v555_v5 = vpack.c.bf16 %v8355_v63, %v8354_v62  ;;  %v240_v8 = vld [vmem:[%s9886_s8 + $0x50] sm:$0xff]  ;;  %v8357_v11 = vld [vmem:[%s9886_s8 + $0x59] sm:$0xff] }
  0x25   : > { %v9977_v2 = vld [vmem:[%s9886_s8 + $0x42] sm:$0xff]  ;;  %v563_v6 = vpack.c.bf16 %v8371_v1, %v8370_v0  ;;  %v8356_v10 = vld [vmem:[%s9886_s8 + $0x51] sm:$0xff]  ;;  %v8373_v13 = vld [vmem:[%s9886_s8 + $0xd9] sm:$0xff]  ;;  %v267_v17 = vpack.c.bf16 %v241_v9, %v240_v8 }
  0x26   : > { %v843_v7 = vpack.c.bf16 %v9980_v3, %v9977_v2  ;;  %v8372_v12 = vld [vmem:[%s9886_s8 + $0xd1] sm:$0xff]  ;;  %v9998_v15 = vld [vmem:[%s9886_s8 + $0x5a] sm:$0xff]  ;;  %v556_v18 = vpack.c.bf16 %v8357_v11, %v8356_v10  ;;  %v243_v22 = vld [vmem:[%s9886_s8 + $0x68] sm:$0xff] }
  0x27   : > { %v9995_v14 = vld [vmem:[%s9886_s8 + $0x52] sm:$0xff]  ;;  %v564_v19 = vpack.c.bf16 %v8373_v13, %v8372_v12  ;;  %v242_v21 = vld [vmem:[%s9886_s8 + $0x60] sm:$0xff]  ;;  %v8359_v24 = vld [vmem:[%s9886_s8 + $0x69] sm:$0xff] }
  0x28   : > { %v844_v20 = vpack.c.bf16 %v9998_v15, %v9995_v14  ;;  %v8358_v23 = vld [vmem:[%s9886_s8 + $0x61] sm:$0xff]  ;;  %v8375_v26 = vld [vmem:[%s9886_s8 + $0xe9] sm:$0xff]  ;;  %v268_v29 = vpack.c.bf16 %v243_v22, %v242_v21  ;;  %v245_v38 = vld [vmem:[%s9886_s8 + $0x78] sm:$0xff] }
  0x29   : > { %8330 = vmatmul.msk.bf16.gmra.mxu0 %vm311_vm1, %v263_v32  ;;  %v8374_v25 = vld [vmem:[%s9886_s8 + $0xe1] sm:$0xff]  ;;  %v10016_v28 = vld [vmem:[%s9886_s8 + $0x6a] sm:$0xff]  ;;  %v557_v32 = vpack.c.bf16 %v8359_v24, %v8358_v23  ;;  %v8361_v40 = vld [vmem:[%s9886_s8 + $0x79] sm:$0xff] }
  0x2a   : > { %v10013_v27 = vld [vmem:[%s9886_s8 + $0x62] sm:$0xff]  ;;  %v244_v37 = vld [vmem:[%s9886_s8 + $0x70] sm:$0xff]  ;;  %v249_v13 = vld [vmem:[%s9886_s8 + $0x98] sm:$0xff] }
  0x2b   : > { %8342 = vmatmul.msk.bf16.gmra.mxu3 %vm311_vm1, %v275_v33  ;;  %8380 = vmatmul.msk.bf16.gmra.mxu1 %vm311_vm1, %v552_v34  ;;  %v565_v33 = vpack.c.bf16 %v8375_v26, %v8374_v25  ;;  %v845_v34 = vpack.c.bf16 %v10016_v28, %v10013_v27  ;;  %v8360_v39 = vld [vmem:[%s9886_s8 + $0x71] sm:$0xff]  ;;  %v246_v51 = vld [vmem:[%s9886_s8 + $0x80] sm:$0xff]  ;;  %v247_v52 = vld [vmem:[%s9886_s8 + $0x88] sm:$0xff] }
  0x2c   : > { %8430 = vmatmul.msk.bf16.gmra.mxu2 %vm311_vm1, %v840_v35  ;;  %v8478_v35 = vld [vmem:[%s12348_s1 + $0xc] sm:$0xf]  ;;  %v8376_v41 = vld [vmem:[%s9886_s8 + $0xf1] sm:$0xff]  ;;  %v558_v48 = vpack.c.bf16 %v8361_v40, %v8360_v39  ;;  %v8362_v53 = vld [vmem:[%s9886_s8 + $0x81] sm:$0xff]  ;;  %v270_v61 = vpack.c.bf16 %v247_v52, %v246_v51 }
  0x2d   : > { %v1226_v36 = vsel %vm360_vm0, %v8478_v35, 0  ;;  %v10060_v60 = vld [vmem:[%s9886_s8 + $0x8a] sm:$0xff]  ;;  %v10085_v21 = vld [vmem:[%s9886_s8 + $0x92] sm:$0xff]  ;;  %v10088_v22 = vld [vmem:[%s9886_s8 + $0x9a] sm:$0xff] }
  0x2e   : > { %v248_v12 = vld [vmem:[%s9886_s8 + $0x90] sm:$0xff]  ;;  %v848_v35 = vpack.c.bf16 %v10088_v22, %v10085_v21  ;;  %v10111_v51 = vld [vmem:[%s9886_s8 + $0xe2] sm:$0xff] }
  0x2f   : > { %v271_v24 = vpack.c.bf16 %v249_v13, %v248_v12  ;;  %v10114_v52 = vld [vmem:[%s9886_s8 + $0xea] sm:$0xff] }
  0x39   : > { %8331 = vmatmul.msk.bf16.gmra.mxu0 %vm311_vm1, %v264_v44  ;;  %v8377_v44 = vld [vmem:[%s9886_s8 + $0xf9] sm:$0xff] }
  0x3a   : > { %v566_v49 = vpack.c.bf16 %v8377_v44, %v8376_v41 }
  0x3b   : > { %8343 = vmatmul.msk.bf16.gmra.mxu3 %vm311_vm1, %v276_v45  ;;  %8381 = vmatmul.msk.bf16.gmra.mxu1 %vm311_vm1, %v553_v46  ;;  %v10035_v45 = vld [vmem:[%s9886_s8 + $0x72] sm:$0xff]  ;;  %v10038_v46 = vld [vmem:[%s9886_s8 + $0x7a] sm:$0xff] }
  0x3c   : > { %8431 = vmatmul.msk.bf16.gmra.mxu2 %vm311_vm1, %v841_v47  ;;  %v269_v47 = vpack.c.bf16 %v245_v38, %v244_v37  ;;  %v846_v50 = vpack.c.bf16 %v10038_v46, %v10035_v45 }
  0x49   : > { %8332 = vmatmul.msk.bf16.gmra.mxu0 %vm311_vm1, %v265_v56  ;;  %v8363_v56 = vld [vmem:[%s9886_s8 + $0x89] sm:$0xff] }
  0x4a   : > { %v559_v63 = vpack.c.bf16 %v8363_v56, %v8362_v53  ;;  %v10117_v53 = vld [vmem:[%s9886_s8 + $0xa2] sm:$0xff]  ;;  %v10120_v56 = vld [vmem:[%s9886_s8 + $0xaa] sm:$0xff] }
  0x4b   : > { %8344 = vmatmul.msk.bf16.gmra.mxu3 %vm311_vm1, %v277_v57  ;;  %8382 = vmatmul.msk.bf16.gmra.mxu1 %vm311_vm1, %v554_v58  ;;  %v10051_v57 = vld [vmem:[%s9886_s8 + $0xc2] sm:$0xff]  ;;  %v10054_v58 = vld [vmem:[%s9886_s8 + $0xca] sm:$0xff] }
  0x4c   : > { %8432 = vmatmul.msk.bf16.gmra.mxu2 %vm311_vm1, %v842_v59  ;;  %v10057_v59 = vld [vmem:[%s9886_s8 + $0x82] sm:$0xff]  ;;  %v851_v0 = vpack.c.bf16 %v10054_v58, %v10051_v57 }
  0x59   : > { %8333 = vmatmul.msk.bf16.gmra.mxu0 %vm311_vm1, %v266_v4  ;;  %v847_v4 = vpack.c.bf16 %v10060_v60, %v10057_v59 }
  0x5b   : > { %8383 = vmatmul.msk.bf16.gmra.mxu1 %vm311_vm1, %v555_v5  ;;  %8391 = vmatmul.msk.bf16.vlgmr.msrb.gmra.mxu3 %vm311_vm1, %v563_v6 }
  0x5c   : > { %8433 = vmatmul.msk.bf16.gmra.mxu2 %vm311_vm1, %v843_v7  ;;  %1235 = vmatpush.bf16.msrb.mxu3 %v1226_v36 }
  0x69   : > { %8334 = vmatmul.msk.bf16.gmra.mxu0 %vm311_vm1, %v267_v17  ;;  %v8364_v17 = vld [vmem:[%s9886_s8 + $0x91] sm:$0xff] }
  0x6b   : > { %8384 = vmatmul.msk.bf16.gmra.mxu1 %vm311_vm1, %v556_v18  ;;  %8392 = vmatmul.msk.bf16.gmra.mxu3 %vm311_vm1, %v564_v19  ;;  %v8365_v18 = vld [vmem:[%s9886_s8 + $0x99] sm:$0xff] }
  0x6c   : > { %8434 = vmatmul.msk.bf16.gmra.mxu2 %vm311_vm1, %v844_v20  ;;  %v10079_v19 = vld [vmem:[%s9886_s8 + $0xd2] sm:$0xff]  ;;  %v10082_v20 = vld [vmem:[%s9886_s8 + $0xda] sm:$0xff] }
  0x79   : > { %8335 = vmatmul.msk.bf16.gmra.mxu0 %vm311_vm1, %v268_v29  ;;  %v560_v29 = vpack.c.bf16 %v8365_v18, %v8364_v17 }
  0x7b   : > { %8385 = vmatmul.msk.bf16.gmra.mxu1 %vm311_vm1, %v557_v32  ;;  %8393 = vmatmul.msk.bf16.gmra.mxu3 %vm311_vm1, %v565_v33  ;;  %v852_v32 = vpack.c.bf16 %v10082_v20, %v10079_v19 }
  0x7c   : > { %8435 = vmatmul.msk.bf16.gmra.mxu2 %vm311_vm1, %v845_v34 }
  0x89   : > { %8336 = vmatmul.msk.bf16.gmra.mxu0 %vm311_vm1, %v269_v47  ;;  %v250_v47 = vld [vmem:[%s9886_s8 + $0xa0] sm:$0xff] }
  0x8b   : > { %8386 = vmatmul.msk.bf16.gmra.mxu1 %vm311_vm1, %v558_v48  ;;  %8394 = vmatmul.msk.bf16.gmra.mxu3 %vm311_vm1, %v566_v49  ;;  %v251_v48 = vld [vmem:[%s9886_s8 + $0xa8] sm:$0xff] }
  0x8c   : > { %8436 = vmatmul.msk.bf16.gmra.mxu2 %vm311_vm1, %v846_v50  ;;  %v8366_v49 = vld [vmem:[%s9886_s8 + $0xa1] sm:$0xff]  ;;  %v8367_v50 = vld [vmem:[%s9886_s8 + $0xa9] sm:$0xff] }
  0x96   : > { %v373_v62 = vpop.f32.mrf.mxu0 }
  0x98   : > { %v661_v1 = vpop.f32.mrf.mxu1 }
  0x99   : > { %v741_v5 = vadd.f32 %v661_v1, %v373_v62  ;;  %8337 = vmatmul.msk.bf16.gmra.mxu0 %vm311_vm1, %v270_v61  ;;  %v272_v62 = vpack.c.bf16 %v251_v48, %v250_v47  ;;  %v561_v1 = vpack.c.bf16 %v8367_v50, %v8366_v49  ;;  %v8369_v47 = vld [vmem:[%s9886_s8 + $0xb9] sm:$0xff] }
  0x9a   : > { %v10159_v48 = vld [vmem:[%s9886_s8 + $0xf2] sm:$0xff]  ;;  %v10162_v49 = vld [vmem:[%s9886_s8 + $0xfa] sm:$0xff] }
  0x9b   : > { %8387 = vmatmul.msk.bf16.gmra.mxu1 %vm311_vm1, %v559_v63  ;;  %8441 = vmatmul.msk.bf16.vlgmr.msra.gmra.mxu3 %vm311_vm1, %v851_v0  ;;  %v10165_v50 = vld [vmem:[%s9886_s8 + $0xb2] sm:$0xff] }
  0x9c   : > { %8437 = vmatmul.msk.bf16.gmra.mxu2 %vm311_vm1, %v847_v4  ;;  %v853_v4 = vpack.c.bf16 %v10114_v52, %v10111_v51 }
  0x9e   : > { %v10070_v6 = vpop.f32.mrf.mxu3  ;;  %v375_v8 = vpop.f32.mrf.mxu0 }
  0x9f   : > { %v949_v7 = vpop.f32.mrf.mxu2 }
  0xa0   : > { %v10072_v9 = vadd.f32 %v949_v7, %v741_v5  ;;  %v663_v10 = vpop.f32.mrf.mxu1 }
  0xa1   : > { %v742_v11 = vadd.f32 %v663_v10, %v375_v8  ;;  %v849_v8 = vpack.c.bf16 %v10120_v56, %v10117_v53 }
  0xa6   : > { %v10090_v23 = vpop.f32.mrf.mxu3  ;;  %v378_v26 = vpop.f32.mrf.mxu0 }
  0xa7   : > { %v951_v25 = vpop.f32.mrf.mxu2 }
  0xa8   : > { %v10094_v33 = vadd.f32 %v951_v25, %v742_v11  ;;  %v666_v34 = vpop.f32.mrf.mxu1  ;;  %v8678_v11 = vld [vmem:[%s12348_s1 + $0x1c] sm:$0xf] }
  0xa9   : > { %v743_v36 = vadd.f32 %v666_v34, %v378_v26  ;;  %8338 = vmatmul.msk.bf16.gmra.mxu0 %vm311_vm1, %v271_v24  ;;  %v2378_v12 = vsel %vm360_vm0, %v8678_v11, 0  ;;  %v8778_v34 = vld [vmem:[%s12348_s1 + $0x24] sm:$0xf] }
  0xaa   : > { %2387 = vmatpush.bf16.msra.mxu3 %v2378_v12 }
  0xab   : > { %8388 = vmatmul.msk.bf16.gmra.mxu1 %vm311_vm1, %v560_v29  ;;  %8442 = vmatmul.msk.bf16.gmra.mxu3 %vm311_vm1, %v852_v32  ;;  %v8828_v29 = vld [vmem:[%s12348_s1 + $0x28] sm:$0xf]  ;;  %v8728_v32 = vld [vmem:[%s12348_s1 + $0x20] sm:$0xf] }
  0xac   : > { %8438 = vmatmul.msk.bf16.gmra.mxu2 %vm311_vm1, %v848_v35  ;;  %v3242_v35 = vsel %vm360_vm0, %v8828_v29, 0 }
  0xad   : > { %3251 = vmatpush.bf16.msra.mxu2 %v3242_v35  ;;  %v8496_v35 = vld [vmem:[%s9886_s8 + $0xb] sm:$0xff] }
  0xae   : > { %v10102_v37 = vpop.f32.mrf.mxu3  ;;  %v380_v39 = vpop.f32.mrf.mxu0 }
  0xaf   : > { %v954_v38 = vpop.f32.mrf.mxu2 }
  0xb0   : > { %v10104_v40 = vadd.f32 %v954_v38, %v743_v36  ;;  %v668_v41 = vpop.f32.mrf.mxu1  ;;  %v2666_v36 = vsel %vm360_vm0, %v8728_v32, 0  ;;  %v2954_v38 = vsel %vm360_vm0, %v8778_v34, 0 }
  0xb1   : > { %v744_v44 = vadd.f32 %v668_v41, %v380_v39  ;;  %v252_v39 = vld [vmem:[%s9886_s8 + $0xb0] sm:$0xff]  ;;  %v253_v41 = vld [vmem:[%s9886_s8 + $0xb8] sm:$0xff]  ;;  %2675 = vmatpush.bf16.msra.mxu0 %v2666_v36  ;;  %2963 = vmatpush.bf16.msra.mxu1 %v2954_v38 }
  0xb2   : > { %v8497_v36 = vld [vmem:[%s9886_s8 + $0x13] sm:$0xff] }
  0xb3   : > { %v8546_v38 = vld [vmem:[%s9886_s8 + $0xc] sm:$0xff] }
  0xb6   : > { %v10122_v61 = vpop.f32.mrf.mxu3  ;;  %v383_v0 = vpop.f32.mrf.mxu0 }
  0xb7   : > { %v956_v63 = vpop.f32.mrf.mxu2 }
  0xb8   : > { %v10126_v5 = vadd.f32 %v956_v63, %v744_v44  ;;  %v671_v7 = vpop.f32.mrf.mxu1  ;;  %v8368_v44 = vld [vmem:[%s9886_s8 + $0xb1] sm:$0xff] }
  0xb9   : > { %v745_v10 = vadd.f32 %v671_v7, %v383_v0  ;;  %8339 = vmatmul.msk.bf16.gmra.mxu0 %vm311_vm1, %v272_v62  ;;  %v10168_v62 = vld [vmem:[%s9886_s8 + $0xba] sm:$0xff]  ;;  %v273_v0 = vpack.c.bf16 %v253_v41, %v252_v39  ;;  %v562_v7 = vpack.c.bf16 %v8369_v47, %v8368_v44  ;;  %v1415_v47 = vpack.c.bf16 %v8497_v36, %v8496_v35 }
  0xba   : > { %v850_v12 = vpack.c.bf16 %v10168_v62, %v10165_v50  ;;  %v8596_v39 = vld [vmem:[%s9886_s8 + $0x14] sm:$0xff]  ;;  %v8597_v41 = vld [vmem:[%s9886_s8 + $0x1c] sm:$0xff] }
  0xbb   : > { %8389 = vmatmul.msk.bf16.gmra.mxu1 %vm311_vm1, %v561_v1  ;;  %8443 = vmatmul.msk.bf16.gmra.mxu3 %vm311_vm1, %v853_v4  ;;  %v8498_v36 = vld [vmem:[%s9886_s8 + $0x1b] sm:$0xff] }
  0xbc   : > { %8439 = vmatmul.msk.bf16.gmra.mxu2 %vm311_vm1, %v849_v8  ;;  %v854_v8 = vpack.c.bf16 %v10162_v49, %v10159_v48 }
  0xbe   : > { %v10138_v13 = vpop.f32.mrf.mxu3  ;;  %v385_v18 = vpop.f32.mrf.mxu0 }
  0xbf   : > { %v959_v17 = vpop.f32.mrf.mxu2 }
  0xc0   : > { %v10140_v24 = vadd.f32 %v959_v17, %v745_v10  ;;  %v673_v25 = vpop.f32.mrf.mxu1 }
  0xc1   : > { %v746_v26 = vadd.f32 %v673_v25, %v385_v18 }
  0xc6   : > { %v10170_v63 = vpop.f32.mrf.mxu3  ;;  %v388_v4 = vpop.f32.mrf.mxu0 }
  0xc7   : > { %v961_v1 = vpop.f32.mrf.mxu2 }
  0xc8   : > { %v10174_v10 = vadd.f32 %v961_v1, %v746_v26  ;;  %v676_v11 = vpop.f32.mrf.mxu1 }
  0xc9   : > { %v747_v17 = vadd.f32 %v676_v11, %v388_v4  ;;  %8340 = vmatmul.msk.bf16.gmra.mxu0 %vm311_vm1, %v273_v0  ;;  %v1127_v4 = vpack.c.bf16 %v9923_v30, %v9897_v16 }
  0xcb   : > { %8390 = vmatmul.msk.bf16.gmra.mxu1 %vm311_vm1, %v562_v7  ;;  %8444 = vmatmul.msk.bf16.gmra.mxu3 %vm311_vm1, %v854_v8  ;;  %v1703_v7 = vpack.c.bf16 %v8596_v39, %v8546_v38  ;;  %v8499_v38 = vld [vmem:[%s9886_s8 + $0x23] sm:$0xff] }
  0xcc   : > { %8440 = vmatmul.msk.bf16.gmra.mxu2 %vm311_vm1, %v850_v12  ;;  %v1991_v12 = vpack.c.bf16 %v8597_v41, %v8596_v39  ;;  %v8598_v39 = vld [vmem:[%s9886_s8 + $0x24] sm:$0xff] }
  0xce   : > { %v10182_v18 = vpop.f32.mrf.mxu3  ;;  %v390_v26 = vpop.f32.mrf.mxu0 }
  0xcf   : > { %v964_v25 = vpop.f32.mrf.mxu2 }
  0xd0   : > { %v10184_v29 = vadd.f32 %v964_v25, %v747_v17  ;;  %v678_v32 = vpop.f32.mrf.mxu1 }
  0xd1   : > { %v748_v34 = vadd.f32 %v678_v32, %v390_v26 }
  0xd6   : > { %v10191_v44 = vpop.f32.mrf.mxu3  ;;  %v393_v1 = vpop.f32.mrf.mxu0 }
  0xd7   : > { %v966_v0 = vpop.f32.mrf.mxu2 }
  0xd8   : > { %v10195_v8 = vadd.f32 %v966_v0, %v748_v34  ;;  %v681_v11 = vpop.f32.mrf.mxu1 }
  0xd9   : > { %v749_v17 = vadd.f32 %v681_v11, %v393_v1  ;;  %8529 = vmatmul.msk.bf16.vlgmr.msrb.gmra.mxu0 %vm311_vm1, %v1415_v47  ;;  %v8599_v47 = vld [vmem:[%s9886_s8 + $0x2c] sm:$0xff]  ;;  %v1416_v1 = vpack.c.bf16 %v8499_v38, %v8498_v36 }
  0xda   : > { %v8500_v38 = vld [vmem:[%s9886_s8 + $0x2b] sm:$0xff] }
  0xdb   : > { %8479 = vmatmul.msk.bf16.vlgmr.msrb.gmra.mxu3 %vm311_vm1, %v1127_v4  ;;  %8579 = vmatmul.msk.bf16.vlgmr.msrb.gmra.mxu1 %vm311_vm1, %v1703_v7 }
  0xdc   : > { %8629 = vmatmul.msk.bf16.vlgmr.msrb.gmra.mxu2 %vm311_vm1, %v1991_v12  ;;  %v1704_v12 = vpack.c.bf16 %v8598_v39, %v8597_v41 }
  0xde   : > { %v721_v25 = vpop.f32.mrf.mxu3  ;;  %v395_v26 = vpop.f32.mrf.mxu0 }
  0xdf   : > { %v10202_v16 = vadd.f32 %v721_v25, %v10070_v6  ;;  %v969_v30 = vpop.f32.mrf.mxu2  ;;  %v1128_v6 = vpack.c.bf16 %v9941_v42, %v9926_v31 }
  0xe0   : > { %v10204_v32 = vadd.f32 %v969_v30, %v749_v17  ;;  %v683_v34 = vpop.f32.mrf.mxu1  ;;  %v1992_v30 = vpack.c.bf16 %v8599_v47, %v8598_v39  ;;  %v8501_v39 = vld [vmem:[%s9886_s8 + $0x33] sm:$0xff] }
  0xe1   : > { %v750_v35 = vadd.f32 %v683_v34, %v395_v26 }
  0xe6   : > { %v723_v0 = vpop.f32.mrf.mxu3  ;;  %v398_v11 = vpop.f32.mrf.mxu0 }
  0xe7   : > { %v10211_v4 = vadd.f32 %v723_v0, %v10090_v23  ;;  %v971_v7 = vpop.f32.mrf.mxu2  ;;  %v8600_v0 = vld [vmem:[%s9886_s8 + $0x34] sm:$0xff] }
  0xe8   : > { %v10215_v17 = vadd.f32 %v971_v7, %v750_v35  ;;  %v686_v25 = vpop.f32.mrf.mxu1 }
  0xe9   : > { %v751_v26 = vadd.f32 %v686_v25, %v398_v11  ;;  %8530 = vmatmul.msk.bf16.gmra.mxu0 %vm311_vm1, %v1416_v1  ;;  %v8601_v1 = vld [vmem:[%s9886_s8 + $0x3c] sm:$0xff]  ;;  %v1417_v11 = vpack.c.bf16 %v8501_v39, %v8500_v38 }
  0xea   : > { %v8502_v39 = vld [vmem:[%s9886_s8 + $0x3b] sm:$0xff] }
  0xeb   : > { %8480 = vmatmul.msk.bf16.gmra.mxu3 %vm311_vm1, %v1128_v6  ;;  %8580 = vmatmul.msk.bf16.gmra.mxu1 %vm311_vm1, %v1704_v12 }
  0xec   : > { %8630 = vmatmul.msk.bf16.gmra.mxu2 %vm311_vm1, %v1992_v30  ;;  %v1705_v30 = vpack.c.bf16 %v8600_v0, %v8599_v47 }
  0xee   : > { %v726_v23 = vpop.f32.mrf.mxu3  ;;  %v400_v41 = vpop.f32.mrf.mxu0 }
  0xef   : > { %v10222_v31 = vadd.f32 %v726_v23, %v10102_v37  ;;  %v974_v42 = vpop.f32.mrf.mxu2  ;;  %v1129_v37 = vpack.c.bf16 %v9959_v54, %v9944_v43 }
  0xf0   : > { %v10224_v34 = vadd.f32 %v974_v42, %v751_v26  ;;  %v688_v35 = vpop.f32.mrf.mxu1  ;;  %v1993_v42 = vpack.c.bf16 %v8601_v1, %v8600_v0  ;;  %v8503_v0 = vld [vmem:[%s9886_s8 + $0x43] sm:$0xff] }
  0xf1   : > { %v752_v36 = vadd.f32 %v688_v35, %v400_v41 }
  0xf6   : > { %v728_v7 = vpop.f32.mrf.mxu3  ;;  %v403_v25 = vpop.f32.mrf.mxu0 }
  0xf7   : > { %v10231_v6 = vadd.f32 %v728_v7, %v10122_v61  ;;  %v976_v12 = vpop.f32.mrf.mxu2  ;;  %v8602_v7 = vld [vmem:[%s9886_s8 + $0x44] sm:$0xff] }
  0xf8   : > { %v10235_v26 = vadd.f32 %v976_v12, %v752_v36  ;;  %v691_v23 = vpop.f32.mrf.mxu1 }
  0xf9   : > { %v753_v41 = vadd.f32 %v691_v23, %v403_v25  ;;  %8531 = vmatmul.msk.bf16.gmra.mxu0 %vm311_vm1, %v1417_v11  ;;  %v8603_v11 = vld [vmem:[%s9886_s8 + $0x4c] sm:$0xff]  ;;  %v1418_v25 = vpack.c.bf16 %v8503_v0, %v8502_v39 }
  0xfa   : > { %v8504_v0 = vld [vmem:[%s9886_s8 + $0x4b] sm:$0xff] }
  0xfb   : > { %8481 = vmatmul.msk.bf16.gmra.mxu3 %vm311_vm1, %v1129_v37  ;;  %8581 = vmatmul.msk.bf16.gmra.mxu1 %vm311_vm1, %v1705_v30 }
  0xfc   : > { %8631 = vmatmul.msk.bf16.gmra.mxu2 %vm311_vm1, %v1993_v42  ;;  %v1706_v42 = vpack.c.bf16 %v8602_v7, %v8601_v1 }
  0xfe   : > { %v731_v61 = vpop.f32.mrf.mxu3  ;;  %v405_v47 = vpop.f32.mrf.mxu0 }
  0xff   : > { %v10242_v43 = vadd.f32 %v731_v61, %v10138_v13  ;;  %v979_v54 = vpop.f32.mrf.mxu2  ;;  %v1130_v13 = vpack.c.bf16 %v9977_v2, %v9962_v55 }
 0x100   : > { %v10244_v35 = vadd.f32 %v979_v54, %v753_v41  ;;  %v693_v36 = vpop.f32.mrf.mxu1  ;;  %v1994_v54 = vpack.c.bf16 %v8603_v11, %v8602_v7  ;;  %v8505_v7 = vld [vmem:[%s9886_s8 + $0x53] sm:$0xff] }
 0x101   : > { %v754_v38 = vadd.f32 %v693_v36, %v405_v47 }
 0x106   : > { %v733_v12 = vpop.f32.mrf.mxu3  ;;  %v408_v23 = vpop.f32.mrf.mxu0 }
 0x107   : > { %v10251_v37 = vadd.f32 %v733_v12, %v10170_v63  ;;  %v981_v30 = vpop.f32.mrf.mxu2  ;;  %v8604_v12 = vld [vmem:[%s9886_s8 + $0x54] sm:$0xff] }
 0x108   : > { %v10255_v41 = vadd.f32 %v981_v30, %v754_v38  ;;  %v696_v61 = vpop.f32.mrf.mxu1 }
 0x109   : > { %v755_v47 = vadd.f32 %v696_v61, %v408_v23  ;;  %8532 = vmatmul.msk.bf16.gmra.mxu0 %vm311_vm1, %v1418_v25  ;;  %v8605_v25 = vld [vmem:[%s9886_s8 + $0x5c] sm:$0xff]  ;;  %v1419_v23 = vpack.c.bf16 %v8505_v7, %v8504_v0 }
 0x10a   : > { %v8506_v7 = vld [vmem:[%s9886_s8 + $0x5b] sm:$0xff] }
 0x10b   : > { %8482 = vmatmul.msk.bf16.gmra.mxu3 %vm311_vm1, %v1130_v13  ;;  %8582 = vmatmul.msk.bf16.gmra.mxu1 %vm311_vm1, %v1706_v42 }
 0x10c   : > { %8632 = vmatmul.msk.bf16.gmra.mxu2 %vm311_vm1, %v1994_v54  ;;  %v1707_v54 = vpack.c.bf16 %v8604_v12, %v8603_v11 }
 0x10e   : > { %v736_v63 = vpop.f32.mrf.mxu3  ;;  %v410_v1 = vpop.f32.mrf.mxu0 }
 0x10f   : > { %v10262_v55 = vadd.f32 %v736_v63, %v10182_v18  ;;  %v984_v2 = vpop.f32.mrf.mxu2  ;;  %v1131_v18 = vpack.c.bf16 %v9995_v14, %v9980_v3 }
 0x110   : > { %v10264_v36 = vadd.f32 %v984_v2, %v755_v47  ;;  %v698_v38 = vpop.f32.mrf.mxu1  ;;  %v1995_v2 = vpack.c.bf16 %v8605_v25, %v8604_v12  ;;  %v8507_v12 = vld [vmem:[%s9886_s8 + $0x63] sm:$0xff] }
 0x111   : > { %v756_v39 = vadd.f32 %v698_v38, %v410_v1 }
 0x116   : > { %v738_v30 = vpop.f32.mrf.mxu3  ;;  %v413_v61 = vpop.f32.mrf.mxu0 }
 0x117   : > { %v10271_v13 = vadd.f32 %v738_v30, %v10191_v44  ;;  %v986_v42 = vpop.f32.mrf.mxu2  ;;  %v8606_v30 = vld [vmem:[%s9886_s8 + $0x64] sm:$0xff] }
 0x118   : > { %v10275_v47 = vadd.f32 %v986_v42, %v756_v39  ;;  %v701_v63 = vpop.f32.mrf.mxu1 }
 0x119   : > { %v757_v1 = vadd.f32 %v701_v63, %v413_v61  ;;  %8533 = vmatmul.msk.bf16.gmra.mxu0 %vm311_vm1, %v1419_v23  ;;  %v8607_v23 = vld [vmem:[%s9886_s8 + $0x6c] sm:$0xff]  ;;  %v1420_v61 = vpack.c.bf16 %v8507_v12, %v8506_v7 }
 0x11a   : > { %v8508_v12 = vld [vmem:[%s9886_s8 + $0x6b] sm:$0xff] }
 0x11b   : > { %8483 = vmatmul.msk.bf16.gmra.mxu3 %vm311_vm1, %v1131_v18  ;;  %8583 = vmatmul.msk.bf16.gmra.mxu1 %vm311_vm1, %v1707_v54 }
 0x11c   : > { %8633 = vmatmul.msk.bf16.gmra.mxu2 %vm311_vm1, %v1995_v2  ;;  %v1708_v2 = vpack.c.bf16 %v8606_v30, %v8605_v25 }
 0x11e   : > { %v1009_v44 = vpop.f32.mrf.mxu3  ;;  %v415_v11 = vpop.f32.mrf.mxu0 }
 0x11f   : > { %v989_v3 = vpop.f32.mrf.mxu2  ;;  %v10282_v14 = vadd.f32 %v1009_v44, %v10202_v16  ;;  %v1132_v16 = vpack.c.bf16 %v10013_v27, %v9998_v15 }
 0x120   : > { %v10284_v38 = vadd.f32 %v989_v3, %v757_v1  ;;  %v703_v39 = vpop.f32.mrf.mxu1  ;;  %v10297_v3 = vpack.c.bf16 %v8607_v23, %v8606_v30  ;;  %v8509_v30 = vld [vmem:[%s9886_s8 + $0x73] sm:$0xff] }
 0x121   : > { %v758_v0 = vadd.f32 %v703_v39, %v415_v11 }
 0x126   : > { %v1011_v42 = vpop.f32.mrf.mxu3  ;;  %v418_v63 = vpop.f32.mrf.mxu0 }
 0x127   : > { %v991_v18 = vpop.f32.mrf.mxu2  ;;  %v10291_v54 = vadd.f32 %v1011_v42, %v10211_v4  ;;  %v8608_v42 = vld [vmem:[%s9886_s8 + $0x74] sm:$0xff] }
 0x128   : > { %v10295_v1 = vadd.f32 %v991_v18, %v758_v0  ;;  %v706_v44 = vpop.f32.mrf.mxu1 }
 0x129   : > { %v759_v11 = vadd.f32 %v706_v44, %v418_v63  ;;  %8534 = vmatmul.msk.bf16.gmra.mxu0 %vm311_vm1, %v1420_v61  ;;  %v8609_v61 = vld [vmem:[%s9886_s8 + $0x7c] sm:$0xff]  ;;  %v1421_v63 = vpack.c.bf16 %v8509_v30, %v8508_v12 }
 0x12b   : > { %8484 = vmatmul.msk.bf16.gmra.mxu3 %vm311_vm1, %v1132_v16  ;;  %8584 = vmatmul.msk.bf16.gmra.mxu1 %vm311_vm1, %v1708_v2 }
 0x12c   : > { %8634 = vmatmul.msk.bf16.gmra.mxu2 %vm311_vm1, %v10297_v3 }
 0x12e   : > { %v1014_v15 = vpop.f32.mrf.mxu3  ;;  %v420_v25 = vpop.f32.mrf.mxu0 }
 0x12f   : > { %v994_v27 = vpop.f32.mrf.mxu2  ;;  %v10305_v4 = vadd.f32 %v1014_v15, %v10222_v31  ;;  %v1133_v31 = vpack.c.bf16 %v10035_v45, %v10016_v28  ;;  %v1709_v15 = vpack.c.bf16 %v8608_v42, %v8607_v23 }
 0x130   : > { %v10307_v39 = vadd.f32 %v994_v27, %v759_v11  ;;  %v708_v0 = vpop.f32.mrf.mxu1 }
 0x131   : > { %12372 = vst [vmem:[#allocation6_spill] sm:$0xff] %v10305_v4  ;;  %v760_v7 = vadd.f32 %v708_v0, %v420_v25  ;;  %v10320_v25 = vpack.c.bf16 %v8609_v61, %v8608_v42  ;;  %v8510_v42 = vld [vmem:[%s9886_s8 + $0x7b] sm:$0xff] }
 0x136   : > { %v1016_v18 = vpop.f32.mrf.mxu3  ;;  %v423_v44 = vpop.f32.mrf.mxu0 }
 0x137   : > { %v996_v16 = vpop.f32.mrf.mxu2  ;;  %v10314_v2 = vadd.f32 %v1016_v18, %v10231_v6  ;;  %v8511_v18 = vld [vmem:[%s9886_s8 + $0x83] sm:$0xff] }
 0x138   : > { %v10318_v11 = vadd.f32 %v996_v16, %v760_v7  ;;  %v711_v27 = vpop.f32.mrf.mxu1  ;;  %v8611_v16 = vld [vmem:[%s9886_s8 + $0x8c] sm:$0xff] }
 0x139   : > { %12373 = vst [vmem:[#allocation7_spill] sm:$0xff] %v10314_v2  ;;  %v761_v0 = vadd.f32 %v711_v27, %v423_v44  ;;  %8535 = vmatmul.msk.bf16.gmra.mxu0 %vm311_vm1, %v1421_v63  ;;  %v8610_v63 = vld [vmem:[%s9886_s8 + $0x84] sm:$0xff] }
 0x13b   : > { %8485 = vmatmul.msk.bf16.gmra.mxu3 %vm311_vm1, %v1133_v31  ;;  %8585 = vmatmul.msk.bf16.gmra.mxu1 %vm311_vm1, %v1709_v15  ;;  %v1422_v31 = vpack.c.bf16 %v8511_v18, %v8510_v42 }
 0x13c   : > { %8635 = vmatmul.msk.bf16.gmra.mxu2 %vm311_vm1, %v10320_v25 }
 0x13e   : > { %v1019_v28 = vpop.f32.mrf.mxu3  ;;  %v425_v23 = vpop.f32.mrf.mxu0 }
 0x13f   : > { %v999_v45 = vpop.f32.mrf.mxu2  ;;  %v10328_v6 = vadd.f32 %v1019_v28, %v10242_v43  ;;  %v1134_v43 = vpack.c.bf16 %v10057_v59, %v10038_v46  ;;  %v1710_v28 = vpack.c.bf16 %v8610_v63, %v8609_v61 }
 0x140   : > { %v10330_v7 = vadd.f32 %v999_v45, %v761_v0  ;;  %v713_v12 = vpop.f32.mrf.mxu1 }
 0x141   : > { %12374 = vst [vmem:[#allocation8_spill] sm:$0xff] %v10328_v6  ;;  %v762_v30 = vadd.f32 %v713_v12, %v425_v23  ;;  %v10343_v23 = vpack.c.bf16 %v8611_v16, %v8610_v63  ;;  %v8513_v63 = vld [vmem:[%s9886_s8 + $0x93] sm:$0xff] }
 0x146   : > { %v1021_v44 = vpop.f32.mrf.mxu3  ;;  %v428_v2 = vpop.f32.mrf.mxu0 }
 0x147   : > { %v1001_v15 = vpop.f32.mrf.mxu2  ;;  %v10337_v27 = vadd.f32 %v1021_v44, %v10251_v37  ;;  %v8612_v44 = vld [vmem:[%s9886_s8 + $0x94] sm:$0xff] }
 0x148   : > { %v10341_v0 = vadd.f32 %v1001_v15, %v762_v30  ;;  %v716_v45 = vpop.f32.mrf.mxu1 }
 0x149   : > { %12375 = vst [vmem:[#allocation9_spill] sm:$0xff] %v10337_v27  ;;  %v763_v12 = vadd.f32 %v716_v45, %v428_v2  ;;  %8536 = vmatmul.msk.bf16.gmra.mxu0 %vm311_vm1, %v1422_v31  ;;  %v8512_v2 = vld [vmem:[%s9886_s8 + $0x8b] sm:$0xff]  ;;  %v8613_v31 = vld [vmem:[%s9886_s8 + $0x9c] sm:$0xff] }
 0x14b   : > { %8486 = vmatmul.msk.bf16.gmra.mxu3 %vm311_vm1, %v1134_v43  ;;  %8586 = vmatmul.msk.bf16.gmra.mxu1 %vm311_vm1, %v1710_v28  ;;  %v1423_v43 = vpack.c.bf16 %v8513_v63, %v8512_v2  ;;  %v8514_v63 = vld [vmem:[%s9886_s8 + $0x9b] sm:$0xff] }
 0x14c   : > { %8636 = vmatmul.msk.bf16.gmra.mxu2 %vm311_vm1, %v10343_v23 }
 0x14e   : > { %v1024_v46 = vpop.f32.mrf.mxu3  ;;  %v430_v61 = vpop.f32.mrf.mxu0 }
 0x14f   : > { %v1004_v59 = vpop.f32.mrf.mxu2  ;;  %v10351_v37 = vadd.f32 %v1024_v46, %v10262_v55  ;;  %v1135_v55 = vpack.c.bf16 %v10085_v21, %v10060_v60  ;;  %v1711_v46 = vpack.c.bf16 %v8612_v44, %v8611_v16 }
 0x150   : > { %v10353_v30 = vadd.f32 %v1004_v59, %v763_v12  ;;  %v718_v42 = vpop.f32.mrf.mxu1 }
 0x151   : > { %12376 = vst [vmem:[#allocation10_spill] sm:$0xff] %v10351_v37  ;;  %v764_v18 = vadd.f32 %v718_v42, %v430_v61  ;;  %v10366_v61 = vpack.c.bf16 %v8613_v31, %v8612_v44  ;;  %v8515_v44 = vld [vmem:[%s9886_s8 + $0xa3] sm:$0xff] }
 0x156   : > { %v1026_v15 = vpop.f32.mrf.mxu3  ;;  %v1525_v27 = vpop.f32.mrf.mxu0 }
 0x157   : > { %v1006_v28 = vpop.f32.mrf.mxu2  ;;  %v10360_v45 = vadd.f32 %v1026_v15, %v10271_v13 }
 0x158   : > { %v10364_v12 = vadd.f32 %v1006_v28, %v764_v18  ;;  %v1813_v59 = vpop.f32.mrf.mxu1  ;;  %v8615_v28 = vld [vmem:[%s9886_s8 + $0xac] sm:$0xff] }
 0x159   : > { %12377 = vst [vmem:[#allocation11_spill] sm:$0xff] %v10360_v45  ;;  %8537 = vmatmul.msk.bf16.gmra.mxu0 %vm311_vm1, %v1423_v43  ;;  %v8614_v43 = vld [vmem:[%s9886_s8 + $0xa4] sm:$0xff]  ;;  %v1424_v45 = vpack.c.bf16 %v8515_v44, %v8514_v63  ;;  %v8616_v44 = vld [vmem:[%s9886_s8 + $0xb4] sm:$0xff] }
 0x15b   : > { %8487 = vmatmul.msk.bf16.gmra.mxu3 %vm311_vm1, %v1135_v55  ;;  %8587 = vmatmul.msk.bf16.gmra.mxu1 %vm311_vm1, %v1711_v46 }
 0x15c   : > { %8637 = vmatmul.msk.bf16.gmra.mxu2 %vm311_vm1, %v10366_v61 }
 0x15e   : > { %v1237_v60 = vpop.f32.mrf.mxu3  ;;  %v1527_v16 = vpop.f32.mrf.mxu0 }
 0x15f   : > { %v1317_v21 = vadd.f32 %v1237_v60, %v10072_v9  ;;  %v2101_v13 = vpop.f32.mrf.mxu2  ;;  %v1136_v9 = vpack.c.bf16 %v10117_v53, %v10088_v22  ;;  %v1712_v60 = vpack.c.bf16 %v8614_v43, %v8613_v31 }
 0x160   : > { %v1815_v42 = vpop.f32.mrf.mxu1 }
 0x161   : > { %v1605_v18 = vadd.f32 %v1525_v27, %v1317_v21  ;;  %v10383_v27 = vpack.c.bf16 %v8615_v28, %v8614_v43  ;;  %v8617_v43 = vld [vmem:[%s9886_s8 + $0xbc] sm:$0xff] }
 0x163   : > { %v1893_v2 = vadd.f32 %v1813_v59, %v1605_v18 }
 0x165   : > { %v10376_v15 = vadd.f32 %v2101_v13, %v1893_v2  ;;  %v8516_v2 = vld [vmem:[%s9886_s8 + $0xab] sm:$0xff] }
 0x166   : > { %v1239_v55 = vpop.f32.mrf.mxu3  ;;  %v1530_v6 = vpop.f32.mrf.mxu0 }
 0x167   : > { %v1318_v46 = vadd.f32 %v1239_v55, %v10094_v33  ;;  %v2103_v37 = vpop.f32.mrf.mxu2 }
 0x168   : > { %v1818_v4 = vpop.f32.mrf.mxu1 }
 0x169   : > { %v1606_v59 = vadd.f32 %v1527_v16, %v1318_v46  ;;  %8538 = vmatmul.msk.bf16.gmra.mxu0 %vm311_vm1, %v1424_v45 }
 0x16b   : > { %v1894_v21 = vadd.f32 %v1815_v42, %v1606_v59  ;;  %8488 = vmatmul.msk.bf16.gmra.mxu3 %vm311_vm1, %v1136_v9  ;;  %8588 = vmatmul.msk.bf16.gmra.mxu1 %vm311_vm1, %v1712_v60  ;;  %v8517_v42 = vld [vmem:[%s9886_s8 + $0xb3] sm:$0xff]  ;;  %v1713_v59 = vpack.c.bf16 %v8616_v44, %v8615_v28 }
 0x16c   : > { %8638 = vmatmul.msk.bf16.gmra.mxu2 %vm311_vm1, %v10383_v27  ;;  %v1425_v46 = vpack.c.bf16 %v8517_v42, %v8516_v2  ;;  %v8618_v42 = vld [vmem:[%s9886_s8 + $0xc4] sm:$0xff] }
 0x16d   : > { %v10390_v22 = vadd.f32 %v2103_v37, %v1894_v21 }
 0x16e   : > { %v1242_v33 = vpop.f32.mrf.mxu3  ;;  %v1532_v13 = vpop.f32.mrf.mxu0 }
 0x16f   : > { %v1319_v53 = vadd.f32 %v1242_v33, %v10104_v40  ;;  %v2106_v31 = vpop.f32.mrf.mxu2  ;;  %v1137_v40 = vpack.c.bf16 %v10165_v50, %v10120_v56 }
 0x170   : > { %v1820_v16 = vpop.f32.mrf.mxu1 }
 0x171   : > { %v1607_v18 = vadd.f32 %v1530_v6, %v1319_v53  ;;  %v10402_v6 = vpack.c.bf16 %v8617_v43, %v8616_v44  ;;  %v8619_v44 = vld [vmem:[%s9886_s8 + $0xcc] sm:$0xff] }
 0x173   : > { %v1895_v45 = vadd.f32 %v1818_v4, %v1607_v18 }
 0x175   : > { %v10395_v63 = vadd.f32 %v2106_v31, %v1895_v45  ;;  %v8518_v45 = vld [vmem:[%s9886_s8 + $0xbb] sm:$0xff] }
 0x176   : > { %v1244_v55 = vpop.f32.mrf.mxu3  ;;  %v1535_v60 = vpop.f32.mrf.mxu0 }
 0x177   : > { %v1320_v9 = vadd.f32 %v1244_v55, %v10126_v5  ;;  %v2108_v37 = vpop.f32.mrf.mxu2 }
 0x178   : > { %v1823_v21 = vpop.f32.mrf.mxu1 }
 0x179   : > { %v1608_v4 = vadd.f32 %v1532_v13, %v1320_v9  ;;  %8539 = vmatmul.msk.bf16.gmra.mxu0 %vm311_vm1, %v1425_v46 }
 0x17b   : > { %v1896_v33 = vadd.f32 %v1820_v16, %v1608_v4  ;;  %8489 = vmatmul.msk.bf16.gmra.mxu3 %vm311_vm1, %v1137_v40  ;;  %8589 = vmatmul.msk.bf16.gmra.mxu1 %vm311_vm1, %v1713_v59  ;;  %v8519_v16 = vld [vmem:[%s9886_s8 + $0xc3] sm:$0xff]  ;;  %v1714_v59 = vpack.c.bf16 %v8618_v42, %v8617_v43 }
 0x17c   : > { %8639 = vmatmul.msk.bf16.gmra.mxu2 %vm311_vm1, %v10402_v6  ;;  %v1426_v46 = vpack.c.bf16 %v8519_v16, %v8518_v45  ;;  %v8620_v45 = vld [vmem:[%s9886_s8 + $0xd4] sm:$0xff]  ;;  %v8621_v16 = vld [vmem:[%s9886_s8 + $0xdc] sm:$0xff] }
 0x17d   : > { %v10409_v56 = vadd.f32 %v2108_v37, %v1896_v33 }
 0x17e   : > { %v1247_v5 = vpop.f32.mrf.mxu3  ;;  %v1537_v53 = vpop.f32.mrf.mxu0 }
 0x17f   : > { %v1321_v50 = vadd.f32 %v1247_v5, %v10140_v24  ;;  %v2111_v28 = vpop.f32.mrf.mxu2  ;;  %v1138_v24 = vpack.c.bf16 %v10051_v57, %v10168_v62 }
 0x180   : > { %v1825_v31 = vpop.f32.mrf.mxu1 }
 0x181   : > { %v1609_v13 = vadd.f32 %v1535_v60, %v1321_v50  ;;  %v10421_v60 = vpack.c.bf16 %v8619_v44, %v8618_v42 }
 0x183   : > { %v1897_v18 = vadd.f32 %v1823_v21, %v1609_v13  ;;  %v8520_v13 = vld [vmem:[%s9886_s8 + $0xcb] sm:$0xff] }
 0x185   : > { %v10414_v2 = vadd.f32 %v2111_v28, %v1897_v18 }
 0x186   : > { %v1249_v55 = vpop.f32.mrf.mxu3  ;;  %v1540_v40 = vpop.f32.mrf.mxu0 }
 0x187   : > { %v1322_v9 = vadd.f32 %v1249_v55, %v10174_v10  ;;  %v2113_v37 = vpop.f32.mrf.mxu2 }
 0x188   : > { %v1828_v4 = vpop.f32.mrf.mxu1 }
 0x189   : > { %v1610_v21 = vadd.f32 %v1537_v53, %v1322_v9  ;;  %8540 = vmatmul.msk.bf16.gmra.mxu0 %vm311_vm1, %v1426_v46 }
 0x18b   : > { %v1898_v33 = vadd.f32 %v1825_v31, %v1610_v21  ;;  %8490 = vmatmul.msk.bf16.gmra.mxu3 %vm311_vm1, %v1138_v24  ;;  %8590 = vmatmul.msk.bf16.gmra.mxu1 %vm311_vm1, %v1714_v59  ;;  %v8521_v31 = vld [vmem:[%s9886_s8 + $0xd3] sm:$0xff]  ;;  %v1715_v24 = vpack.c.bf16 %v8620_v45, %v8619_v44 }
 0x18c   : > { %8640 = vmatmul.msk.bf16.gmra.mxu2 %vm311_vm1, %v10421_v60  ;;  %v1427_v55 = vpack.c.bf16 %v8521_v31, %v8520_v13  ;;  %v8623_v13 = vld [vmem:[%s9886_s8 + $0xec] sm:$0xff] }
 0x18d   : > { %v10428_v57 = vadd.f32 %v2113_v37, %v1898_v33 }
 0x18e   : > { %v1252_v62 = vpop.f32.mrf.mxu3  ;;  %v1542_v5 = vpop.f32.mrf.mxu0 }
 0x18f   : > { %v1323_v10 = vadd.f32 %v1252_v62, %v10184_v29  ;;  %v2116_v43 = vpop.f32.mrf.mxu2  ;;  %v1139_v29 = vpack.c.bf16 %v10079_v19, %v10054_v58 }
 0x190   : > { %v1830_v50 = vpop.f32.mrf.mxu1 }
 0x191   : > { %v1611_v28 = vadd.f32 %v1540_v40, %v1323_v10  ;;  %v10440_v40 = vpack.c.bf16 %v8621_v16, %v8620_v45 }
 0x193   : > { %v1899_v53 = vadd.f32 %v1828_v4, %v1611_v28 }
 0x195   : > { %v10433_v18 = vadd.f32 %v2116_v43, %v1899_v53  ;;  %v8622_v53 = vld [vmem:[%s9886_s8 + $0xe4] sm:$0xff] }
 0x196   : > { %v1254_v42 = vpop.f32.mrf.mxu3  ;;  %v1545_v37 = vpop.f32.mrf.mxu0 }
 0x197   : > { %v1324_v46 = vadd.f32 %v1254_v42, %v10195_v8  ;;  %v2118_v9 = vpop.f32.mrf.mxu2 }
 0x198   : > { %v1833_v59 = vpop.f32.mrf.mxu1 }
 0x199   : > { %v1612_v4 = vadd.f32 %v1542_v5, %v1324_v46  ;;  %8541 = vmatmul.msk.bf16.gmra.mxu0 %vm311_vm1, %v1427_v55  ;;  %v8522_v5 = vld [vmem:[%s9886_s8 + $0xdb] sm:$0xff] }
 0x19b   : > { %v1900_v21 = vadd.f32 %v1830_v50, %v1612_v4  ;;  %8491 = vmatmul.msk.bf16.gmra.mxu3 %vm311_vm1, %v1139_v29  ;;  %8591 = vmatmul.msk.bf16.gmra.mxu1 %vm311_vm1, %v1715_v24  ;;  %v8523_v50 = vld [vmem:[%s9886_s8 + $0xe3] sm:$0xff] }
 0x19c   : > { %8641 = vmatmul.msk.bf16.gmra.mxu2 %vm311_vm1, %v10440_v40  ;;  %v1428_v45 = vpack.c.bf16 %v8523_v50, %v8522_v5 }
 0x19d   : > { %v10447_v58 = vadd.f32 %v2118_v9, %v1900_v21  ;;  %v1716_v9 = vpack.c.bf16 %v8622_v53, %v8621_v16 }
 0x19e   : > { %v1257_v19 = vpop.f32.mrf.mxu3  ;;  %v1547_v33 = vpop.f32.mrf.mxu0 }
 0x19f   : > { %v1325_v8 = vadd.f32 %v1257_v19, %v10204_v32  ;;  %v2121_v44 = vpop.f32.mrf.mxu2  ;;  %v1140_v32 = vpack.c.bf16 %v10111_v51, %v10082_v20 }
 0x1a0   : > { %v1835_v62 = vpop.f32.mrf.mxu1 }
 0x1a1   : > { %v1613_v10 = vadd.f32 %v1545_v37, %v1325_v8  ;;  %v10459_v37 = vpack.c.bf16 %v8623_v13, %v8622_v53 }
 0x1a3   : > { %v1901_v43 = vadd.f32 %v1833_v59, %v1613_v10  ;;  %v8624_v10 = vld [vmem:[%s9886_s8 + $0xf4] sm:$0xff] }
 0x1a5   : > { %v10452_v28 = vadd.f32 %v2121_v44, %v1901_v43  ;;  %v8524_v44 = vld [vmem:[%s9886_s8 + $0xeb] sm:$0xff]  ;;  %v8625_v43 = vld [vmem:[%s9886_s8 + $0xfc] sm:$0xff] }
 0x1a6   : > { %v1259_v31 = vpop.f32.mrf.mxu3  ;;  %v1550_v46 = vpop.f32.mrf.mxu0 }
 0x1a7   : > { %v1326_v42 = vadd.f32 %v1259_v31, %v10215_v17  ;;  %v2123_v55 = vpop.f32.mrf.mxu2 }
 0x1a8   : > { %v1838_v29 = vpop.f32.mrf.mxu1 }
 0x1a9   : > { %v1614_v24 = vadd.f32 %v1547_v33, %v1326_v42  ;;  %8542 = vmatmul.msk.bf16.gmra.mxu0 %vm311_vm1, %v1428_v45  ;;  %v8525_v33 = vld [vmem:[%s9886_s8 + $0xf3] sm:$0xff]  ;;  %v1717_v42 = vpack.c.bf16 %v8624_v10, %v8623_v13 }
 0x1aa   : > { %v1429_v50 = vpack.c.bf16 %v8525_v33, %v8524_v44  ;;  %v8627_v44 = vld [vmem:[%s9886_s8 + $0x10c] sm:$0xff] }
 0x1ab   : > { %v1902_v59 = vadd.f32 %v1835_v62, %v1614_v24  ;;  %8492 = vmatmul.msk.bf16.gmra.mxu3 %vm311_vm1, %v1140_v32  ;;  %8592 = vmatmul.msk.bf16.gmra.mxu1 %vm311_vm1, %v1716_v9  ;;  %v10478_v32 = vpack.c.bf16 %v8625_v43, %v8624_v10  ;;  %v9028_v10 = vld [vmem:[%s12348_s1 + $0x38] sm:$0xf] }
 0x1ac   : > { %8642 = vmatmul.msk.bf16.gmra.mxu2 %vm311_vm1, %v10459_v37 }
 0x1ad   : > { %v10466_v20 = vadd.f32 %v2123_v55, %v1902_v59 }
 0x1ae   : > { %v1262_v51 = vpop.f32.mrf.mxu3  ;;  %v1552_v4 = vpop.f32.mrf.mxu0 }
 0x1af   : > { %v1327_v17 = vadd.f32 %v1262_v51, %v10224_v34  ;;  %v2126_v16 = vpop.f32.mrf.mxu2  ;;  %v1141_v34 = vpack.c.bf16 %v10159_v48, %v10114_v52  ;;  %v8878_v48 = vld [vmem:[%s12348_s1 + $0x2c] sm:$0xf] }
 0x1b0   : > { %v1840_v21 = vpop.f32.mrf.mxu1  ;;  %v3530_v13 = vsel %vm360_vm0, %v8878_v48, 0 }
 0x1b1   : > { %v1615_v19 = vadd.f32 %v1550_v46, %v1327_v17  ;;  %3539 = vmatpush.bf16.msrb.mxu3 %v3530_v13 }
 0x1b3   : > { %v1903_v8 = vadd.f32 %v1838_v29, %v1615_v19  ;;  %v8477_v19 = vld [vmem:[%s9886_s8 + $0x102] sm:$0xff] }
 0x1b5   : > { %v10471_v62 = vadd.f32 %v2126_v16, %v1903_v8  ;;  %v8626_v8 = vld [vmem:[%s9886_s8 + $0x104] sm:$0xff] }
 0x1b6   : > { %v1264_v5 = vpop.f32.mrf.mxu3  ;;  %v1555_v45 = vpop.f32.mrf.mxu0  ;;  %v1718_v48 = vpack.c.bf16 %v8626_v8, %v8625_v43  ;;  %v10513_v13 = vpack.c.bf16 %v8627_v44, %v8626_v8  ;;  %v8646_v8 = vld [vmem:[%s9886_s8 + $0x15] sm:$0xff]  ;;  %v8647_v44 = vld [vmem:[%s9886_s8 + $0x1d] sm:$0xff] }
 0x1b7   : > { %v1328_v53 = vadd.f32 %v1264_v5, %v10235_v26  ;;  %v2128_v31 = vpop.f32.mrf.mxu2  ;;  %v8978_v5 = vld [vmem:[%s12348_s1 + $0x34] sm:$0xf] }
 0x1b8   : > { %v1843_v55 = vpop.f32.mrf.mxu1 }
 0x1b9   : > { %v1616_v46 = vadd.f32 %v1552_v4, %v1328_v53  ;;  %8543 = vmatmul.msk.bf16.gmra.mxu0 %vm311_vm1, %v1429_v50  ;;  %v8526_v4 = vld [vmem:[%s9886_s8 + $0xfb] sm:$0xff] }
 0x1bb   : > { %v1904_v9 = vadd.f32 %v1840_v21, %v1616_v46  ;;  %8493 = vmatmul.msk.bf16.gmra.mxu3 %vm311_vm1, %v1141_v34  ;;  %8593 = vmatmul.msk.bf16.gmra.mxu1 %vm311_vm1, %v1717_v42  ;;  %v8527_v21 = vld [vmem:[%s9886_s8 + $0x103] sm:$0xff]  ;;  %v4106_v34 = vsel %vm360_vm0, %v8978_v5, 0  ;;  %v8797_v5 = vld [vmem:[%s9886_s8 + $0x6d] sm:$0xff] }
 0x1bc   : > { %8643 = vmatmul.msk.bf16.gmra.mxu2 %vm311_vm1, %v10478_v32  ;;  %v1430_v53 = vpack.c.bf16 %v8527_v21, %v8526_v4  ;;  %4115 = vmatpush.bf16.msrb.mxu1 %v4106_v34 }
 0x1bd   : > { %v10485_v52 = vadd.f32 %v2128_v31, %v1904_v9  ;;  %v4394_v31 = vsel %vm360_vm0, %v9028_v10, 0  ;;  %v1142_v9 = vpack.c.bf16 %v8477_v19, %v10162_v49  ;;  %v8697_v19 = vld [vmem:[%s9886_s8 + $0x1e] sm:$0xff] }
 0x1be   : > { %v1267_v26 = vpop.f32.mrf.mxu3  ;;  %v1557_v59 = vpop.f32.mrf.mxu0  ;;  %4403 = vmatpush.bf16.msrb.mxu2 %v4394_v31 }
 0x1bf   : > { %v1329_v29 = vadd.f32 %v1267_v26, %v10244_v35  ;;  %v2131_v24 = vpop.f32.mrf.mxu2  ;;  %v8928_v35 = vld [vmem:[%s12348_s1 + $0x30] sm:$0xf] }
 0x1c0   : > { %v1845_v51 = vpop.f32.mrf.mxu1 }
 0x1c1   : > { %v1617_v17 = vadd.f32 %v1555_v45, %v1329_v29  ;;  %v3818_v45 = vsel %vm360_vm0, %v8928_v35, 0  ;;  %v8796_v35 = vld [vmem:[%s9886_s8 + $0x65] sm:$0xff] }
 0x1c2   : > { %3827 = vmatpush.bf16.msrb.mxu0 %v3818_v45 }
 0x1c3   : > { %v1905_v16 = vadd.f32 %v1843_v55, %v1617_v17 }
 0x1c5   : > { %v10497_v33 = vadd.f32 %v2131_v24, %v1905_v16 }
 0x1c6   : > { %v1269_v50 = vpop.f32.mrf.mxu3  ;;  %v1560_v46 = vpop.f32.mrf.mxu0 }
 0x1c7   : > { %v1330_v42 = vadd.f32 %v1269_v50, %v10255_v41  ;;  %v2133_v55 = vpop.f32.mrf.mxu2 }
 0x1c8   : > { %v1848_v26 = vpop.f32.mrf.mxu1 }
 0x1c9   : > { %v1618_v29 = vadd.f32 %v1557_v59, %v1330_v42  ;;  %8544 = vmatmul.msk.bf16.gmra.mxu0 %vm311_vm1, %v1430_v53 }
 0x1cb   : > { %v1906_v24 = vadd.f32 %v1845_v51, %v1618_v29  ;;  %8494 = vmatmul.msk.bf16.gmra.mxu3 %vm311_vm1, %v1142_v9  ;;  %8594 = vmatmul.msk.bf16.gmra.mxu1 %vm311_vm1, %v1718_v48  ;;  %v8696_v51 = vld [vmem:[%s9886_s8 + $0x16] sm:$0xff] }
 0x1cc   : > { %8644 = vmatmul.msk.bf16.gmra.mxu2 %vm311_vm1, %v10513_v13  ;;  %v2567_v53 = vpack.c.bf16 %v8697_v19, %v8696_v51  ;;  %v8799_v19 = vld [vmem:[%s9886_s8 + $0x7d] sm:$0xff] }
 0x1cd   : > { %v10520_v49 = vadd.f32 %v2133_v55, %v1906_v24  ;;  %v10532_v55 = vpack.c.bf16 %v8797_v5, %v8796_v35 }
 0x1ce   : > { %v1272_v41 = vpop.f32.mrf.mxu3  ;;  %v1562_v17 = vpop.f32.mrf.mxu0 }
 0x1cf   : > { %v1331_v43 = vadd.f32 %v1272_v41, %v10264_v36  ;;  %v2136_v59 = vpop.f32.mrf.mxu2  ;;  %v2279_v36 = vpack.c.bf16 %v8647_v44, %v8646_v8 }
 0x1d0   : > { %v1850_v16 = vpop.f32.mrf.mxu1 }
 0x1d1   : > { %v1619_v4 = vadd.f32 %v1560_v46, %v1331_v43 }
 0x1d3   : > { %v1907_v21 = vadd.f32 %v1848_v26, %v1619_v4  ;;  %v8648_v4 = vld [vmem:[%s9886_s8 + $0x25] sm:$0xff] }
 0x1d5   : > { %v10527_v10 = vadd.f32 %v2136_v59, %v1907_v21  ;;  %v8649_v21 = vld [vmem:[%s9886_s8 + $0x2d] sm:$0xff] }
 0x1d6   : > { %v1274_v50 = vpop.f32.mrf.mxu3  ;;  %v1565_v34 = vpop.f32.mrf.mxu0 }
 0x1d7   : > { %v1332_v31 = vadd.f32 %v1274_v50, %v10275_v47  ;;  %v2138_v45 = vpop.f32.mrf.mxu2 }
 0x1d8   : > { %v1853_v42 = vpop.f32.mrf.mxu1 }
 0x1d9   : > { %v1620_v46 = vadd.f32 %v1562_v17, %v1332_v31  ;;  %8729 = vmatmul.msk.bf16.vlgmr.msra.gmra.mxu0 %vm311_vm1, %v2567_v53  ;;  %v8698_v17 = vld [vmem:[%s9886_s8 + $0x26] sm:$0xff] }
 0x1db   : > { %v1908_v9 = vadd.f32 %v1850_v16, %v1620_v46  ;;  %8679 = vmatmul.msk.bf16.vlgmr.msra.gmra.mxu3 %vm311_vm1, %v2279_v36  ;;  %8779 = vmatmul.msk.bf16.vlgmr.msra.gmra.mxu1 %vm311_vm1, %v10297_v3  ;;  %v8699_v16 = vld [vmem:[%s9886_s8 + $0x2e] sm:$0xff] }
 0x1dc   : > { %8829 = vmatmul.msk.bf16.vlgmr.msra.gmra.mxu2 %vm311_vm1, %v10532_v55  ;;  %v8798_v3 = vld [vmem:[%s9886_s8 + $0x75] sm:$0xff]  ;;  %v2568_v44 = vpack.c.bf16 %v8699_v16, %v8698_v17  ;;  %v8801_v16 = vld [vmem:[%s9886_s8 + $0x8d] sm:$0xff] }
 0x1dd   : > { %v10540_v47 = vadd.f32 %v2138_v45, %v1908_v9  ;;  %v10552_v31 = vpack.c.bf16 %v8799_v19, %v8798_v3 }
 0x1de   : > { %v1277_v48 = vpop.f32.mrf.mxu3  ;;  %v1567_v24 = vpop.f32.mrf.mxu0 }
 0x1df   : > { %v1333_v26 = vadd.f32 %v1277_v48, %v10284_v38  ;;  %v2141_v29 = vpop.f32.mrf.mxu2  ;;  %v2280_v38 = vpack.c.bf16 %v8649_v21, %v8648_v4 }
 0x1e0   : > { %v1855_v41 = vpop.f32.mrf.mxu1 }
 0x1e1   : > { %v1621_v43 = vadd.f32 %v1565_v34, %v1333_v26 }
 0x1e3   : > { %v1909_v59 = vadd.f32 %v1853_v42, %v1621_v43  ;;  %v8650_v43 = vld [vmem:[%s9886_s8 + $0x35] sm:$0xff] }
 0x1e5   : > { %v10547_v51 = vadd.f32 %v2141_v29, %v1909_v59  ;;  %v8651_v59 = vld [vmem:[%s9886_s8 + $0x3d] sm:$0xff] }
 0x1e6   : > { %v1279_v8 = vpop.f32.mrf.mxu3  ;;  %v1570_v50 = vpop.f32.mrf.mxu0 }
 0x1e7   : > { %v1334_v35 = vadd.f32 %v1279_v8, %v10295_v1  ;;  %v2143_v5 = vpop.f32.mrf.mxu2 }
 0x1e8   : > { %v1858_v53 = vpop.f32.mrf.mxu1 }
 0x1e9   : > { %v1622_v45 = vadd.f32 %v1567_v24, %v1334_v35  ;;  %8730 = vmatmul.msk.bf16.gmra.mxu0 %vm311_vm1, %v2568_v44  ;;  %v8700_v24 = vld [vmem:[%s9886_s8 + $0x36] sm:$0xff] }
 0x1eb   : > { %v1910_v34 = vadd.f32 %v1855_v41, %v1622_v45  ;;  %8680 = vmatmul.msk.bf16.gmra.mxu3 %vm311_vm1, %v2280_v38  ;;  %8780 = vmatmul.msk.bf16.gmra.mxu1 %vm311_vm1, %v10320_v25  ;;  %v8701_v41 = vld [vmem:[%s9886_s8 + $0x3e] sm:$0xff] }
 0x1ec   : > { %8830 = vmatmul.msk.bf16.gmra.mxu2 %vm311_vm1, %v10552_v31  ;;  %v8800_v25 = vld [vmem:[%s9886_s8 + $0x85] sm:$0xff]  ;;  %v2569_v21 = vpack.c.bf16 %v8701_v41, %v8700_v24  ;;  %v8803_v41 = vld [vmem:[%s9886_s8 + $0x9d] sm:$0xff] }
 0x1ed   : > { %v10560_v1 = vadd.f32 %v2143_v5, %v1910_v34  ;;  %v10572_v35 = vpack.c.bf16 %v8801_v16, %v8800_v25 }
 0x1ee   : > { %v1282_v36 = vpop.f32.mrf.mxu3  ;;  %v1572_v9 = vpop.f32.mrf.mxu0 }
 0x1ef   : > { %v1335_v42 = vadd.f32 %v1282_v36, %v10307_v39  ;;  %v2146_v46 = vpop.f32.mrf.mxu2  ;;  %v2281_v39 = vpack.c.bf16 %v8651_v59, %v8650_v43 }
 0x1f0   : > { %v1860_v48 = vpop.f32.mrf.mxu1 }
 0x1f1   : > { %v1623_v26 = vadd.f32 %v1570_v50, %v1335_v42 }
 0x1f3   : > { %v1911_v29 = vadd.f32 %v1858_v53, %v1623_v26  ;;  %v8652_v26 = vld [vmem:[%s9886_s8 + $0x45] sm:$0xff] }
 0x1f5   : > { %v10567_v17 = vadd.f32 %v2146_v46, %v1911_v29  ;;  %v8653_v29 = vld [vmem:[%s9886_s8 + $0x4d] sm:$0xff] }
 0x1f6   : > { %v1284_v4 = vpop.f32.mrf.mxu3  ;;  %v1575_v8 = vpop.f32.mrf.mxu0 }
 0x1f7   : > { %v1336_v3 = vadd.f32 %v1284_v4, %v10318_v11  ;;  %v2148_v19 = vpop.f32.mrf.mxu2 }
 0x1f8   : > { %v1863_v44 = vpop.f32.mrf.mxu1 }
 0x1f9   : > { %v1624_v5 = vadd.f32 %v1572_v9, %v1336_v3  ;;  %8731 = vmatmul.msk.bf16.gmra.mxu0 %vm311_vm1, %v2569_v21  ;;  %v8702_v9 = vld [vmem:[%s9886_s8 + $0x46] sm:$0xff] }
 0x1fb   : > { %v1912_v50 = vadd.f32 %v1860_v48, %v1624_v5  ;;  %8681 = vmatmul.msk.bf16.gmra.mxu3 %vm311_vm1, %v2281_v39  ;;  %8781 = vmatmul.msk.bf16.gmra.mxu1 %vm311_vm1, %v10343_v23  ;;  %v8703_v48 = vld [vmem:[%s9886_s8 + $0x4e] sm:$0xff] }
 0x1fc   : > { %8831 = vmatmul.msk.bf16.gmra.mxu2 %vm311_vm1, %v10572_v35  ;;  %v8802_v23 = vld [vmem:[%s9886_s8 + $0x95] sm:$0xff]  ;;  %v2570_v59 = vpack.c.bf16 %v8703_v48, %v8702_v9  ;;  %v8805_v48 = vld [vmem:[%s9886_s8 + $0xad] sm:$0xff] }
 0x1fd   : > { %v10580_v11 = vadd.f32 %v2148_v19, %v1912_v50  ;;  %v10592_v3 = vpack.c.bf16 %v8803_v41, %v8802_v23 }
 0x1fe   : > { %v1287_v38 = vpop.f32.mrf.mxu3  ;;  %v1577_v34 = vpop.f32.mrf.mxu0 }
 0x1ff   : > { %v1337_v53 = vadd.f32 %v1287_v38, %v10330_v7  ;;  %v2151_v45 = vpop.f32.mrf.mxu2  ;;  %v2282_v7 = vpack.c.bf16 %v8653_v29, %v8652_v26 }
 0x200   : > { %v1865_v36 = vpop.f32.mrf.mxu1 }
 0x201   : > { %v1625_v42 = vadd.f32 %v1575_v8, %v1337_v53 }
 0x203   : > { %v1913_v46 = vadd.f32 %v1863_v44, %v1625_v42  ;;  %v8654_v42 = vld [vmem:[%s9886_s8 + $0x55] sm:$0xff] }
 0x205   : > { %v10587_v24 = vadd.f32 %v2151_v45, %v1913_v46  ;;  %v8655_v46 = vld [vmem:[%s9886_s8 + $0x5d] sm:$0xff] }
 0x206   : > { %v1289_v43 = vpop.f32.mrf.mxu3  ;;  %v1580_v4 = vpop.f32.mrf.mxu0 }
 0x207   : > { %v1338_v25 = vadd.f32 %v1289_v43, %v10341_v0  ;;  %v2153_v16 = vpop.f32.mrf.mxu2 }
 0x208   : > { %v1868_v21 = vpop.f32.mrf.mxu1 }
 0x209   : > { %v1626_v19 = vadd.f32 %v1577_v34, %v1338_v25  ;;  %8732 = vmatmul.msk.bf16.gmra.mxu0 %vm311_vm1, %v2570_v59  ;;  %v8704_v34 = vld [vmem:[%s9886_s8 + $0x56] sm:$0xff] }
 0x20b   : > { %v1914_v8 = vadd.f32 %v1865_v36, %v1626_v19  ;;  %8682 = vmatmul.msk.bf16.gmra.mxu3 %vm311_vm1, %v2282_v7  ;;  %8782 = vmatmul.msk.bf16.gmra.mxu1 %vm311_vm1, %v10366_v61  ;;  %v8705_v36 = vld [vmem:[%s9886_s8 + $0x5e] sm:$0xff] }
 0x20c   : > { %8832 = vmatmul.msk.bf16.gmra.mxu2 %vm311_vm1, %v10592_v3  ;;  %v8804_v61 = vld [vmem:[%s9886_s8 + $0xa5] sm:$0xff]  ;;  %v2571_v29 = vpack.c.bf16 %v8705_v36, %v8704_v34 }
 0x20d   : > { %v10600_v0 = vadd.f32 %v2153_v16, %v1914_v8  ;;  %v10612_v25 = vpack.c.bf16 %v8805_v48, %v8804_v61 }
 0x20e   : > { %v1292_v39 = vpop.f32.mrf.mxu3  ;;  %v1582_v50 = vpop.f32.mrf.mxu0 }
 0x20f   : > { %v1339_v44 = vadd.f32 %v1292_v39, %v10353_v30  ;;  %v2156_v5 = vpop.f32.mrf.mxu2  ;;  %v2283_v30 = vpack.c.bf16 %v8655_v46, %v8654_v42 }
 0x210   : > { %v1870_v38 = vpop.f32.mrf.mxu1 }
 0x211   : > { %v1627_v53 = vadd.f32 %v1580_v4, %v1339_v44 }
 0x213   : > { %v1915_v45 = vadd.f32 %v1868_v21, %v1627_v53 }
 0x215   : > { %v10607_v9 = vadd.f32 %v2156_v5, %v1915_v45  ;;  %v8806_v45 = vld [vmem:[%s9886_s8 + $0xb5] sm:$0xff] }
 0x216   : > { %v1294_v26 = vpop.f32.mrf.mxu3  ;;  %v1585_v43 = vpop.f32.mrf.mxu0 }
 0x217   : > { %v1340_v23 = vadd.f32 %v1294_v26, %v10364_v12  ;;  %v2158_v41 = vpop.f32.mrf.mxu2 }
 0x218   : > { %v1873_v59 = vpop.f32.mrf.mxu1 }
 0x219   : > { %v1628_v16 = vadd.f32 %v1582_v50, %v1340_v23  ;;  %8733 = vmatmul.msk.bf16.gmra.mxu0 %vm311_vm1, %v2571_v29  ;;  %v8706_v50 = vld [vmem:[%s9886_s8 + $0x66] sm:$0xff] }
 0x21b   : > { %v1916_v4 = vadd.f32 %v1870_v38, %v1628_v16  ;;  %8683 = vmatmul.msk.bf16.gmra.mxu3 %vm311_vm1, %v2283_v30  ;;  %8783 = vmatmul.msk.bf16.gmra.mxu1 %vm311_vm1, %v10383_v27  ;;  %v10625_v38 = vld [vmem:[%s9886_s8 + $0x6e] sm:$0xff]  ;;  %v8807_v27 = vld [vmem:[%s9886_s8 + $0xbd] sm:$0xff] }
 0x21c   : > { %8833 = vmatmul.msk.bf16.gmra.mxu2 %vm311_vm1, %v10612_v25  ;;  %v10632_v36 = vpack.c.bf16 %v10625_v38, %v8706_v50  ;;  %v10635_v48 = vpack.c.bf16 %v8807_v27, %v8806_v45 }
 0x21d   : > { %v10620_v12 = vadd.f32 %v2158_v41, %v1916_v4  ;;  %v12378_v41 = vld [vmem:[#allocation6_spill] sm:$0xff] }
 0x21e   : > { %v1297_v7 = vpop.f32.mrf.mxu3  ;;  %v1587_v8 = vpop.f32.mrf.mxu0 }
 0x21f   : > { %v1341_v21 = vadd.f32 %v1297_v7, %v10282_v14  ;;  %v2161_v19 = vpop.f32.mrf.mxu2 }
 0x220   : > { %v1875_v39 = vpop.f32.mrf.mxu1 }
 0x221   : > { %v1629_v44 = vadd.f32 %v1585_v43, %v1341_v21  ;;  %v10649_v21 = vld [vmem:[%s9886_s8 + $0x76] sm:$0xff] }
 0x223   : > { %v1917_v5 = vadd.f32 %v1873_v59, %v1629_v44 }
 0x225   : > { %v10627_v53 = vadd.f32 %v2161_v19, %v1917_v5  ;;  %v10652_v19 = vld [vmem:[%s9886_s8 + $0x7e] sm:$0xff]  ;;  %v12379_v5 = vld [vmem:[#allocation7_spill] sm:$0xff] }
 0x226   : > { %v1299_v34 = vpop.f32.mrf.mxu3  ;;  %v1590_v14 = vpop.f32.mrf.mxu0  ;;  %v10660_v44 = vpack.c.bf16 %v10652_v19, %v10649_v21 }
 0x227   : > { %v1342_v42 = vadd.f32 %v1299_v34, %v10291_v54  ;;  %v2163_v46 = vpop.f32.mrf.mxu2 }
 0x228   : > { %v1878_v61 = vpop.f32.mrf.mxu1 }
 0x229   : > { %v1630_v26 = vadd.f32 %v1587_v8, %v1342_v42  ;;  %8734 = vmatmul.msk.bf16.gmra.mxu0 %vm311_vm1, %v10632_v36  ;;  %v8809_v8 = vld [vmem:[%s9886_s8 + $0xcd] sm:$0xff] }
 0x22b   : > { %v1918_v29 = vadd.f32 %v1875_v39, %v1630_v26  ;;  %8684 = vmatmul.msk.bf16.gmra.mxu3 %vm311_vm1, %v10532_v55  ;;  %8784 = vmatmul.msk.bf16.gmra.mxu1 %vm311_vm1, %v10402_v6  ;;  %v8808_v6 = vld [vmem:[%s9886_s8 + $0xc5] sm:$0xff] }
 0x22c   : > { %8834 = vmatmul.msk.bf16.gmra.mxu2 %vm311_vm1, %v10635_v48  ;;  %v10663_v42 = vpack.c.bf16 %v8809_v8, %v8808_v6  ;;  %v8811_v6 = vld [vmem:[%s9886_s8 + $0xdd] sm:$0xff] }
 0x22d   : > { %v10645_v54 = vadd.f32 %v2163_v46, %v1918_v29  ;;  %v12381_v29 = vld [vmem:[#allocation8_spill] sm:$0xff] }
 0x22e   : > { %v1302_v23 = vpop.f32.mrf.mxu3  ;;  %v1592_v59 = vpop.f32.mrf.mxu0 }
 0x22f   : > { %v1343_v43 = vadd.f32 %v1302_v23, %v12378_v41  ;;  %v2166_v30 = vpop.f32.mrf.mxu2 }
 0x230   : > { %v1880_v16 = vpop.f32.mrf.mxu1 }
 0x231   : > { %v1631_v4 = vadd.f32 %v1590_v14, %v1343_v43 }
 0x233   : > { %v1919_v7 = vadd.f32 %v1878_v61, %v1631_v4  ;;  %v10677_v4 = vld [vmem:[%s9886_s8 + $0x86] sm:$0xff] }
 0x235   : > { %v10654_v55 = vadd.f32 %v2166_v30, %v1919_v7  ;;  %v10680_v7 = vld [vmem:[%s9886_s8 + $0x8e] sm:$0xff] }
 0x236   : > { %v1304_v39 = vpop.f32.mrf.mxu3  ;;  %v1595_v27 = vpop.f32.mrf.mxu0 }
 0x237   : > { %v1344_v50 = vadd.f32 %v1304_v39, %v12379_v5  ;;  %v2168_v45 = vpop.f32.mrf.mxu2  ;;  %v10688_v39 = vpack.c.bf16 %v10680_v7, %v10677_v4  ;;  %v12383_v5 = vld [vmem:[#allocation9_spill] sm:$0xff] }
 0x238   : > { %v1883_v34 = vpop.f32.mrf.mxu1 }
 0x239   : > { %v1632_v46 = vadd.f32 %v1592_v59, %v1344_v50  ;;  %8735 = vmatmul.msk.bf16.gmra.mxu0 %vm311_vm1, %v10660_v44 }
 0x23b   : > { %v1920_v14 = vadd.f32 %v1880_v16, %v1632_v46  ;;  %8685 = vmatmul.msk.bf16.gmra.mxu3 %vm311_vm1, %v10552_v31  ;;  %8785 = vmatmul.msk.bf16.gmra.mxu1 %vm311_vm1, %v10421_v60  ;;  %v8810_v60 = vld [vmem:[%s9886_s8 + $0xd5] sm:$0xff] }
 0x23c   : > { %8835 = vmatmul.msk.bf16.gmra.mxu2 %vm311_vm1, %v10663_v42 }
 0x23d   : > { %v10673_v61 = vadd.f32 %v2168_v45, %v1920_v14 }
 0x23e   : > { %v1307_v26 = vpop.f32.mrf.mxu3  ;;  %v1597_v43 = vpop.f32.mrf.mxu0 }
 0x23f   : > { %12380 = vst [vmem:[#allocation6_spill] sm:$0xff] %v10673_v61  ;;  %v1345_v23 = vadd.f32 %v1307_v26, %v12381_v29  ;;  %v2171_v41 = vpop.f32.mrf.mxu2  ;;  %v8819_v61 = vld [vmem:[%s9886_s8 + $0x11d] sm:$0xff] }
 0x240   : > { %v1885_v30 = vpop.f32.mrf.mxu1 }
 0x241   : > { %v1633_v59 = vadd.f32 %v1595_v27, %v1345_v23  ;;  %v10691_v27 = vpack.c.bf16 %v8811_v6, %v8810_v60 }
 0x243   : > { %v1921_v16 = vadd.f32 %v1883_v34, %v1633_v59 }
 0x245   : > { %v10682_v31 = vadd.f32 %v2171_v41, %v1921_v16  ;;  %v12385_v41 = vld [vmem:[#allocation10_spill] sm:$0xff] }
 0x246   : > { %v1309_v8 = vpop.f32.mrf.mxu3  ;;  %v1600_v46 = vpop.f32.mrf.mxu0 }
 0x247   : > { %12382 = vst [vmem:[#allocation7_spill] sm:$0xff] %v10682_v31  ;;  %v1346_v50 = vadd.f32 %v1309_v8, %v12383_v5  ;;  %v2173_v45 = vpop.f32.mrf.mxu2  ;;  %v10705_v8 = vld [vmem:[%s9886_s8 + $0x96] sm:$0xff]  ;;  %v10708_v5 = vld [vmem:[%s9886_s8 + $0x9e] sm:$0xff] }
 0x248   : > { %v1888_v14 = vpop.f32.mrf.mxu1 }
 0x249   : > { %v1634_v34 = vadd.f32 %v1597_v43, %v1346_v50  ;;  %8736 = vmatmul.msk.bf16.gmra.mxu0 %vm311_vm1, %v10688_v39  ;;  %v8813_v50 = vld [vmem:[%s9886_s8 + $0xed] sm:$0xff] }
 0x24b   : > { %v1922_v26 = vadd.f32 %v1885_v30, %v1634_v34  ;;  %8686 = vmatmul.msk.bf16.gmra.mxu3 %vm311_vm1, %v10572_v35  ;;  %8786 = vmatmul.msk.bf16.gmra.mxu1 %vm311_vm1, %v10440_v40  ;;  %v8812_v40 = vld [vmem:[%s9886_s8 + $0xe5] sm:$0xff] }
 0x24c   : > { %8836 = vmatmul.msk.bf16.gmra.mxu2 %vm311_vm1, %v10691_v27 }
 0x24d   : > { %v10701_v29 = vadd.f32 %v2173_v45, %v1922_v26  ;;  %v10716_v45 = vpack.c.bf16 %v10708_v5, %v10705_v8  ;;  %v12387_v26 = vld [vmem:[#allocation11_spill] sm:$0xff] }
 0x24e   : > { %v1312_v23 = vpop.f32.mrf.mxu3  ;;  %v1602_v16 = vpop.f32.mrf.mxu0 }
 0x24f   : > { %12384 = vst [vmem:[#allocation8_spill] sm:$0xff] %v10701_v29  ;;  %v1347_v43 = vadd.f32 %v1312_v23, %v12385_v41  ;;  %v2176_v59 = vpop.f32.mrf.mxu2 }
 0x250   : > { %v1890_v60 = vpop.f32.mrf.mxu1 }
 0x251   : > { %v1635_v6 = vadd.f32 %v1600_v46, %v1347_v43  ;;  %v10719_v46 = vpack.c.bf16 %v8813_v50, %v8812_v40 }
 0x253   : > { %v1923_v30 = vadd.f32 %v1888_v14, %v1635_v6 }
 0x255   : > { %v10710_v35 = vadd.f32 %v2176_v59, %v1923_v30 }
 0x256   : > { %v1314_v34 = vpop.f32.mrf.mxu3  ;;  %v2677_v29 = vpop.f32.mrf.mxu0 }
 0x257   : > { %12386 = vst [vmem:[#allocation9_spill] sm:$0xff] %v10710_v35  ;;  %v1348_v23 = vadd.f32 %v1314_v34, %v12387_v26  ;;  %v2178_v41 = vpop.f32.mrf.mxu2  ;;  %v10733_v26 = vld [vmem:[%s9886_s8 + $0xa6] sm:$0xff] }
 0x258   : > { %v2965_v31 = vpop.f32.mrf.mxu1 }
 0x259   : > { %v1636_v14 = vadd.f32 %v1602_v16, %v1348_v23  ;;  %8737 = vmatmul.msk.bf16.gmra.mxu0 %vm311_vm1, %v10716_v45  ;;  %v10736_v23 = vld [vmem:[%s9886_s8 + $0xae] sm:$0xff] }
 0x25b   : > { %v1924_v43 = vadd.f32 %v1890_v60, %v1636_v14  ;;  %8687 = vmatmul.msk.bf16.gmra.mxu3 %vm311_vm1, %v10592_v3  ;;  %8787 = vmatmul.msk.bf16.gmra.mxu1 %vm311_vm1, %v10459_v37  ;;  %v8814_v37 = vld [vmem:[%s9886_s8 + $0xf5] sm:$0xff]  ;;  %v8815_v14 = vld [vmem:[%s9886_s8 + $0xfd] sm:$0xff] }
 0x25c   : > { %8837 = vmatmul.msk.bf16.gmra.mxu2 %vm311_vm1, %v10719_v46 }
 0x25d   : > { %v10729_v59 = vadd.f32 %v2178_v41, %v1924_v43  ;;  %v10744_v41 = vpack.c.bf16 %v10736_v23, %v10733_v26 }
 0x25e   : > { %v2389_v6 = vpop.f32.mrf.mxu3  ;;  %v2679_v40 = vpop.f32.mrf.mxu0 }
 0x25f   : > { %12388 = vst [vmem:[#allocation10_spill] sm:$0xff] %v10729_v59  ;;  %v2469_v16 = vadd.f32 %v2389_v6, %v10376_v15  ;;  %v3253_v30 = vpop.f32.mrf.mxu2 }
 0x260   : > { %v2967_v50 = vpop.f32.mrf.mxu1 }
 0x261   : > { %v2757_v34 = vadd.f32 %v2677_v29, %v2469_v16 }
 0x263   : > { %v3045_v60 = vadd.f32 %v2965_v31, %v2757_v34  ;;  %v10747_v31 = vpack.c.bf16 %v8815_v14, %v8814_v37  ;;  %v10761_v14 = vld [vmem:[%s9886_s8 + $0xb6] sm:$0xff] }
 0x265   : > { %v10738_v3 = vadd.f32 %v3253_v30, %v3045_v60 }
 0x266   : > { %v2391_v35 = vpop.f32.mrf.mxu3  ;;  %v2682_v6 = vpop.f32.mrf.mxu0 }
 0x267   : > { %12389 = vst [vmem:[#allocation11_spill] sm:$0xff] %v10738_v3  ;;  %v2470_v15 = vadd.f32 %v2391_v35, %v10390_v22  ;;  %v3255_v43 = vpop.f32.mrf.mxu2 }
 0x268   : > { %v2970_v59 = vpop.f32.mrf.mxu1 }
 0x269   : > { %v2758_v29 = vadd.f32 %v2679_v40, %v2470_v15  ;;  %8738 = vmatmul.msk.bf16.gmra.mxu0 %vm311_vm1, %v10744_v41  ;;  %v10764_v15 = vld [vmem:[%s9886_s8 + $0xbe] sm:$0xff] }
 0x26b   : > { %v3046_v16 = vadd.f32 %v2967_v50, %v2758_v29  ;;  %8688 = vmatmul.msk.bf16.gmra.mxu3 %vm311_vm1, %v10612_v25  ;;  %8788 = vmatmul.msk.bf16.gmra.mxu1 %vm311_vm1, %v10478_v32  ;;  %v8816_v32 = vld [vmem:[%s9886_s8 + $0x105] sm:$0xff]  ;;  %v8817_v29 = vld [vmem:[%s9886_s8 + $0x10d] sm:$0xff] }
 0x26c   : > { %8838 = vmatmul.msk.bf16.gmra.mxu2 %vm311_vm1, %v10747_v31 }
 0x26d   : > { %v10757_v22 = vadd.f32 %v3255_v43, %v3046_v16  ;;  %v10772_v43 = vpack.c.bf16 %v10764_v15, %v10761_v14 }
 0x26e   : > { %v2394_v35 = vpop.f32.mrf.mxu3  ;;  %v2684_v34 = vpop.f32.mrf.mxu0 }
 0x26f   : > { %12390 = vst [vmem:[#allocation12_spill] sm:$0xff] %v10757_v22  ;;  %v2471_v30 = vadd.f32 %v2394_v35, %v10395_v63  ;;  %v3258_v40 = vpop.f32.mrf.mxu2 }
 0x270   : > { %v2972_v60 = vpop.f32.mrf.mxu1 }
 0x271   : > { %v2759_v37 = vadd.f32 %v2682_v6, %v2471_v30 }
 0x273   : > { %v3047_v50 = vadd.f32 %v2970_v59, %v2759_v37  ;;  %v10775_v59 = vpack.c.bf16 %v8817_v29, %v8816_v32  ;;  %v10789_v29 = vld [vmem:[%s9886_s8 + $0xc6] sm:$0xff] }
 0x275   : > { %v10766_v25 = vadd.f32 %v3258_v40, %v3047_v50 }
 0x276   : > { %v2396_v3 = vpop.f32.mrf.mxu3  ;;  %v2687_v35 = vpop.f32.mrf.mxu0 }
 0x277   : > { %12391 = vst [vmem:[#allocation13_spill] sm:$0xff] %v10766_v25  ;;  %v2472_v63 = vadd.f32 %v2396_v3, %v10409_v56  ;;  %v3260_v16 = vpop.f32.mrf.mxu2  ;;  %v8818_v25 = vld [vmem:[%s9886_s8 + $0x115] sm:$0xff] }
 0x278   : > { %v2975_v22 = vpop.f32.mrf.mxu1 }
 0x279   : > { %v2760_v6 = vadd.f32 %v2684_v34, %v2472_v63  ;;  %8739 = vmatmul.msk.bf16.gmra.mxu0 %vm311_vm1, %v10772_v43  ;;  %v8768_v63 = vld [vmem:[%s9886_s8 + $0x114] sm:$0xff] }
 0x27b   : > { %v3048_v30 = vadd.f32 %v2972_v60, %v2760_v6  ;;  %8689 = vmatmul.msk.bf16.gmra.mxu3 %vm311_vm1, %v10635_v48  ;;  %8789 = vmatmul.msk.bf16.gmra.mxu1 %vm311_vm1, %v10513_v13  ;;  %v10792_v48 = vld [vmem:[%s9886_s8 + $0xce] sm:$0xff]  ;;  %v8769_v13 = vld [vmem:[%s9886_s8 + $0x11c] sm:$0xff] }
 0x27c   : > { %8839 = vmatmul.msk.bf16.gmra.mxu2 %vm311_vm1, %v10775_v59 }
 0x27d   : > { %v10785_v56 = vadd.f32 %v3260_v16, %v3048_v30  ;;  %v10802_v30 = vpack.c.bf16 %v10792_v48, %v10789_v29 }
 0x27e   : > { %v2399_v3 = vpop.f32.mrf.mxu3  ;;  %v2689_v37 = vpop.f32.mrf.mxu0 }
 0x27f   : > { %12392 = vst [vmem:[#allocation14_spill] sm:$0xff] %v10785_v56  ;;  %v2473_v40 = vadd.f32 %v2399_v3, %v10414_v2  ;;  %v3263_v34 = vpop.f32.mrf.mxu2 }
 0x280   : > { %v2977_v50 = vpop.f32.mrf.mxu1 }
 0x281   : > { %v2761_v60 = vadd.f32 %v2687_v35, %v2473_v40 }
 0x283   : > { %v3049_v32 = vadd.f32 %v2975_v22, %v2761_v60  ;;  %v2866_v22 = vpack.c.bf16 %v8769_v13, %v8768_v63  ;;  %v3154_v60 = vpack.c.bf16 %v8819_v61, %v8818_v25 }
 0x285   : > { %v10796_v6 = vadd.f32 %v3263_v34, %v3049_v32 }
 0x286   : > { %v2401_v16 = vpop.f32.mrf.mxu3  ;;  %v2692_v35 = vpop.f32.mrf.mxu0 }
 0x287   : > { %12393 = vst [vmem:[#allocation15_spill] sm:$0xff] %v10796_v6  ;;  %v2474_v2 = vadd.f32 %v2401_v16, %v10428_v57  ;;  %v3265_v3 = vpop.f32.mrf.mxu2  ;;  %v8820_v6 = vld [vmem:[%s9886_s8 + $0x125] sm:$0xff] }
 0x288   : > { %v2980_v40 = vpop.f32.mrf.mxu1 }
 0x289   : > { %v2762_v56 = vadd.f32 %v2689_v37, %v2474_v2  ;;  %8740 = vmatmul.msk.bf16.gmra.mxu0 %vm311_vm1, %v10802_v30  ;;  %v8771_v2 = vld [vmem:[%s9886_s8 + $0x12c] sm:$0xff] }
 0x28b   : > { %v3050_v34 = vadd.f32 %v2977_v50, %v2762_v56  ;;  %8690 = vmatmul.msk.bf16.gmra.mxu3 %vm311_vm1, %v10663_v42  ;;  %8790 = vmatmul.msk.bf16.gmra.mxu1 %vm311_vm1, %v2866_v22  ;;  %v10815_v56 = vld [vmem:[%s9886_s8 + $0xd6] sm:$0xff]  ;;  %v10818_v50 = vld [vmem:[%s9886_s8 + $0xde] sm:$0xff] }
 0x28c   : > { %8840 = vmatmul.msk.bf16.gmra.mxu2 %vm311_vm1, %v3154_v60  ;;  %v8770_v42 = vld [vmem:[%s9886_s8 + $0x124] sm:$0xff]  ;;  %v8821_v60 = vld [vmem:[%s9886_s8 + $0x12d] sm:$0xff] }
 0x28d   : > { %v10811_v57 = vadd.f32 %v3265_v3, %v3050_v34  ;;  %v10828_v34 = vpack.c.bf16 %v10818_v50, %v10815_v56 }
 0x28e   : > { %v2404_v61 = vpop.f32.mrf.mxu3  ;;  %v2694_v32 = vpop.f32.mrf.mxu0 }
 0x28f   : > { %12394 = vst [vmem:[#allocation16_spill] sm:$0xff] %v10811_v57  ;;  %v2475_v25 = vadd.f32 %v2404_v61, %v10433_v18  ;;  %v3268_v37 = vpop.f32.mrf.mxu2 }
 0x290   : > { %v2982_v63 = vpop.f32.mrf.mxu1 }
 0x291   : > { %v2763_v13 = vadd.f32 %v2692_v35, %v2475_v25 }
 0x293   : > { %v3051_v16 = vadd.f32 %v2980_v40, %v2763_v13  ;;  %v2867_v40 = vpack.c.bf16 %v8771_v2, %v8770_v42  ;;  %v3155_v13 = vpack.c.bf16 %v8821_v60, %v8820_v6 }
 0x295   : > { %v10822_v22 = vadd.f32 %v3268_v37, %v3051_v16 }
 0x296   : > { %v2406_v3 = vpop.f32.mrf.mxu3  ;;  %v2697_v35 = vpop.f32.mrf.mxu0 }
 0x297   : > { %12395 = vst [vmem:[#allocation17_spill] sm:$0xff] %v10822_v22  ;;  %v2476_v18 = vadd.f32 %v2406_v3, %v10447_v58  ;;  %v3270_v61 = vpop.f32.mrf.mxu2  ;;  %v8822_v22 = vld [vmem:[%s9886_s8 + $0x135] sm:$0xff] }
 0x298   : > { %v2985_v25 = vpop.f32.mrf.mxu1 }
 0x299   : > { %v2764_v57 = vadd.f32 %v2694_v32, %v2476_v18  ;;  %8741 = vmatmul.msk.bf16.gmra.mxu0 %vm311_vm1, %v10828_v34  ;;  %v8773_v18 = vld [vmem:[%s9886_s8 + $0x13c] sm:$0xff] }
 0x29b   : > { %v3052_v37 = vadd.f32 %v2982_v63, %v2764_v57  ;;  %8691 = vmatmul.msk.bf16.gmra.mxu3 %vm311_vm1, %v10691_v27  ;;  %8791 = vmatmul.msk.bf16.gmra.mxu1 %vm311_vm1, %v2867_v40  ;;  %v10841_v57 = vld [vmem:[%s9886_s8 + $0xe6] sm:$0xff]  ;;  %v10844_v63 = vld [vmem:[%s9886_s8 + $0xee] sm:$0xff] }
 0x29c   : > { %8841 = vmatmul.msk.bf16.gmra.mxu2 %vm311_vm1, %v3155_v13  ;;  %v8772_v27 = vld [vmem:[%s9886_s8 + $0x134] sm:$0xff]  ;;  %v8823_v13 = vld [vmem:[%s9886_s8 + $0x13d] sm:$0xff] }
 0x29d   : > { %v10837_v58 = vadd.f32 %v3270_v61, %v3052_v37  ;;  %v10854_v37 = vpack.c.bf16 %v10844_v63, %v10841_v57 }
 0x29e   : > { %v2409_v6 = vpop.f32.mrf.mxu3  ;;  %v2699_v42 = vpop.f32.mrf.mxu0 }
 0x29f   : > { %12396 = vst [vmem:[#allocation18_spill] sm:$0xff] %v10837_v58  ;;  %v2477_v32 = vadd.f32 %v2409_v6, %v10452_v28  ;;  %v3273_v16 = vpop.f32.mrf.mxu2 }
 0x2a0   : > { %v2987_v2 = vpop.f32.mrf.mxu1 }
 0x2a1   : > { %v2765_v60 = vadd.f32 %v2697_v35, %v2477_v32 }
 0x2a3   : > { %v3053_v3 = vadd.f32 %v2985_v25, %v2765_v60  ;;  %v2868_v25 = vpack.c.bf16 %v8773_v18, %v8772_v27  ;;  %v3156_v60 = vpack.c.bf16 %v8823_v13, %v8822_v22 }
 0x2a5   : > { %v10848_v40 = vadd.f32 %v3273_v16, %v3053_v3 }
 0x2a6   : > { %v2411_v61 = vpop.f32.mrf.mxu3  ;;  %v2702_v35 = vpop.f32.mrf.mxu0 }
 0x2a7   : > { %12397 = vst [vmem:[#allocation19_spill] sm:$0xff] %v10848_v40  ;;  %v2478_v28 = vadd.f32 %v2411_v61, %v10466_v20  ;;  %v3275_v6 = vpop.f32.mrf.mxu2  ;;  %v8824_v40 = vld [vmem:[%s9886_s8 + $0x145] sm:$0xff] }
 0x2a8   : > { %v2990_v32 = vpop.f32.mrf.mxu1 }
 0x2a9   : > { %v2766_v58 = vadd.f32 %v2699_v42, %v2478_v28  ;;  %8742 = vmatmul.msk.bf16.gmra.mxu0 %vm311_vm1, %v10854_v37  ;;  %v8775_v28 = vld [vmem:[%s9886_s8 + $0x14c] sm:$0xff] }
 0x2ab   : > { %v3054_v16 = vadd.f32 %v2987_v2, %v2766_v58  ;;  %8692 = vmatmul.msk.bf16.gmra.mxu3 %vm311_vm1, %v10719_v46  ;;  %8792 = vmatmul.msk.bf16.gmra.mxu1 %vm311_vm1, %v2868_v25  ;;  %v10867_v58 = vld [vmem:[%s9886_s8 + $0xf6] sm:$0xff]  ;;  %v10870_v2 = vld [vmem:[%s9886_s8 + $0xfe] sm:$0xff] }
 0x2ac   : > { %8842 = vmatmul.msk.bf16.gmra.mxu2 %vm311_vm1, %v3156_v60  ;;  %12399 = vst [vmem:[#allocation21_spill] sm:$0xff] %v10870_v2  ;;  %v8774_v46 = vld [vmem:[%s9886_s8 + $0x144] sm:$0xff]  ;;  %v8825_v60 = vld [vmem:[%s9886_s8 + $0x14d] sm:$0xff] }
 0x2ad   : > { %v10863_v20 = vadd.f32 %v3275_v6, %v3054_v16  ;;  %v10880_v16 = vpack.c.bf16 %v10870_v2, %v10867_v58 }
 0x2ae   : > { %v2414_v22 = vpop.f32.mrf.mxu3  ;;  %v2704_v27 = vpop.f32.mrf.mxu0 }
 0x2af   : > { %12398 = vst [vmem:[#allocation20_spill] sm:$0xff] %v10863_v20  ;;  %v2479_v42 = vadd.f32 %v2414_v22, %v10471_v62  ;;  %v3278_v3 = vpop.f32.mrf.mxu2 }
 0x2b0   : > { %v2992_v18 = vpop.f32.mrf.mxu1  ;;  %12401 = vst [vmem:[#allocation23_spill] sm:$0xff] %v10880_v16 }
 0x2b1   : > { %v2767_v13 = vadd.f32 %v2702_v35, %v2479_v42 }
 0x2b3   : > { %v3055_v61 = vadd.f32 %v2990_v32, %v2767_v13  ;;  %v2869_v32 = vpack.c.bf16 %v8775_v28, %v8774_v46  ;;  %v3157_v13 = vpack.c.bf16 %v8825_v60, %v8824_v40  ;;  %v9078_v40 = vld [vmem:[%s12348_s1 + $0x3c] sm:$0xf] }
 0x2b5   : > { %v10874_v25 = vadd.f32 %v3278_v3, %v3055_v61 }
 0x2b6   : > { %v2416_v6 = vpop.f32.mrf.mxu3  ;;  %v2707_v35 = vpop.f32.mrf.mxu0 }
 0x2b7   : > { %12400 = vst [vmem:[#allocation22_spill] sm:$0xff] %v10874_v25  ;;  %v2480_v62 = vadd.f32 %v2416_v6, %v10485_v52  ;;  %v3280_v22 = vpop.f32.mrf.mxu2  ;;  %v10897_v6 = vld [vmem:[%s9886_s8 + $0x106] sm:$0xff] }
 0x2b8   : > { %v2995_v42 = vpop.f32.mrf.mxu1 }
 0x2b9   : > { %v2768_v20 = vadd.f32 %v2704_v27, %v2480_v62  ;;  %8743 = vmatmul.msk.bf16.gmra.mxu0 %vm311_vm1, %v10880_v16  ;;  %v10900_v62 = vld [vmem:[%s9886_s8 + $0x10e] sm:$0xff] }
 0x2ba   : > { %12403 = vst [vmem:[#allocation25_spill] sm:$0xff] %v10900_v62 }
 0x2bb   : > { %v3056_v3 = vadd.f32 %v2992_v18, %v2768_v20  ;;  %8693 = vmatmul.msk.bf16.gmra.mxu3 %vm311_vm1, %v10747_v31  ;;  %8793 = vmatmul.msk.bf16.gmra.mxu1 %vm311_vm1, %v2869_v32  ;;  %v4682_v20 = vsel %vm360_vm0, %v9078_v40, 0  ;;  %v8827_v32 = vld [vmem:[%s9886_s8 + $0x15d] sm:$0xff] }
 0x2bc   : > { %8843 = vmatmul.msk.bf16.gmra.mxu2 %vm311_vm1, %v3157_v13  ;;  %4691 = vmatpush.bf16.msra.mxu3 %v4682_v20  ;;  %v8776_v13 = vld [vmem:[%s9886_s8 + $0x154] sm:$0xff]  ;;  %v9128_v40 = vld [vmem:[%s12348_s1 + $0x40] sm:$0xf] }
 0x2bd   : > { %v10889_v52 = vadd.f32 %v3280_v22, %v3056_v3  ;;  %v8826_v22 = vld [vmem:[%s9886_s8 + $0x155] sm:$0xff] }
 0x2be   : > { %v2419_v27 = vpop.f32.mrf.mxu3  ;;  %v2709_v61 = vpop.f32.mrf.mxu0  ;;  %v8777_v3 = vld [vmem:[%s9886_s8 + $0x15c] sm:$0xff]  ;;  %v3158_v2 = vpack.c.bf16 %v8827_v32, %v8826_v22 }
 0x2bf   : > { %12402 = vst [vmem:[#allocation24_spill] sm:$0xff] %v10889_v52  ;;  %v2481_v18 = vadd.f32 %v2419_v27, %v10497_v33  ;;  %v3283_v31 = vpop.f32.mrf.mxu2  ;;  %v9228_v33 = vld [vmem:[%s12348_s1 + $0x48] sm:$0xf]  ;;  %v10919_v27 = vpack.c.bf16 %v10900_v62, %v10897_v6  ;;  %v2870_v25 = vpack.c.bf16 %v8777_v3, %v8776_v13 }
 0x2c0   : > { %v2997_v46 = vpop.f32.mrf.mxu1  ;;  %v5546_v20 = vsel %vm360_vm0, %v9228_v33, 0 }
 0x2c1   : > { %v2769_v28 = vadd.f32 %v2707_v35, %v2481_v18  ;;  %v9178_v35 = vld [vmem:[%s12348_s1 + $0x44] sm:$0xf]  ;;  %v4970_v18 = vsel %vm360_vm0, %v9128_v40, 0  ;;  %5555 = vmatpush.bf16.msra.mxu2 %v5546_v20  ;;  %v8996_v20 = vld [vmem:[%s9886_s8 + $0x70] sm:$0xff] }
 0x2c2   : > { %4979 = vmatpush.bf16.msra.mxu0 %v4970_v18 }
 0x2c3   : > { %v3057_v60 = vadd.f32 %v2995_v42, %v2769_v28 }
 0x2c5   : > { %v10906_v52 = vadd.f32 %v3283_v31, %v3057_v60  ;;  %v5258_v31 = vsel %vm360_vm0, %v9178_v35, 0 }
 0x2c6   : > { %v2421_v42 = vpop.f32.mrf.mxu3  ;;  %5267 = vmatpush.bf16.msra.mxu1 %v5258_v31 }
 0x2c7   : > { %12404 = vst [vmem:[#allocation26_spill] sm:$0xff] %v10906_v52  ;;  %v2482_v28 = vadd.f32 %v2421_v42, %v10520_v49  ;;  %v3285_v60 = vpop.f32.mrf.mxu2  ;;  %v2712_v52 = vpop.f32.mrf.mxu0  ;;  %v8946_v42 = vld [vmem:[%s9886_s8 + $0x6f] sm:$0xff] }
 0x2c8   : > { %v3000_v16 = vpop.f32.mrf.mxu1 }
 0x2c9   : > { %v2770_v62 = vadd.f32 %v2709_v61, %v2482_v28  ;;  %8744 = vmatmul.msk.bf16.gmra.mxu0 %vm311_vm1, %v10919_v27 }
 0x2cb   : > { %v3058_v33 = vadd.f32 %v2997_v46, %v2770_v62  ;;  %8694 = vmatmul.msk.bf16.gmra.mxu3 %vm311_vm1, %v10775_v59  ;;  %8794 = vmatmul.msk.bf16.gmra.mxu1 %vm311_vm1, %v2870_v25  ;;  %v8947_v46 = vld [vmem:[%s9886_s8 + $0x77] sm:$0xff] }
 0x2cc   : > { %8844 = vmatmul.msk.bf16.gmra.mxu2 %vm311_vm1, %v3158_v2  ;;  %v8997_v59 = vld [vmem:[%s9886_s8 + $0x78] sm:$0xff]  ;;  %v3719_v2 = vpack.c.bf16 %v10649_v21, %v10625_v38 }
 0x2cd   : > { %v10931_v49 = vadd.f32 %v3285_v60, %v3058_v33  ;;  %v4295_v33 = vpack.c.bf16 %v8997_v59, %v8996_v20  ;;  %v3720_v59 = vpack.c.bf16 %v10677_v4, %v10652_v19 }
 0x2ce   : > { %v2424_v22 = vpop.f32.mrf.mxu3 }
 0x2cf   : > { %v2483_v32 = vadd.f32 %v2424_v22, %v10527_v10  ;;  %v3288_v13 = vpop.f32.mrf.mxu2  ;;  %v2714_v61 = vpop.f32.mrf.mxu0  ;;  %v4007_v10 = vpack.c.bf16 %v8947_v46, %v8946_v42  ;;  %v10956_v46 = vld [vmem:[%s9886_s8 + $0x80] sm:$0xff] }
 0x2d0   : > { %v3002_v3 = vpop.f32.mrf.mxu1 }
 0x2d1   : > { %v2771_v40 = vadd.f32 %v2712_v52, %v2483_v32 }
 0x2d3   : > { %v3059_v35 = vadd.f32 %v3000_v16, %v2771_v40 }
 0x2d5   : > { %v10936_v62 = vadd.f32 %v3288_v13, %v3059_v35  ;;  %v8948_v35 = vld [vmem:[%s9886_s8 + $0x7f] sm:$0xff] }
 0x2d6   : > { %v2426_v18 = vpop.f32.mrf.mxu3 }
 0x2d7   : > { %v2484_v25 = vadd.f32 %v2426_v18, %v10540_v47  ;;  %v3290_v31 = vpop.f32.mrf.mxu2  ;;  %v2717_v28 = vpop.f32.mrf.mxu0 }
 0x2d8   : > { %v3005_v60 = vpop.f32.mrf.mxu1 }
 0x2d9   : > { %v2772_v16 = vadd.f32 %v2714_v61, %v2484_v25  ;;  %8929 = vmatmul.msk.bf16.vlgmr.msrb.gmra.mxu0 %vm311_vm1, %v3719_v2 }
 0x2db   : > { %v3060_v52 = vadd.f32 %v3002_v3, %v2772_v16  ;;  %8879 = vmatmul.msk.bf16.vlgmr.msrb.gmra.mxu3 %vm311_vm1, %v10632_v36  ;;  %8979 = vmatmul.msk.bf16.vlgmr.msrb.gmra.mxu1 %vm311_vm1, %v4007_v10  ;;  %v8949_v3 = vld [vmem:[%s9886_s8 + $0x87] sm:$0xff] }
 0x2dc   : > { %9029 = vmatmul.msk.bf16.vlgmr.msrb.gmra.mxu2 %vm311_vm1, %v4295_v33  ;;  %v8999_v36 = vld [vmem:[%s9886_s8 + $0x88] sm:$0xff]  ;;  %v4008_v25 = vpack.c.bf16 %v8949_v3, %v8948_v35  ;;  %v3721_v35 = vpack.c.bf16 %v10705_v8, %v10680_v7 }
 0x2dd   : > { %v10948_v47 = vadd.f32 %v3290_v31, %v3060_v52 }
 0x2de   : > { %v2429_v38 = vpop.f32.mrf.mxu3 }
 0x2df   : > { %v2485_v21 = vadd.f32 %v2429_v38, %v10547_v51  ;;  %v3293_v22 = vpop.f32.mrf.mxu2  ;;  %v2719_v32 = vpop.f32.mrf.mxu0 }
 0x2e0   : > { %v3007_v13 = vpop.f32.mrf.mxu1 }
 0x2e1   : > { %v2773_v61 = vadd.f32 %v2717_v28, %v2485_v21  ;;  %v4296_v28 = vpack.c.bf16 %v8999_v36, %v10956_v46 }
 0x2e3   : > { %v3061_v40 = vadd.f32 %v3005_v60, %v2773_v61  ;;  %v10976_v61 = vld [vmem:[%s9886_s8 + $0x90] sm:$0xff] }
 0x2e5   : > { %v10953_v42 = vadd.f32 %v3293_v22, %v3061_v40  ;;  %v8950_v22 = vld [vmem:[%s9886_s8 + $0x8f] sm:$0xff] }
 0x2e6   : > { %v2431_v20 = vpop.f32.mrf.mxu3 }
 0x2e7   : > { %v2486_v18 = vadd.f32 %v2431_v20, %v10560_v1  ;;  %v3295_v2 = vpop.f32.mrf.mxu2  ;;  %v2722_v51 = vpop.f32.mrf.mxu0 }
 0x2e8   : > { %v3010_v31 = vpop.f32.mrf.mxu1 }
 0x2e9   : > { %v2774_v10 = vadd.f32 %v2719_v32, %v2486_v18  ;;  %8930 = vmatmul.msk.bf16.gmra.mxu0 %vm311_vm1, %v3720_v59  ;;  %v8951_v32 = vld [vmem:[%s9886_s8 + $0x97] sm:$0xff] }
 0x2ea   : > { %v4009_v20 = vpack.c.bf16 %v8951_v32, %v8950_v22 }
 0x2eb   : > { %v3062_v60 = vadd.f32 %v3007_v13, %v2774_v10  ;;  %8880 = vmatmul.msk.bf16.gmra.mxu3 %vm311_vm1, %v10660_v44  ;;  %8980 = vmatmul.msk.bf16.gmra.mxu1 %vm311_vm1, %v4008_v25  ;;  %v9001_v44 = vld [vmem:[%s9886_s8 + $0x98] sm:$0xff] }
 0x2ec   : > { %9030 = vmatmul.msk.bf16.gmra.mxu2 %vm311_vm1, %v4296_v28  ;;  %v4297_v18 = vpack.c.bf16 %v9001_v44, %v10976_v61 }
 0x2ed   : > { %v10968_v1 = vadd.f32 %v3295_v2, %v3062_v60 }
 0x2ee   : > { %v2434_v19 = vpop.f32.mrf.mxu3 }
 0x2ef   : > { %v2487_v4 = vadd.f32 %v2434_v19, %v10567_v17  ;;  %v3298_v33 = vpop.f32.mrf.mxu2  ;;  %v2724_v16 = vpop.f32.mrf.mxu0  ;;  %v8952_v19 = vld [vmem:[%s9886_s8 + $0x9f] sm:$0xff] }
 0x2f0   : > { %v3012_v52 = vpop.f32.mrf.mxu1 }
 0x2f1   : > { %v2775_v38 = vadd.f32 %v2722_v51, %v2487_v4  ;;  %v8953_v4 = vld [vmem:[%s9886_s8 + $0xa7] sm:$0xff] }
 0x2f2   : > { %v4010_v32 = vpack.c.bf16 %v8953_v4, %v8952_v19 }
 0x2f3   : > { %v3063_v21 = vadd.f32 %v3010_v31, %v2775_v38  ;;  %v3722_v38 = vpack.c.bf16 %v10733_v26, %v10708_v5 }
 0x2f5   : > { %v10973_v13 = vadd.f32 %v3298_v33, %v3063_v21 }
 0x2f6   : > { %v2436_v40 = vpop.f32.mrf.mxu3 }
 0x2f7   : > { %v2488_v3 = vadd.f32 %v2436_v40, %v10580_v11  ;;  %v3300_v36 = vpop.f32.mrf.mxu2  ;;  %v2727_v17 = vpop.f32.mrf.mxu0 }
 0x2f8   : > { %v3015_v59 = vpop.f32.mrf.mxu1 }
 0x2f9   : > { %v2776_v2 = vadd.f32 %v2724_v16, %v2488_v3  ;;  %8931 = vmatmul.msk.bf16.gmra.mxu0 %vm311_vm1, %v3721_v35  ;;  %v10996_v16 = vld [vmem:[%s9886_s8 + $0xa0] sm:$0xff] }
 0x2fb   : > { %v3064_v51 = vadd.f32 %v3012_v52, %v2776_v2  ;;  %8881 = vmatmul.msk.bf16.gmra.mxu3 %vm311_vm1, %v10688_v39  ;;  %8981 = vmatmul.msk.bf16.gmra.mxu1 %vm311_vm1, %v4009_v20  ;;  %v9003_v39 = vld [vmem:[%s9886_s8 + $0xa8] sm:$0xff] }
 0x2fc   : > { %9031 = vmatmul.msk.bf16.gmra.mxu2 %vm311_vm1, %v4297_v18  ;;  %v4298_v40 = vpack.c.bf16 %v9003_v39, %v10996_v16  ;;  %v8954_v2 = vld [vmem:[%s9886_s8 + $0xaf] sm:$0xff] }
 0x2fd   : > { %v10988_v11 = vadd.f32 %v3300_v36, %v3064_v51  ;;  %v8955_v51 = vld [vmem:[%s9886_s8 + $0xb7] sm:$0xff] }
 0x2fe   : > { %v2439_v7 = vpop.f32.mrf.mxu3 }
 0x2ff   : > { %v2489_v8 = vadd.f32 %v2439_v7, %v10587_v24  ;;  %v3303_v25 = vpop.f32.mrf.mxu2  ;;  %v2729_v31 = vpop.f32.mrf.mxu0 }
 0x300   : > { %v3017_v28 = vpop.f32.mrf.mxu1 }
 0x301   : > { %v2777_v10 = vadd.f32 %v2727_v17, %v2489_v8  ;;  %v11016_v8 = vld [vmem:[%s9886_s8 + $0xb0] sm:$0xff] }
 0x303   : > { %v3065_v60 = vadd.f32 %v3015_v59, %v2777_v10 }
 0x305   : > { %v10993_v33 = vadd.f32 %v3303_v25, %v3065_v60  ;;  %v4011_v60 = vpack.c.bf16 %v8955_v51, %v8954_v2 }
 0x306   : > { %v2441_v52 = vpop.f32.mrf.mxu3 }
 0x307   : > { %v2490_v21 = vadd.f32 %v2441_v52, %v10600_v0  ;;  %v3305_v22 = vpop.f32.mrf.mxu2  ;;  %v2732_v24 = vpop.f32.mrf.mxu0 }
 0x308   : > { %v3020_v44 = vpop.f32.mrf.mxu1 }
 0x309   : > { %v2778_v35 = vadd.f32 %v2729_v31, %v2490_v21  ;;  %8932 = vmatmul.msk.bf16.gmra.mxu0 %vm311_vm1, %v3722_v38  ;;  %v3723_v31 = vpack.c.bf16 %v10761_v14, %v10736_v23 }
 0x30b   : > { %v3066_v3 = vadd.f32 %v3017_v28, %v2778_v35  ;;  %8882 = vmatmul.msk.bf16.gmra.mxu3 %vm311_vm1, %v10716_v45  ;;  %8982 = vmatmul.msk.bf16.gmra.mxu1 %vm311_vm1, %v4010_v32  ;;  %v9005_v45 = vld [vmem:[%s9886_s8 + $0xb8] sm:$0xff] }
 0x30c   : > { %9032 = vmatmul.msk.bf16.gmra.mxu2 %vm311_vm1, %v4298_v40  ;;  %v4299_v4 = vpack.c.bf16 %v9005_v45, %v11016_v8  ;;  %v8957_v40 = vld [vmem:[%s9886_s8 + $0xc7] sm:$0xff] }
 0x30d   : > { %v11008_v0 = vadd.f32 %v3305_v22, %v3066_v3  ;;  %v11036_v3 = vld [vmem:[%s9886_s8 + $0xc0] sm:$0xff] }
 0x30e   : > { %v2444_v5 = vpop.f32.mrf.mxu3 }
 0x30f   : > { %v2491_v26 = vadd.f32 %v2444_v5, %v10607_v9  ;;  %v3308_v36 = vpop.f32.mrf.mxu2  ;;  %v2734_v17 = vpop.f32.mrf.mxu0 }
 0x310   : > { %v3022_v20 = vpop.f32.mrf.mxu1 }
 0x311   : > { %v2779_v59 = vadd.f32 %v2732_v24, %v2491_v26  ;;  %v3724_v26 = vpack.c.bf16 %v10789_v29, %v10764_v15 }
 0x313   : > { %v3067_v18 = vadd.f32 %v3020_v44, %v2779_v59  ;;  %v8956_v44 = vld [vmem:[%s9886_s8 + $0xbf] sm:$0xff] }
 0x315   : > { %v11013_v7 = vadd.f32 %v3308_v36, %v3067_v18 }
 0x316   : > { %v2446_v25 = vpop.f32.mrf.mxu3 }
 0x317   : > { %v2492_v28 = vadd.f32 %v2446_v25, %v10620_v12  ;;  %v3310_v10 = vpop.f32.mrf.mxu2  ;;  %v2737_v9 = vpop.f32.mrf.mxu0 }
 0x318   : > { %v3025_v19 = vpop.f32.mrf.mxu1 }
 0x319   : > { %v2780_v39 = vadd.f32 %v2734_v17, %v2492_v28  ;;  %8933 = vmatmul.msk.bf16.gmra.mxu0 %vm311_vm1, %v3723_v31 }
 0x31b   : > { %v3068_v52 = vadd.f32 %v3022_v20, %v2780_v39  ;;  %8883 = vmatmul.msk.bf16.gmra.mxu3 %vm311_vm1, %v10744_v41  ;;  %8983 = vmatmul.msk.bf16.gmra.mxu1 %vm311_vm1, %v4011_v60  ;;  %v11039_v41 = vld [vmem:[%s9886_s8 + $0xc8] sm:$0xff]  ;;  %v4012_v20 = vpack.c.bf16 %v8957_v40, %v8956_v44  ;;  %v8959_v60 = vld [vmem:[%s9886_s8 + $0xd7] sm:$0xff] }
 0x31c   : > { %9033 = vmatmul.msk.bf16.gmra.mxu2 %vm311_vm1, %v4299_v4  ;;  %v4300_v18 = vpack.c.bf16 %v11039_v41, %v11036_v3  ;;  %v11059_v4 = vld [vmem:[%s9886_s8 + $0xd0] sm:$0xff]  ;;  %v12406_v40 = vld [vmem:[#allocation7_spill] sm:$0xff] }
 0x31d   : > { %v11028_v12 = vadd.f32 %v3310_v10, %v3068_v52  ;;  %v3725_v52 = vpack.c.bf16 %v10815_v56, %v10792_v48 }
 0x31e   : > { %v2449_v23 = vpop.f32.mrf.mxu3 }
 0x31f   : > { %v2493_v14 = vadd.f32 %v2449_v23, %v10627_v53  ;;  %v3313_v38 = vpop.f32.mrf.mxu2  ;;  %v2739_v21 = vpop.f32.mrf.mxu0  ;;  %v12405_v23 = vld [vmem:[#allocation6_spill] sm:$0xff] }
 0x320   : > { %v3027_v22 = vpop.f32.mrf.mxu1 }
 0x321   : > { %v2781_v24 = vadd.f32 %v2737_v9, %v2493_v14  ;;  %v8958_v9 = vld [vmem:[%s9886_s8 + $0xcf] sm:$0xff] }
 0x323   : > { %v3069_v32 = vadd.f32 %v3025_v19, %v2781_v24 }
 0x325   : > { %v11033_v35 = vadd.f32 %v3313_v38, %v3069_v32 }
 0x326   : > { %v2451_v5 = vpop.f32.mrf.mxu3 }
 0x327   : > { %v2494_v36 = vadd.f32 %v2451_v5, %v10645_v54  ;;  %v3315_v53 = vpop.f32.mrf.mxu2  ;;  %v2742_v17 = vpop.f32.mrf.mxu0 }
 0x328   : > { %v3030_v59 = vpop.f32.mrf.mxu1 }
 0x329   : > { %v2782_v2 = vadd.f32 %v2739_v21, %v2494_v36  ;;  %8934 = vmatmul.msk.bf16.gmra.mxu0 %vm311_vm1, %v3724_v26  ;;  %v4013_v21 = vpack.c.bf16 %v8959_v60, %v8958_v9 }
 0x32b   : > { %v3070_v51 = vadd.f32 %v3027_v22, %v2782_v2  ;;  %8884 = vmatmul.msk.bf16.gmra.mxu3 %vm311_vm1, %v10772_v43  ;;  %8984 = vmatmul.msk.bf16.gmra.mxu1 %vm311_vm1, %v4012_v20  ;;  %v11062_v43 = vld [vmem:[%s9886_s8 + $0xd8] sm:$0xff] }
 0x32c   : > { %9034 = vmatmul.msk.bf16.gmra.mxu2 %vm311_vm1, %v4300_v18  ;;  %v4301_v24 = vpack.c.bf16 %v11062_v43, %v11059_v4  ;;  %v8961_v18 = vld [vmem:[%s9886_s8 + $0xe7] sm:$0xff] }
 0x32d   : > { %v11051_v54 = vadd.f32 %v3315_v53, %v3070_v51  ;;  %v11082_v51 = vld [vmem:[%s9886_s8 + $0xe0] sm:$0xff] }
 0x32e   : > { %v2454_v15 = vpop.f32.mrf.mxu3 }
 0x32f   : > { %v2495_v29 = vadd.f32 %v2454_v15, %v10654_v55  ;;  %v3318_v45 = vpop.f32.mrf.mxu2  ;;  %v2744_v25 = vpop.f32.mrf.mxu0 }
 0x330   : > { %v3032_v31 = vpop.f32.mrf.mxu1 }
 0x331   : > { %v2783_v28 = vadd.f32 %v2742_v17, %v2495_v29  ;;  %v3726_v29 = vpack.c.bf16 %v10841_v57, %v10818_v50 }
 0x333   : > { %v3071_v10 = vadd.f32 %v3030_v59, %v2783_v28  ;;  %v8960_v59 = vld [vmem:[%s9886_s8 + $0xdf] sm:$0xff] }
 0x335   : > { %v11056_v19 = vadd.f32 %v3318_v45, %v3071_v10  ;;  %v12407_v45 = vld [vmem:[#allocation8_spill] sm:$0xff]  ;;  %v4014_v10 = vpack.c.bf16 %v8961_v18, %v8960_v59 }
 0x336   : > { %v2456_v39 = vpop.f32.mrf.mxu3 }
 0x337   : > { %v2496_v14 = vadd.f32 %v2456_v39, %v12405_v23  ;;  %v3320_v55 = vpop.f32.mrf.mxu2  ;;  %v2747_v38 = vpop.f32.mrf.mxu0  ;;  %v12408_v23 = vld [vmem:[#allocation9_spill] sm:$0xff] }
 0x338   : > { %v3035_v22 = vpop.f32.mrf.mxu1 }
 0x339   : > { %v2784_v32 = vadd.f32 %v2744_v25, %v2496_v14  ;;  %8935 = vmatmul.msk.bf16.gmra.mxu0 %vm311_vm1, %v3725_v52 }
 0x33b   : > { %v3072_v44 = vadd.f32 %v3032_v31, %v2784_v32  ;;  %8885 = vmatmul.msk.bf16.gmra.mxu3 %vm311_vm1, %v10802_v30  ;;  %8985 = vmatmul.msk.bf16.gmra.mxu1 %vm311_vm1, %v4013_v21  ;;  %v11085_v30 = vld [vmem:[%s9886_s8 + $0xe8] sm:$0xff] }
 0x33c   : > { %9035 = vmatmul.msk.bf16.gmra.mxu2 %vm311_vm1, %v4301_v24  ;;  %v4302_v60 = vpack.c.bf16 %v11085_v30, %v11082_v51  ;;  %v8962_v32 = vld [vmem:[%s9886_s8 + $0xef] sm:$0xff] }
 0x33d   : > { %v11074_v48 = vadd.f32 %v3320_v55, %v3072_v44  ;;  %v8963_v44 = vld [vmem:[%s9886_s8 + $0xf7] sm:$0xff] }
 0x33e   : > { %v2459_v56 = vpop.f32.mrf.mxu3  ;;  %v4015_v59 = vpack.c.bf16 %v8963_v44, %v8962_v32 }
 0x33f   : > { %v2497_v5 = vadd.f32 %v2459_v56, %v12406_v40  ;;  %v3323_v26 = vpop.f32.mrf.mxu2  ;;  %v2749_v36 = vpop.f32.mrf.mxu0  ;;  %v11105_v40 = vld [vmem:[%s9886_s8 + $0xf0] sm:$0xff] }
 0x340   : > { %v3037_v53 = vpop.f32.mrf.mxu1 }
 0x341   : > { %v2785_v17 = vadd.f32 %v2747_v38, %v2497_v5 }
 0x343   : > { %v3073_v20 = vadd.f32 %v3035_v22, %v2785_v17 }
 0x345   : > { %v11079_v2 = vadd.f32 %v3323_v26, %v3073_v20  ;;  %v3727_v26 = vpack.c.bf16 %v10867_v58, %v10844_v63 }
 0x346   : > { %v2461_v15 = vpop.f32.mrf.mxu3 }
 0x347   : > { %v2498_v25 = vadd.f32 %v2461_v15, %v12407_v45  ;;  %v3325_v31 = vpop.f32.mrf.mxu2  ;;  %v2752_v28 = vpop.f32.mrf.mxu0 }
 0x348   : > { %v3040_v9 = vpop.f32.mrf.mxu1 }
 0x349   : > { %v2786_v39 = vadd.f32 %v2749_v36, %v2498_v25  ;;  %8936 = vmatmul.msk.bf16.gmra.mxu0 %vm311_vm1, %v3726_v29  ;;  %v12409_v36 = vld [vmem:[#allocation10_spill] sm:$0xff]  ;;  %v12410_v25 = vld [vmem:[#allocation11_spill] sm:$0xff] }
 0x34b   : > { %v3074_v52 = vadd.f32 %v3037_v53, %v2786_v39  ;;  %8886 = vmatmul.msk.bf16.gmra.mxu3 %vm311_vm1, %v10828_v34  ;;  %8986 = vmatmul.msk.bf16.gmra.mxu1 %vm311_vm1, %v4014_v10  ;;  %v11108_v34 = vld [vmem:[%s9886_s8 + $0xf8] sm:$0xff] }
 0x34c   : > { %9036 = vmatmul.msk.bf16.gmra.mxu2 %vm311_vm1, %v4302_v60  ;;  %v4303_v15 = vpack.c.bf16 %v11108_v34, %v11105_v40 }
 0x34d   : > { %v11097_v50 = vadd.f32 %v3325_v31, %v3074_v52  ;;  %v8964_v52 = vld [vmem:[%s9886_s8 + $0xff] sm:$0xff] }
 0x34e   : > { %v2464_v57 = vpop.f32.mrf.mxu3 }
 0x34f   : > { %v2499_v14 = vadd.f32 %v2464_v57, %v12408_v23  ;;  %v3328_v55 = vpop.f32.mrf.mxu2  ;;  %v2754_v38 = vpop.f32.mrf.mxu0  ;;  %v8965_v57 = vld [vmem:[%s9886_s8 + $0x107] sm:$0xff] }
 0x350   : > { %v3042_v21 = vpop.f32.mrf.mxu1 }
 0x351   : > { %v2787_v22 = vadd.f32 %v2752_v28, %v2499_v14  ;;  %v11128_v14 = vld [vmem:[%s9886_s8 + $0x100] sm:$0xff] }
 0x353   : > { %v3075_v24 = vadd.f32 %v3040_v9, %v2787_v22  ;;  %v12413_v22 = vld [vmem:[#allocation12_spill] sm:$0xff] }
 0x355   : > { %v11102_v56 = vadd.f32 %v3328_v55, %v3075_v24 }
 0x356   : > { %v2466_v5 = vpop.f32.mrf.mxu3 }
 0x357   : > { %v2500_v53 = vadd.f32 %v2466_v5, %v12409_v36  ;;  %v3330_v17 = vpop.f32.mrf.mxu2  ;;  %v3829_v20 = vpop.f32.mrf.mxu0  ;;  %v4016_v5 = vpack.c.bf16 %v8965_v57, %v8964_v52  ;;  %v11155_v52 = vld [vmem:[%s9886_s8 + $0x118] sm:$0xff] }
 0x358   : > { %v4117_v18 = vpop.f32.mrf.mxu1 }
 0x359   : > { %v2788_v29 = vadd.f32 %v2754_v38, %v2500_v53  ;;  %8937 = vmatmul.msk.bf16.gmra.mxu0 %vm311_vm1, %v3727_v26  ;;  %v12412_v38 = vld [vmem:[#allocation21_spill] sm:$0xff] }
 0x35b   : > { %v3076_v45 = vadd.f32 %v3042_v21, %v2788_v29  ;;  %8887 = vmatmul.msk.bf16.gmra.mxu3 %vm311_vm1, %v10854_v37  ;;  %8987 = vmatmul.msk.bf16.gmra.mxu1 %vm311_vm1, %v4015_v59  ;;  %v11131_v37 = vld [vmem:[%s9886_s8 + $0x108] sm:$0xff]  ;;  %v3728_v21 = vpack.c.bf16 %v10897_v6, %v12412_v38 }
 0x35c   : > { %9037 = vmatmul.msk.bf16.gmra.mxu2 %vm311_vm1, %v4303_v15  ;;  %v4304_v36 = vpack.c.bf16 %v11131_v37, %v11128_v14 }
 0x35d   : > { %v11120_v63 = vadd.f32 %v3330_v17, %v3076_v45 }
 0x35e   : > { %v3541_v58 = vpop.f32.mrf.mxu3 }
 0x35f   : > { %v3621_v31 = vadd.f32 %v3541_v58, %v12410_v25  ;;  %v4405_v28 = vpop.f32.mrf.mxu2  ;;  %v3831_v10 = vpop.f32.mrf.mxu0 }
 0x360   : > { %v4119_v9 = vpop.f32.mrf.mxu1 }
 0x361   : > { %v3909_v60 = vadd.f32 %v3829_v20, %v3621_v31  ;;  %v12414_v20 = vld [vmem:[#allocation23_spill] sm:$0xff] }
 0x363   : > { %v4197_v39 = vadd.f32 %v4117_v18, %v3909_v60  ;;  %v12416_v18 = vld [vmem:[#allocation13_spill] sm:$0xff] }
 0x365   : > { %v11125_v23 = vadd.f32 %v4405_v28, %v4197_v39  ;;  %v8917_v28 = vld [vmem:[%s9886_s8 + $0x116] sm:$0xff] }
 0x366   : > { %v3543_v55 = vpop.f32.mrf.mxu3  ;;  %v11152_v39 = vld [vmem:[%s9886_s8 + $0x110] sm:$0xff] }
 0x367   : > { %12411 = vst [vmem:[#allocation6_spill] sm:$0xff] %v11125_v23  ;;  %v3622_v24 = vadd.f32 %v3543_v55, %v12413_v22  ;;  %v4407_v32 = vpop.f32.mrf.mxu2  ;;  %v3834_v44 = vpop.f32.mrf.mxu0  ;;  %v12418_v55 = vld [vmem:[#allocation25_spill] sm:$0xff] }
 0x368   : > { %v4122_v26 = vpop.f32.mrf.mxu1  ;;  %v3729_v38 = vpack.c.bf16 %v8917_v28, %v12418_v55  ;;  %v11176_v55 = vld [vmem:[%s9886_s8 + $0x120] sm:$0xff] }
 0x369   : > { %v3910_v53 = vadd.f32 %v3831_v10, %v3622_v24  ;;  %8938 = vmatmul.msk.bf16.gmra.mxu0 %vm311_vm1, %v3728_v21  ;;  %v8966_v10 = vld [vmem:[%s9886_s8 + $0x10f] sm:$0xff]  ;;  %v12419_v21 = vld [vmem:[#allocation14_spill] sm:$0xff] }
 0x36b   : > { %v4198_v17 = vadd.f32 %v4119_v9, %v3910_v53  ;;  %8888 = vmatmul.msk.bf16.gmra.mxu3 %vm311_vm1, %v12414_v20  ;;  %8988 = vmatmul.msk.bf16.gmra.mxu1 %vm311_vm1, %v4016_v5  ;;  %v8967_v9 = vld [vmem:[%s9886_s8 + $0x117] sm:$0xff] }
 0x36c   : > { %9038 = vmatmul.msk.bf16.gmra.mxu2 %vm311_vm1, %v4304_v36  ;;  %v4017_v5 = vpack.c.bf16 %v8967_v9, %v8966_v10  ;;  %v8919_v10 = vld [vmem:[%s9886_s8 + $0x126] sm:$0xff] }
 0x36d   : > { %v11143_v6 = vadd.f32 %v4407_v32, %v4198_v17  ;;  %v8968_v9 = vld [vmem:[%s9886_s8 + $0x11f] sm:$0xff] }
 0x36e   : > { %v3546_v59 = vpop.f32.mrf.mxu3 }
 0x36f   : > { %12415 = vst [vmem:[#allocation7_spill] sm:$0xff] %v11143_v6  ;;  %v3623_v15 = vadd.f32 %v3546_v59, %v12416_v18  ;;  %v4410_v29 = vpop.f32.mrf.mxu2  ;;  %v3836_v45 = vpop.f32.mrf.mxu0  ;;  %v12421_v59 = vld [vmem:[#allocation15_spill] sm:$0xff] }
 0x370   : > { %v4124_v58 = vpop.f32.mrf.mxu1 }
 0x371   : > { %v3911_v25 = vadd.f32 %v3834_v44, %v3623_v15  ;;  %v4305_v44 = vpack.c.bf16 %v11155_v52, %v11152_v39 }
 0x373   : > { %v4199_v31 = vadd.f32 %v4122_v26, %v3911_v25 }
 0x375   : > { %v11149_v60 = vadd.f32 %v4410_v29, %v4199_v31 }
 0x376   : > { %v3548_v57 = vpop.f32.mrf.mxu3 }
 0x377   : > { %12417 = vst [vmem:[#allocation8_spill] sm:$0xff] %v11149_v60  ;;  %v3624_v22 = vadd.f32 %v3548_v57, %v12419_v21  ;;  %v4412_v24 = vpop.f32.mrf.mxu2  ;;  %v3839_v32 = vpop.f32.mrf.mxu0 }
 0x378   : > { %v4127_v36 = vpop.f32.mrf.mxu1 }
 0x379   : > { %v3912_v26 = vadd.f32 %v3836_v45, %v3624_v22  ;;  %8939 = vmatmul.msk.bf16.gmra.mxu0 %vm311_vm1, %v3729_v38  ;;  %v11179_v38 = vld [vmem:[%s9886_s8 + $0x128] sm:$0xff] }
 0x37b   : > { %v4200_v53 = vadd.f32 %v4124_v58, %v3912_v26  ;;  %8889 = vmatmul.msk.bf16.gmra.mxu3 %vm311_vm1, %v10919_v27  ;;  %8989 = vmatmul.msk.bf16.gmra.mxu1 %vm311_vm1, %v4017_v5  ;;  %v8869_v58 = vld [vmem:[%s9886_s8 + $0x11e] sm:$0xff]  ;;  %v8969_v27 = vld [vmem:[%s9886_s8 + $0x127] sm:$0xff] }
 0x37c   : > { %9039 = vmatmul.msk.bf16.gmra.mxu2 %vm311_vm1, %v4305_v44  ;;  %v3730_v22 = vpack.c.bf16 %v8919_v10, %v8869_v58 }
 0x37d   : > { %v11166_v17 = vadd.f32 %v4412_v24, %v4200_v53  ;;  %v12423_v24 = vld [vmem:[#allocation16_spill] sm:$0xff]  ;;  %v3442_v53 = vpack.c.bf16 %v8869_v58, %v8917_v28 }
 0x37e   : > { %v3551_v20 = vpop.f32.mrf.mxu3 }
 0x37f   : > { %12420 = vst [vmem:[#allocation9_spill] sm:$0xff] %v11166_v17  ;;  %v3625_v18 = vadd.f32 %v3551_v20, %v12421_v59  ;;  %v4415_v15 = vpop.f32.mrf.mxu2  ;;  %v3841_v29 = vpop.f32.mrf.mxu0  ;;  %v4018_v20 = vpack.c.bf16 %v8969_v27, %v8968_v9 }
 0x380   : > { %v4129_v45 = vpop.f32.mrf.mxu1 }
 0x381   : > { %v3913_v25 = vadd.f32 %v3839_v32, %v3625_v18 }
 0x383   : > { %v4201_v31 = vadd.f32 %v4127_v36, %v3913_v25  ;;  %v4306_v36 = vpack.c.bf16 %v11179_v38, %v11176_v55  ;;  %v12425_v25 = vld [vmem:[#allocation17_spill] sm:$0xff] }
 0x385   : > { %v11173_v57 = vadd.f32 %v4415_v15, %v4201_v31 }
 0x386   : > { %v3553_v21 = vpop.f32.mrf.mxu3 }
 0x387   : > { %12422 = vst [vmem:[#allocation10_spill] sm:$0xff] %v11173_v57  ;;  %v3626_v5 = vadd.f32 %v3553_v21, %v12423_v24  ;;  %v4417_v44 = vpop.f32.mrf.mxu2  ;;  %v3844_v26 = vpop.f32.mrf.mxu0  ;;  %v8970_v24 = vld [vmem:[%s9886_s8 + $0x12f] sm:$0xff] }
 0x388   : > { %v4132_v32 = vpop.f32.mrf.mxu1 }
 0x389   : > { %v3914_v59 = vadd.f32 %v3841_v29, %v3626_v5  ;;  %8940 = vmatmul.msk.bf16.gmra.mxu0 %vm311_vm1, %v3730_v22  ;;  %v8871_v22 = vld [vmem:[%s9886_s8 + $0x12e] sm:$0xff]  ;;  %v8971_v5 = vld [vmem:[%s9886_s8 + $0x137] sm:$0xff] }
 0x38a   : > { %v3443_v57 = vpack.c.bf16 %v8871_v22, %v8919_v10  ;;  %v4019_v17 = vpack.c.bf16 %v8971_v5, %v8970_v24 }
 0x38b   : > { %v4202_v18 = vadd.f32 %v4129_v45, %v3914_v59  ;;  %8890 = vmatmul.msk.bf16.gmra.mxu3 %vm311_vm1, %v3442_v53  ;;  %8990 = vmatmul.msk.bf16.gmra.mxu1 %vm311_vm1, %v4018_v20  ;;  %v8921_v45 = vld [vmem:[%s9886_s8 + $0x136] sm:$0xff] }
 0x38c   : > { %9040 = vmatmul.msk.bf16.gmra.mxu2 %vm311_vm1, %v4306_v36  ;;  %v11198_v20 = vld [vmem:[%s9886_s8 + $0x130] sm:$0xff]  ;;  %v11201_v59 = vld [vmem:[%s9886_s8 + $0x138] sm:$0xff]  ;;  %v3731_v36 = vpack.c.bf16 %v8921_v45, %v8871_v22 }
 0x38d   : > { %v11188_v28 = vadd.f32 %v4417_v44, %v4202_v18  ;;  %v12427_v18 = vld [vmem:[#allocation18_spill] sm:$0xff] }
 0x38e   : > { %v3556_v15 = vpop.f32.mrf.mxu3 }
 0x38f   : > { %12424 = vst [vmem:[#allocation11_spill] sm:$0xff] %v11188_v28  ;;  %v3627_v31 = vadd.f32 %v3556_v15, %v12425_v25  ;;  %v4420_v58 = vpop.f32.mrf.mxu2  ;;  %v3846_v29 = vpop.f32.mrf.mxu0 }
 0x390   : > { %v4134_v9 = vpop.f32.mrf.mxu1 }
 0x391   : > { %v3915_v27 = vadd.f32 %v3844_v26, %v3627_v31 }
 0x393   : > { %v4203_v21 = vadd.f32 %v4132_v32, %v3915_v27  ;;  %v4307_v32 = vpack.c.bf16 %v11201_v59, %v11198_v20 }
 0x395   : > { %v11195_v53 = vadd.f32 %v4420_v58, %v4203_v21  ;;  %v12429_v21 = vld [vmem:[#allocation19_spill] sm:$0xff] }
 0x396   : > { %v3558_v44 = vpop.f32.mrf.mxu3 }
 0x397   : > { %12426 = vst [vmem:[#allocation21_spill] sm:$0xff] %v11195_v53  ;;  %v3628_v28 = vadd.f32 %v3558_v44, %v12427_v18  ;;  %v4422_v15 = vpop.f32.mrf.mxu2  ;;  %v3849_v25 = vpop.f32.mrf.mxu0  ;;  %v8972_v18 = vld [vmem:[%s9886_s8 + $0x13f] sm:$0xff]  ;;  %v11223_v53 = vld [vmem:[%s9886_s8 + $0x148] sm:$0xff] }
 0x398   : > { %v4137_v26 = vpop.f32.mrf.mxu1  ;;  %12431 = vst [vmem:[#allocation13_spill] sm:$0xff] %v11223_v53 }
 0x399   : > { %v3916_v31 = vadd.f32 %v3846_v29, %v3628_v28  ;;  %8941 = vmatmul.msk.bf16.gmra.mxu0 %vm311_vm1, %v3731_v36  ;;  %v8873_v36 = vld [vmem:[%s9886_s8 + $0x13e] sm:$0xff] }
 0x39a   : > { %v3444_v60 = vpack.c.bf16 %v8873_v36, %v8921_v45 }
 0x39b   : > { %v4204_v58 = vadd.f32 %v4134_v9, %v3916_v31  ;;  %8891 = vmatmul.msk.bf16.gmra.mxu3 %vm311_vm1, %v3443_v57  ;;  %8991 = vmatmul.msk.bf16.gmra.mxu1 %vm311_vm1, %v4019_v17  ;;  %v8923_v9 = vld [vmem:[%s9886_s8 + $0x146] sm:$0xff] }
 0x39c   : > { %9041 = vmatmul.msk.bf16.gmra.mxu2 %vm311_vm1, %v4307_v32  ;;  %v8973_v57 = vld [vmem:[%s9886_s8 + $0x147] sm:$0xff]  ;;  %v3732_v32 = vpack.c.bf16 %v8923_v9, %v8873_v36 }
 0x39d   : > { %v11210_v10 = vadd.f32 %v4422_v15, %v4204_v58  ;;  %v11220_v17 = vld [vmem:[%s9886_s8 + $0x140] sm:$0xff]  ;;  %v12432_v58 = vld [vmem:[#allocation20_spill] sm:$0xff]  ;;  %v4020_v6 = vpack.c.bf16 %v8973_v57, %v8972_v18 }
 0x39e   : > { %v3561_v27 = vpop.f32.mrf.mxu3 }
 0x39f   : > { %12428 = vst [vmem:[#allocation12_spill] sm:$0xff] %v11210_v10  ;;  %v3629_v22 = vadd.f32 %v3561_v27, %v12429_v21  ;;  %v4425_v24 = vpop.f32.mrf.mxu2  ;;  %v3851_v28 = vpop.f32.mrf.mxu0 }
 0x3a0   : > { %v4139_v29 = vpop.f32.mrf.mxu1 }
 0x3a1   : > { %v3917_v5 = vadd.f32 %v3849_v25, %v3629_v22 }
 0x3a3   : > { %v4205_v44 = vadd.f32 %v4137_v26, %v3917_v5  ;;  %v4308_v26 = vpack.c.bf16 %v11223_v53, %v11220_v17 }
 0x3a5   : > { %v11217_v31 = vadd.f32 %v4425_v24, %v4205_v44  ;;  %v12434_v44 = vld [vmem:[#allocation22_spill] sm:$0xff] }
 0x3a6   : > { %v3563_v15 = vpop.f32.mrf.mxu3 }
 0x3a7   : > { %12430 = vst [vmem:[#allocation23_spill] sm:$0xff] %v11217_v31  ;;  %v3630_v10 = vadd.f32 %v3563_v15, %v12432_v58  ;;  %v4427_v27 = vpop.f32.mrf.mxu2  ;;  %v3854_v21 = vpop.f32.mrf.mxu0  ;;  %v8974_v58 = vld [vmem:[%s9886_s8 + $0x14f] sm:$0xff]  ;;  %v11245_v31 = vld [vmem:[%s9886_s8 + $0x158] sm:$0xff] }
 0x3a8   : > { %v4142_v25 = vpop.f32.mrf.mxu1  ;;  %12437 = vst [vmem:[#allocation16_spill] sm:$0xff] %v11245_v31 }
 0x3a9   : > { %v3918_v22 = vadd.f32 %v3851_v28, %v3630_v10  ;;  %8942 = vmatmul.msk.bf16.gmra.mxu0 %vm311_vm1, %v3732_v32  ;;  %v8875_v32 = vld [vmem:[%s9886_s8 + $0x14e] sm:$0xff] }
 0x3aa   : > { %v3445_v23 = vpack.c.bf16 %v8875_v32, %v8923_v9 }
 0x3ab   : > { %v4206_v24 = vadd.f32 %v4139_v29, %v3918_v22  ;;  %8892 = vmatmul.msk.bf16.gmra.mxu3 %vm311_vm1, %v3444_v60  ;;  %8992 = vmatmul.msk.bf16.gmra.mxu1 %vm311_vm1, %v4020_v6  ;;  %v8925_v29 = vld [vmem:[%s9886_s8 + $0x156] sm:$0xff] }
 0x3ac   : > { %9042 = vmatmul.msk.bf16.gmra.mxu2 %vm311_vm1, %v4308_v26  ;;  %v8975_v60 = vld [vmem:[%s9886_s8 + $0x157] sm:$0xff]  ;;  %v3733_v26 = vpack.c.bf16 %v8925_v29, %v8875_v32 }
 0x3ad   : > { %v11232_v45 = vadd.f32 %v4427_v27, %v4206_v24  ;;  %v11242_v6 = vld [vmem:[%s9886_s8 + $0x150] sm:$0xff]  ;;  %v4021_v53 = vpack.c.bf16 %v8975_v60, %v8974_v58 }
 0x3ae   : > { %v3566_v5 = vpop.f32.mrf.mxu3  ;;  %12436 = vst [vmem:[#allocation15_spill] sm:$0xff] %v11242_v6  ;;  %v12438_v24 = vld [vmem:[#allocation24_spill] sm:$0xff] }
 0x3af   : > { %12433 = vst [vmem:[#allocation25_spill] sm:$0xff] %v11232_v45  ;;  %v3631_v36 = vadd.f32 %v3566_v5, %v12434_v44  ;;  %v4430_v18 = vpop.f32.mrf.mxu2  ;;  %v3856_v10 = vpop.f32.mrf.mxu0 }
 0x3b0   : > { %v4144_v28 = vpop.f32.mrf.mxu1 }
 0x3b1   : > { %v3919_v57 = vadd.f32 %v3854_v21, %v3631_v36 }
 0x3b3   : > { %v4207_v15 = vadd.f32 %v4142_v25, %v3919_v57  ;;  %v4309_v25 = vpack.c.bf16 %v11245_v31, %v11242_v6  ;;  %v12440_v57 = vld [vmem:[#allocation26_spill] sm:$0xff] }
 0x3b5   : > { %v11239_v22 = vadd.f32 %v4430_v18, %v4207_v15 }
 0x3b6   : > { %v3568_v27 = vpop.f32.mrf.mxu3 }
 0x3b7   : > { %12435 = vst [vmem:[#allocation14_spill] sm:$0xff] %v11239_v22  ;;  %v3632_v45 = vadd.f32 %v3568_v27, %v12438_v24  ;;  %v4432_v5 = vpop.f32.mrf.mxu2  ;;  %v3859_v44 = vpop.f32.mrf.mxu0  ;;  %v8877_v27 = vld [vmem:[%s9886_s8 + $0x15e] sm:$0xff] }
 0x3b8   : > { %v4147_v21 = vpop.f32.mrf.mxu1  ;;  %v11264_v24 = vld [vmem:[%s9886_s8 + $0x160] sm:$0xff] }
 0x3b9   : > { %v3920_v36 = vadd.f32 %v3856_v10, %v3632_v45  ;;  %8943 = vmatmul.msk.bf16.gmra.mxu0 %vm311_vm1, %v3733_v26  ;;  %v9278_v45 = vld [vmem:[%s12348_s1 + $0x4c] sm:$0xf] }
 0x3ba   : > { %v8927_v26 = vld [vmem:[%s9886_s8 + $0x166] sm:$0xff] }
 0x3bb   : > { %v4208_v18 = vadd.f32 %v4144_v28, %v3920_v36  ;;  %8893 = vmatmul.msk.bf16.gmra.mxu3 %vm311_vm1, %v3445_v23  ;;  %8993 = vmatmul.msk.bf16.gmra.mxu1 %vm311_vm1, %v4021_v53  ;;  %v5834_v28 = vsel %vm360_vm0, %v9278_v45, 0  ;;  %v8977_v36 = vld [vmem:[%s9886_s8 + $0x167] sm:$0xff]  ;;  %v9428_v45 = vld [vmem:[%s12348_s1 + $0x58] sm:$0xf] }
 0x3bc   : > { %9043 = vmatmul.msk.bf16.gmra.mxu2 %vm311_vm1, %v4309_v25  ;;  %5843 = vmatpush.bf16.msrb.mxu3 %v5834_v28  ;;  %v8976_v25 = vld [vmem:[%s9886_s8 + $0x15f] sm:$0xff]  ;;  %v3734_v28 = vpack.c.bf16 %v8927_v26, %v8877_v27 }
 0x3bd   : > { %v11254_v9 = vadd.f32 %v4432_v5, %v4208_v18  ;;  %v11267_v5 = vld [vmem:[%s9886_s8 + $0x168] sm:$0xff]  ;;  %v4022_v22 = vpack.c.bf16 %v8977_v36, %v8976_v25 }
 0x3be   : > { %v3571_v10 = vpop.f32.mrf.mxu3  ;;  %v4310_v6 = vpack.c.bf16 %v11267_v5, %v11264_v24 }
 0x3bf   : > { %12439 = vst [vmem:[#allocation17_spill] sm:$0xff] %v11254_v9  ;;  %v3633_v15 = vadd.f32 %v3571_v10, %v12440_v57  ;;  %v4435_v23 = vpop.f32.mrf.mxu2  ;;  %v3861_v32 = vpop.f32.mrf.mxu0  ;;  %v9328_v10 = vld [vmem:[%s12348_s1 + $0x50] sm:$0xf]  ;;  %v6698_v57 = vsel %vm360_vm0, %v9428_v45, 0  ;;  %v3446_v9 = vpack.c.bf16 %v8877_v27, %v8925_v29 }
 0x3c0   : > { %v4149_v53 = vpop.f32.mrf.mxu1  ;;  %6707 = vmatpush.bf16.msrb.mxu2 %v6698_v57  ;;  %v9146_v57 = vld [vmem:[%s9886_s8 + $0x7a] sm:$0xff] }
 0x3c1   : > { %v3921_v58 = vadd.f32 %v3859_v44, %v3633_v15  ;;  %v9378_v44 = vld [vmem:[%s12348_s1 + $0x54] sm:$0xf]  ;;  %v6122_v15 = vsel %vm360_vm0, %v9328_v10, 0 }
 0x3c2   : > { %6131 = vmatpush.bf16.msrb.mxu0 %v6122_v15  ;;  %v9147_v15 = vld [vmem:[%s9886_s8 + $0x82] sm:$0xff] }
 0x3c3   : > { %v4209_v60 = vadd.f32 %v4147_v21, %v3921_v58 }
 0x3c5   : > { %v11271_v18 = vadd.f32 %v4435_v23, %v4209_v60  ;;  %v6410_v23 = vsel %vm360_vm0, %v9378_v44, 0 }
 0x3c6   : > { %v3573_v21 = vpop.f32.mrf.mxu3  ;;  %6419 = vmatpush.bf16.msrb.mxu1 %v6410_v23 }
 0x3c7   : > { %12441 = vst [vmem:[#allocation18_spill] sm:$0xff] %v11271_v18  ;;  %v3634_v58 = vadd.f32 %v3573_v21, %v10931_v49  ;;  %v4437_v60 = vpop.f32.mrf.mxu2  ;;  %v3864_v18 = vpop.f32.mrf.mxu0  ;;  %v9096_v21 = vld [vmem:[%s9886_s8 + $0x79] sm:$0xff] }
 0x3c8   : > { %v4152_v31 = vpop.f32.mrf.mxu1 }
 0x3c9   : > { %v3922_v26 = vadd.f32 %v3861_v32, %v3634_v58  ;;  %8944 = vmatmul.msk.bf16.gmra.mxu0 %vm311_vm1, %v3734_v28  ;;  %v9097_v28 = vld [vmem:[%s9886_s8 + $0x81] sm:$0xff] }
 0x3ca   : > { %v4871_v23 = vpack.c.bf16 %v9097_v28, %v9096_v21  ;;  %v9098_v21 = vld [vmem:[%s9886_s8 + $0x89] sm:$0xff]  ;;  %v9099_v28 = vld [vmem:[%s9886_s8 + $0x91] sm:$0xff] }
 0x3cb   : > { %v4210_v45 = vadd.f32 %v4149_v53, %v3922_v26  ;;  %8894 = vmatmul.msk.bf16.gmra.mxu3 %vm311_vm1, %v3446_v9  ;;  %8994 = vmatmul.msk.bf16.gmra.mxu1 %vm311_vm1, %v4022_v22  ;;  %v9046_v53 = vld [vmem:[%s9886_s8 + $0x78] sm:$0xff]  ;;  %v5159_v26 = vpack.c.bf16 %v9147_v15, %v9146_v57 }
 0x3cc   : > { %9044 = vmatmul.msk.bf16.gmra.mxu2 %vm311_vm1, %v4310_v6  ;;  %v9149_v57 = vld [vmem:[%s9886_s8 + $0x92] sm:$0xff] }
 0x3cd   : > { %v11292_v49 = vadd.f32 %v4437_v60, %v4210_v45 }
 0x3ce   : > { %v3576_v29 = vpop.f32.mrf.mxu3 }
 0x3cf   : > { %v3635_v27 = vadd.f32 %v3576_v29, %v10936_v62  ;;  %v4440_v25 = vpop.f32.mrf.mxu2  ;;  %v3866_v36 = vpop.f32.mrf.mxu0  ;;  %v4583_v62 = vpack.c.bf16 %v10956_v46, %v9046_v53  ;;  %v9148_v53 = vld [vmem:[%s9886_s8 + $0x8a] sm:$0xff] }
 0x3d0   : > { %v4154_v32 = vpop.f32.mrf.mxu1 }
 0x3d1   : > { %v3923_v10 = vadd.f32 %v3864_v18, %v3635_v27 }
 0x3d3   : > { %v4211_v44 = vadd.f32 %v4152_v31, %v3923_v10  ;;  %v5447_v31 = vpack.c.bf16 %v11059_v4, %v11039_v41 }
 0x3d5   : > { %v11300_v9 = vadd.f32 %v4440_v25, %v4211_v44 }
 0x3d6   : > { %v3578_v22 = vpop.f32.mrf.mxu3 }
 0x3d7   : > { %v3636_v6 = vadd.f32 %v3578_v22, %v10948_v47  ;;  %v4442_v58 = vpop.f32.mrf.mxu2  ;;  %v3869_v60 = vpop.f32.mrf.mxu0 }
 0x3d8   : > { %v4157_v45 = vpop.f32.mrf.mxu1 }
 0x3d9   : > { %v3924_v18 = vadd.f32 %v3866_v36, %v3636_v6  ;;  %9129 = vmatmul.msk.bf16.vlgmr.msra.gmra.mxu0 %vm311_vm1, %v4871_v23  ;;  %v4872_v23 = vpack.c.bf16 %v9099_v28, %v9098_v21  ;;  %v9150_v21 = vld [vmem:[%s9886_s8 + $0x9a] sm:$0xff]  ;;  %v9151_v28 = vld [vmem:[%s9886_s8 + $0xa2] sm:$0xff] }
 0x3db   : > { %v4212_v29 = vadd.f32 %v4154_v32, %v3924_v18  ;;  %9079 = vmatmul.msk.bf16.vlgmr.msra.gmra.mxu3 %vm311_vm1, %v4583_v62  ;;  %9179 = vmatmul.msk.bf16.vlgmr.msra.gmra.mxu1 %vm311_vm1, %v5159_v26  ;;  %v9048_v32 = vld [vmem:[%s9886_s8 + $0x88] sm:$0xff]  ;;  %v5160_v26 = vpack.c.bf16 %v9149_v57, %v9148_v53 }
 0x3dc   : > { %9229 = vmatmul.msk.bf16.vlgmr.msra.gmra.mxu2 %vm311_vm1, %v5447_v31 }
 0x3dd   : > { %v11310_v47 = vadd.f32 %v4442_v58, %v4212_v29 }
 0x3de   : > { %v3581_v46 = vpop.f32.mrf.mxu3 }
 0x3df   : > { %v3637_v27 = vadd.f32 %v3581_v46, %v10953_v42  ;;  %v4445_v41 = vpop.f32.mrf.mxu2  ;;  %v3871_v25 = vpop.f32.mrf.mxu0  ;;  %v4584_v42 = vpack.c.bf16 %v10976_v61, %v9048_v32 }
 0x3e0   : > { %v4159_v36 = vpop.f32.mrf.mxu1 }
 0x3e1   : > { %v3925_v10 = vadd.f32 %v3869_v60, %v3637_v27  ;;  %v5448_v60 = vpack.c.bf16 %v11082_v51, %v11062_v43 }
 0x3e3   : > { %v4213_v44 = vadd.f32 %v4157_v45, %v3925_v10  ;;  %v9100_v10 = vld [vmem:[%s9886_s8 + $0x99] sm:$0xff] }
 0x3e5   : > { %v11318_v15 = vadd.f32 %v4445_v41, %v4213_v44  ;;  %v9101_v44 = vld [vmem:[%s9886_s8 + $0xa1] sm:$0xff] }
 0x3e6   : > { %v3583_v22 = vpop.f32.mrf.mxu3  ;;  %v4873_v57 = vpack.c.bf16 %v9101_v44, %v9100_v10 }
 0x3e7   : > { %v3638_v6 = vadd.f32 %v3583_v22, %v10968_v1  ;;  %v4447_v58 = vpop.f32.mrf.mxu2  ;;  %v3874_v62 = vpop.f32.mrf.mxu0 }
 0x3e8   : > { %v4162_v31 = vpop.f32.mrf.mxu1 }
 0x3e9   : > { %v3926_v45 = vadd.f32 %v3871_v25, %v3638_v6  ;;  %9130 = vmatmul.msk.bf16.gmra.mxu0 %vm311_vm1, %v4872_v23 }
 0x3eb   : > { %v4214_v18 = vadd.f32 %v4159_v36, %v3926_v45  ;;  %9080 = vmatmul.msk.bf16.gmra.mxu3 %vm311_vm1, %v4584_v42  ;;  %9180 = vmatmul.msk.bf16.gmra.mxu1 %vm311_vm1, %v5160_v26  ;;  %v9050_v36 = vld [vmem:[%s9886_s8 + $0x98] sm:$0xff] }
 0x3ec   : > { %9230 = vmatmul.msk.bf16.gmra.mxu2 %vm311_vm1, %v5448_v60 }
 0x3ed   : > { %v11328_v1 = vadd.f32 %v4447_v58, %v4214_v18  ;;  %v5161_v58 = vpack.c.bf16 %v9151_v28, %v9150_v21 }
 0x3ee   : > { %v3586_v61 = vpop.f32.mrf.mxu3 }
 0x3ef   : > { %v3639_v29 = vadd.f32 %v3586_v61, %v10973_v13  ;;  %v4450_v43 = vpop.f32.mrf.mxu2  ;;  %v3876_v46 = vpop.f32.mrf.mxu0  ;;  %v4585_v13 = vpack.c.bf16 %v10996_v16, %v9050_v36 }
 0x3f0   : > { %v4164_v27 = vpop.f32.mrf.mxu1 }
 0x3f1   : > { %v3927_v41 = vadd.f32 %v3874_v62, %v3639_v29  ;;  %v5449_v62 = vpack.c.bf16 %v11105_v40, %v11085_v30 }
 0x3f3   : > { %v4215_v25 = vadd.f32 %v4162_v31, %v3927_v41  ;;  %v9152_v41 = vld [vmem:[%s9886_s8 + $0xaa] sm:$0xff] }
 0x3f5   : > { %v11336_v32 = vadd.f32 %v4450_v43, %v4215_v25  ;;  %v9102_v43 = vld [vmem:[%s9886_s8 + $0xa9] sm:$0xff]  ;;  %v9153_v25 = vld [vmem:[%s9886_s8 + $0xb2] sm:$0xff] }
 0x3f6   : > { %v3588_v53 = vpop.f32.mrf.mxu3 }
 0x3f7   : > { %v3640_v22 = vadd.f32 %v3588_v53, %v10988_v11  ;;  %v4452_v23 = vpop.f32.mrf.mxu2  ;;  %v3879_v6 = vpop.f32.mrf.mxu0 }
 0x3f8   : > { %v4167_v42 = vpop.f32.mrf.mxu1 }
 0x3f9   : > { %v3928_v26 = vadd.f32 %v3876_v46, %v3640_v22  ;;  %9131 = vmatmul.msk.bf16.gmra.mxu0 %vm311_vm1, %v4873_v57  ;;  %v9103_v46 = vld [vmem:[%s9886_s8 + $0xb1] sm:$0xff]  ;;  %v5162_v57 = vpack.c.bf16 %v9153_v25, %v9152_v41 }
 0x3fa   : > { %v4874_v36 = vpack.c.bf16 %v9103_v46, %v9102_v43 }
 0x3fb   : > { %v4216_v31 = vadd.f32 %v4164_v27, %v3928_v26  ;;  %9081 = vmatmul.msk.bf16.gmra.mxu3 %vm311_vm1, %v4585_v13  ;;  %9181 = vmatmul.msk.bf16.gmra.mxu1 %vm311_vm1, %v5161_v58  ;;  %v9052_v27 = vld [vmem:[%s9886_s8 + $0xa8] sm:$0xff] }
 0x3fc   : > { %9231 = vmatmul.msk.bf16.gmra.mxu2 %vm311_vm1, %v5449_v62 }
 0x3fd   : > { %v11346_v11 = vadd.f32 %v4452_v23, %v4216_v31  ;;  %v5450_v23 = vpack.c.bf16 %v11128_v14, %v11108_v34 }
 0x3fe   : > { %v3591_v16 = vpop.f32.mrf.mxu3 }
 0x3ff   : > { %v3641_v60 = vadd.f32 %v3591_v16, %v10993_v33  ;;  %v4455_v30 = vpop.f32.mrf.mxu2  ;;  %v3881_v45 = vpop.f32.mrf.mxu0  ;;  %v4586_v33 = vpack.c.bf16 %v11016_v8, %v9052_v27  ;;  %v9104_v16 = vld [vmem:[%s9886_s8 + $0xb9] sm:$0xff] }
 0x400   : > { %v4169_v18 = vpop.f32.mrf.mxu1 }
 0x401   : > { %v3929_v61 = vadd.f32 %v3879_v6, %v3641_v60  ;;  %v9105_v60 = vld [vmem:[%s9886_s8 + $0xc1] sm:$0xff] }
 0x402   : > { %v4875_v43 = vpack.c.bf16 %v9105_v60, %v9104_v16 }
 0x403   : > { %v4217_v29 = vadd.f32 %v4167_v42, %v3929_v61 }
 0x405   : > { %v11354_v10 = vadd.f32 %v4455_v30, %v4217_v29  ;;  %v9054_v30 = vld [vmem:[%s9886_s8 + $0xb8] sm:$0xff] }
 0x406   : > { %v3593_v44 = vpop.f32.mrf.mxu3 }
 0x407   : > { %v3642_v21 = vadd.f32 %v3593_v44, %v11008_v0  ;;  %v4457_v28 = vpop.f32.mrf.mxu2  ;;  %v3884_v53 = vpop.f32.mrf.mxu0 }
 0x408   : > { %v4172_v22 = vpop.f32.mrf.mxu1 }
 0x409   : > { %v3930_v6 = vadd.f32 %v3881_v45, %v3642_v21  ;;  %9132 = vmatmul.msk.bf16.gmra.mxu0 %vm311_vm1, %v4874_v36  ;;  %v9154_v45 = vld [vmem:[%s9886_s8 + $0xba] sm:$0xff]  ;;  %v5451_v36 = vpack.c.bf16 %v11152_v39, %v11131_v37 }
 0x40b   : > { %v4218_v13 = vadd.f32 %v4169_v18, %v3930_v6  ;;  %9082 = vmatmul.msk.bf16.gmra.mxu3 %vm311_vm1, %v4586_v33  ;;  %9182 = vmatmul.msk.bf16.gmra.mxu1 %vm311_vm1, %v5162_v57  ;;  %v9155_v18 = vld [vmem:[%s9886_s8 + $0xc2] sm:$0xff] }
 0x40c   : > { %9232 = vmatmul.msk.bf16.gmra.mxu2 %vm311_vm1, %v5450_v23  ;;  %v5163_v25 = vpack.c.bf16 %v9155_v18, %v9154_v45  ;;  %v9106_v6 = vld [vmem:[%s9886_s8 + $0xc9] sm:$0xff]  ;;  %v5452_v18 = vpack.c.bf16 %v11176_v55, %v11155_v52 }
 0x40d   : > { %v11364_v0 = vadd.f32 %v4457_v28, %v4218_v13  ;;  %v9107_v13 = vld [vmem:[%s9886_s8 + $0xd1] sm:$0xff] }
 0x40e   : > { %v3596_v8 = vpop.f32.mrf.mxu3 }
 0x40f   : > { %v3643_v58 = vadd.f32 %v3596_v8, %v11013_v7  ;;  %v4460_v34 = vpop.f32.mrf.mxu2  ;;  %v3886_v42 = vpop.f32.mrf.mxu0  ;;  %v4587_v7 = vpack.c.bf16 %v11036_v3, %v9054_v30  ;;  %v9056_v8 = vld [vmem:[%s9886_s8 + $0xc8] sm:$0xff] }
 0x410   : > { %v4174_v62 = vpop.f32.mrf.mxu1  ;;  %v4588_v60 = vpack.c.bf16 %v11059_v4, %v9056_v8  ;;  %v5453_v8 = vpack.c.bf16 %v11198_v20, %v11179_v38 }
 0x411   : > { %v3931_v26 = vadd.f32 %v3884_v53, %v3643_v58  ;;  %v9156_v58 = vld [vmem:[%s9886_s8 + $0xca] sm:$0xff] }
 0x413   : > { %v4219_v31 = vadd.f32 %v4172_v22, %v3931_v26  ;;  %v11394_v26 = vpack.c.bf16 %v9107_v13, %v9106_v6 }
 0x415   : > { %v11372_v61 = vadd.f32 %v4460_v34, %v4219_v31  ;;  %v11390_v34 = vld [vmem:[%s9886_s8 + $0xd2] sm:$0xff] }
 0x416   : > { %v3598_v29 = vpop.f32.mrf.mxu3  ;;  %v11399_v30 = vpack.c.bf16 %v11390_v34, %v9156_v58 }
 0x417   : > { %v3644_v46 = vadd.f32 %v3598_v29, %v11028_v12  ;;  %v4462_v27 = vpop.f32.mrf.mxu2  ;;  %v3889_v41 = vpop.f32.mrf.mxu0 }
 0x418   : > { %v4177_v44 = vpop.f32.mrf.mxu1 }
 0x419   : > { %v3932_v21 = vadd.f32 %v3886_v42, %v3644_v46  ;;  %9133 = vmatmul.msk.bf16.gmra.mxu0 %vm311_vm1, %v4875_v43 }
 0x41b   : > { %v4220_v28 = vadd.f32 %v4174_v62, %v3932_v21  ;;  %9083 = vmatmul.msk.bf16.gmra.mxu3 %vm311_vm1, %v4587_v7  ;;  %9183 = vmatmul.msk.bf16.gmra.mxu1 %vm311_vm1, %v5163_v25  ;;  %v9058_v21 = vld [vmem:[%s9886_s8 + $0xd8] sm:$0xff] }
 0x41c   : > { %9233 = vmatmul.msk.bf16.gmra.mxu2 %vm311_vm1, %v5451_v36  ;;  %v9109_v36 = vld [vmem:[%s9886_s8 + $0xe1] sm:$0xff] }
 0x41d   : > { %v11382_v12 = vadd.f32 %v4462_v27, %v4220_v28  ;;  %v11416_v28 = vld [vmem:[%s9886_s8 + $0xda] sm:$0xff] }
 0x41e   : > { %v3601_v3 = vpop.f32.mrf.mxu3 }
 0x41f   : > { %v3645_v53 = vadd.f32 %v3601_v3, %v11033_v35  ;;  %v4465_v37 = vpop.f32.mrf.mxu2  ;;  %v3891_v33 = vpop.f32.mrf.mxu0  ;;  %v11419_v3 = vld [vmem:[%s9886_s8 + $0xe2] sm:$0xff] }
 0x420   : > { %v4179_v57 = vpop.f32.mrf.mxu1  ;;  %v11429_v6 = vpack.c.bf16 %v11419_v3, %v11416_v28 }
 0x421   : > { %v3933_v22 = vadd.f32 %v3889_v41, %v3645_v53 }
 0x423   : > { %v4221_v23 = vadd.f32 %v4177_v44, %v3933_v22  ;;  %v9108_v44 = vld [vmem:[%s9886_s8 + $0xd9] sm:$0xff] }
 0x425   : > { %v11392_v42 = vadd.f32 %v4465_v37, %v4221_v23  ;;  %v4589_v23 = vpack.c.bf16 %v11082_v51, %v9058_v21 }
 0x426   : > { %v3603_v62 = vpop.f32.mrf.mxu3 }
 0x427   : > { %v3646_v31 = vadd.f32 %v3603_v62, %v11051_v54  ;;  %v4467_v16 = vpop.f32.mrf.mxu2  ;;  %v3894_v35 = vpop.f32.mrf.mxu0 }
 0x428   : > { %v4182_v45 = vpop.f32.mrf.mxu1 }
 0x429   : > { %v3934_v29 = vadd.f32 %v3891_v33, %v3646_v31  ;;  %9134 = vmatmul.msk.bf16.gmra.mxu0 %vm311_vm1, %v11394_v26  ;;  %v11423_v33 = vpack.c.bf16 %v9109_v36, %v9108_v44 }
 0x42b   : > { %v4222_v54 = vadd.f32 %v4179_v57, %v3934_v29  ;;  %9084 = vmatmul.msk.bf16.gmra.mxu3 %vm311_vm1, %v4588_v60  ;;  %9184 = vmatmul.msk.bf16.gmra.mxu1 %vm311_vm1, %v11399_v30  ;;  %v9111_v29 = vld [vmem:[%s9886_s8 + $0xf1] sm:$0xff] }
 0x42c   : > { %9234 = vmatmul.msk.bf16.gmra.mxu2 %vm311_vm1, %v5452_v18  ;;  %v9110_v18 = vld [vmem:[%s9886_s8 + $0xe9] sm:$0xff] }
 0x42d   : > { %v11409_v4 = vadd.f32 %v4467_v16, %v4222_v54  ;;  %v9060_v54 = vld [vmem:[%s9886_s8 + $0xe8] sm:$0xff] }
 0x42e   : > { %v3606_v43 = vpop.f32.mrf.mxu3  ;;  %v4590_v44 = vpack.c.bf16 %v11105_v40, %v9060_v54 }
 0x42f   : > { %v3647_v52 = vadd.f32 %v3606_v43, %v11056_v19  ;;  %v4470_v46 = vpop.f32.mrf.mxu2  ;;  %v3896_v27 = vpop.f32.mrf.mxu0  ;;  %v11446_v43 = vld [vmem:[%s9886_s8 + $0xea] sm:$0xff] }
 0x430   : > { %v4184_v41 = vpop.f32.mrf.mxu1 }
 0x431   : > { %v3935_v7 = vadd.f32 %v3894_v35, %v3647_v52  ;;  %v11449_v52 = vld [vmem:[%s9886_s8 + $0xf2] sm:$0xff] }
 0x432   : > { %v11459_v36 = vpack.c.bf16 %v11449_v52, %v11446_v43 }
 0x433   : > { %v4223_v25 = vadd.f32 %v4182_v45, %v3935_v7 }
 0x435   : > { %v11421_v53 = vadd.f32 %v4470_v46, %v4223_v25 }
 0x436   : > { %v3608_v37 = vpop.f32.mrf.mxu3 }
 0x437   : > { %v3648_v57 = vadd.f32 %v3608_v37, %v11074_v48  ;;  %v4472_v19 = vpop.f32.mrf.mxu2  ;;  %v3899_v22 = vpop.f32.mrf.mxu0  ;;  %v5454_v37 = vpack.c.bf16 %v11220_v17, %v11201_v59 }
 0x438   : > { %v4187_v13 = vpop.f32.mrf.mxu1 }
 0x439   : > { %v3936_v58 = vadd.f32 %v3896_v27, %v3648_v57  ;;  %9135 = vmatmul.msk.bf16.gmra.mxu0 %vm311_vm1, %v11423_v33 }
 0x43b   : > { %v4224_v48 = vadd.f32 %v4184_v41, %v3936_v58  ;;  %9085 = vmatmul.msk.bf16.gmra.mxu3 %vm311_vm1, %v4589_v23  ;;  %9185 = vmatmul.msk.bf16.gmra.mxu1 %vm311_vm1, %v11429_v6  ;;  %v11453_v41 = vpack.c.bf16 %v9111_v29, %v9110_v18 }
 0x43c   : > { %9235 = vmatmul.msk.bf16.gmra.mxu2 %vm311_vm1, %v5453_v8 }
 0x43d   : > { %v11439_v51 = vadd.f32 %v4472_v19, %v4224_v48  ;;  %v9112_v48 = vld [vmem:[%s9886_s8 + $0xf9] sm:$0xff] }
 0x43e   : > { %v3611_v62 = vpop.f32.mrf.mxu3 }
 0x43f   : > { %12442 = vst [vmem:[#allocation19_spill] sm:$0xff] %v11439_v51  ;;  %v3649_v38 = vadd.f32 %v3611_v62, %v11079_v2  ;;  %v4475_v31 = vpop.f32.mrf.mxu2  ;;  %v3901_v16 = vpop.f32.mrf.mxu0  ;;  %v9113_v62 = vld [vmem:[%s9886_s8 + $0x101] sm:$0xff] }
 0x440   : > { %v4189_v35 = vpop.f32.mrf.mxu1 }
 0x441   : > { %v3937_v60 = vadd.f32 %v3899_v22, %v3649_v38  ;;  %v9062_v38 = vld [vmem:[%s9886_s8 + $0xf8] sm:$0xff] }
 0x442   : > { %v4591_v54 = vpack.c.bf16 %v11128_v14, %v9062_v38  ;;  %v11509_v38 = vld [vmem:[%s9886_s8 + $0x112] sm:$0xff] }
 0x443   : > { %v4225_v45 = vadd.f32 %v4187_v13, %v3937_v60 }
 0x445   : > { %v11451_v46 = vadd.f32 %v4475_v31, %v4225_v45  ;;  %v11476_v31 = vld [vmem:[%s9886_s8 + $0xfa] sm:$0xff]  ;;  %v11483_v45 = vpack.c.bf16 %v9113_v62, %v9112_v48  ;;  %v9064_v48 = vld [vmem:[%s9886_s8 + $0x108] sm:$0xff] }
 0x446   : > { %v3613_v27 = vpop.f32.mrf.mxu3  ;;  %v11506_v62 = vld [vmem:[%s9886_s8 + $0x10a] sm:$0xff] }
 0x447   : > { %12443 = vst [vmem:[#allocation20_spill] sm:$0xff] %v11451_v46  ;;  %v3650_v7 = vadd.f32 %v3613_v27, %v11097_v50  ;;  %v4477_v2 = vpop.f32.mrf.mxu2  ;;  %v3904_v25 = vpop.f32.mrf.mxu0 }
 0x448   : > { %v4192_v21 = vpop.f32.mrf.mxu1 }
 0x449   : > { %v3938_v57 = vadd.f32 %v3901_v16, %v3650_v7  ;;  %9136 = vmatmul.msk.bf16.gmra.mxu0 %vm311_vm1, %v11453_v41  ;;  %v11479_v16 = vld [vmem:[%s9886_s8 + $0x102] sm:$0xff] }
 0x44a   : > { %v11489_v27 = vpack.c.bf16 %v11479_v16, %v11476_v31 }
 0x44b   : > { %v4226_v50 = vadd.f32 %v4189_v35, %v3938_v57  ;;  %9086 = vmatmul.msk.bf16.gmra.mxu3 %vm311_vm1, %v4590_v44  ;;  %9186 = vmatmul.msk.bf16.gmra.mxu1 %vm311_vm1, %v11459_v36  ;;  %v12449_v57 = vld [vmem:[#allocation6_spill] sm:$0xff] }
 0x44c   : > { %9236 = vmatmul.msk.bf16.gmra.mxu2 %vm311_vm1, %v5454_v37 }
 0x44d   : > { %v11469_v40 = vadd.f32 %v4477_v2, %v4226_v50  ;;  %v12446_v2 = vld [vmem:[#allocation13_spill] sm:$0xff] }
 0x44e   : > { %v3616_v19 = vpop.f32.mrf.mxu3 }
 0x44f   : > { %12444 = vst [vmem:[#allocation22_spill] sm:$0xff] %v11469_v40  ;;  %v3651_v59 = vadd.f32 %v3616_v19, %v11102_v56  ;;  %v4480_v22 = vpop.f32.mrf.mxu2  ;;  %v3906_v23 = vpop.f32.mrf.mxu0 }
 0x450   : > { %v4194_v13 = vpop.f32.mrf.mxu1 }
 0x451   : > { %v3939_v8 = vadd.f32 %v3904_v25, %v3651_v59  ;;  %v12447_v25 = vld [vmem:[#allocation15_spill] sm:$0xff] }
 0x452   : > { %v5455_v44 = vpack.c.bf16 %v12447_v25, %v12446_v2 }
 0x453   : > { %v4227_v58 = vadd.f32 %v4192_v21, %v3939_v8 }
 0x455   : > { %v11481_v35 = vadd.f32 %v4480_v22, %v4227_v58  ;;  %v9114_v58 = vld [vmem:[%s9886_s8 + $0x109] sm:$0xff] }
 0x456   : > { %v3618_v60 = vpop.f32.mrf.mxu3 }
 0x457   : > { %12445 = vst [vmem:[#allocation24_spill] sm:$0xff] %v11481_v35  ;;  %v3652_v18 = vadd.f32 %v3618_v60, %v11120_v63  ;;  %v4482_v56 = vpop.f32.mrf.mxu2  ;;  %v4981_v29 = vpop.f32.mrf.mxu0  ;;  %v11572_v35 = vld [vmem:[%s9886_s8 + $0x132] sm:$0xff] }
 0x458   : > { %v5269_v7 = vpop.f32.mrf.mxu1 }
 0x459   : > { %v3940_v21 = vadd.f32 %v3906_v23, %v3652_v18  ;;  %9137 = vmatmul.msk.bf16.gmra.mxu0 %vm311_vm1, %v11483_v45 }
 0x45b   : > { %v4228_v63 = vadd.f32 %v4194_v13, %v3940_v21  ;;  %9087 = vmatmul.msk.bf16.gmra.mxu3 %vm311_vm1, %v4591_v54  ;;  %9187 = vmatmul.msk.bf16.gmra.mxu1 %vm311_vm1, %v11489_v27  ;;  %v9115_v13 = vld [vmem:[%s9886_s8 + $0x111] sm:$0xff]  ;;  %v12451_v54 = vld [vmem:[#allocation7_spill] sm:$0xff] }
 0x45c   : > { %9237 = vmatmul.msk.bf16.gmra.mxu2 %vm311_vm1, %v5455_v44 }
 0x45d   : > { %v11499_v14 = vadd.f32 %v4482_v56, %v4228_v63  ;;  %v11513_v56 = vpack.c.bf16 %v9115_v13, %v9114_v58  ;;  %v4592_v63 = vpack.c.bf16 %v11152_v39, %v9064_v48 }
 0x45e   : > { %v4693_v37 = vpop.f32.mrf.mxu3 }
 0x45f   : > { %12448 = vst [vmem:[#allocation26_spill] sm:$0xff] %v11499_v14  ;;  %v4773_v50 = vadd.f32 %v4693_v37, %v12449_v57  ;;  %v5557_v19 = vpop.f32.mrf.mxu2  ;;  %v4983_v59 = vpop.f32.mrf.mxu0  ;;  %v12452_v37 = vld [vmem:[#allocation16_spill] sm:$0xff] }
 0x460   : > { %v5271_v22 = vpop.f32.mrf.mxu1  ;;  %v5456_v57 = vpack.c.bf16 %v11264_v24, %v12452_v37  ;;  %v9066_v37 = vld [vmem:[%s9886_s8 + $0x118] sm:$0xff]  ;;  %12459 = vst [vmem:[#allocation16_spill] sm:$0xff] %v11572_v35 }
 0x461   : > { %v5061_v23 = vadd.f32 %v4981_v29, %v4773_v50  ;;  %v11519_v29 = vpack.c.bf16 %v11509_v38, %v11506_v62 }
 0x463   : > { %v5349_v8 = vadd.f32 %v5269_v7, %v5061_v23 }
 0x465   : > { %v11511_v60 = vadd.f32 %v5557_v19, %v5349_v8  ;;  %v12454_v8 = vld [vmem:[#allocation8_spill] sm:$0xff] }
 0x466   : > { %v4695_v18 = vpop.f32.mrf.mxu3 }
 0x467   : > { %12450 = vst [vmem:[#allocation13_spill] sm:$0xff] %v11511_v60  ;;  %v4774_v2 = vadd.f32 %v4695_v18, %v12451_v54  ;;  %v5559_v44 = vpop.f32.mrf.mxu2  ;;  %v4986_v21 = vpop.f32.mrf.mxu0 }
 0x468   : > { %v5274_v7 = vpop.f32.mrf.mxu1 }
 0x469   : > { %v5062_v50 = vadd.f32 %v4983_v59, %v4774_v2  ;;  %9138 = vmatmul.msk.bf16.gmra.mxu0 %vm311_vm1, %v11513_v56  ;;  %v9117_v2 = vld [vmem:[%s9886_s8 + $0x121] sm:$0xff] }
 0x46b   : > { %v5350_v19 = vadd.f32 %v5271_v22, %v5062_v50  ;;  %9088 = vmatmul.msk.bf16.gmra.mxu3 %vm311_vm1, %v4592_v63  ;;  %9188 = vmatmul.msk.bf16.gmra.mxu1 %vm311_vm1, %v11519_v29  ;;  %v9116_v22 = vld [vmem:[%s9886_s8 + $0x119] sm:$0xff]  ;;  %v11539_v50 = vld [vmem:[%s9886_s8 + $0x122] sm:$0xff] }
 0x46c   : > { %9238 = vmatmul.msk.bf16.gmra.mxu2 %vm311_vm1, %v5456_v57  ;;  %v11536_v63 = vld [vmem:[%s9886_s8 + $0x11a] sm:$0xff]  ;;  %v11544_v57 = vld [vmem:[%s9886_s8 + $0x170] sm:$0xff] }
 0x46d   : > { %v11529_v39 = vadd.f32 %v5559_v44, %v5350_v19  ;;  %v11546_v19 = vpack.c.bf16 %v9117_v2, %v9116_v22 }
 0x46e   : > { %v4698_v23 = vpop.f32.mrf.mxu3 }
 0x46f   : > { %12453 = vst [vmem:[#allocation15_spill] sm:$0xff] %v11529_v39  ;;  %v4775_v59 = vadd.f32 %v4698_v23, %v12454_v8  ;;  %v5562_v58 = vpop.f32.mrf.mxu2  ;;  %v4988_v13 = vpop.f32.mrf.mxu0  ;;  %v12456_v23 = vld [vmem:[#allocation9_spill] sm:$0xff] }
 0x470   : > { %v5276_v48 = vpop.f32.mrf.mxu1 }
 0x471   : > { %v5063_v18 = vadd.f32 %v4986_v21, %v4775_v59  ;;  %v4593_v21 = vpack.c.bf16 %v11176_v55, %v9066_v37 }
 0x473   : > { %v5351_v54 = vadd.f32 %v5274_v7, %v5063_v18  ;;  %v11552_v7 = vpack.c.bf16 %v11539_v50, %v11536_v63 }
 0x475   : > { %v11541_v60 = vadd.f32 %v5562_v58, %v5351_v54  ;;  %v5457_v58 = vpack.c.bf16 %v11544_v57, %v11267_v5 }
 0x476   : > { %v4700_v44 = vpop.f32.mrf.mxu3 }
 0x477   : > { %12455 = vst [vmem:[#allocation6_spill] sm:$0xff] %v11541_v60  ;;  %v4776_v8 = vadd.f32 %v4700_v44, %v12456_v23  ;;  %v5564_v39 = vpop.f32.mrf.mxu2  ;;  %v4991_v14 = vpop.f32.mrf.mxu0  ;;  %v11569_v60 = vld [vmem:[%s9886_s8 + $0x12a] sm:$0xff] }
 0x478   : > { %v5279_v59 = vpop.f32.mrf.mxu1 }
 0x479   : > { %v5064_v18 = vadd.f32 %v4988_v13, %v4776_v8  ;;  %9139 = vmatmul.msk.bf16.gmra.mxu0 %vm311_vm1, %v11546_v19  ;;  %v12458_v13 = vld [vmem:[#allocation10_spill] sm:$0xff]  ;;  %v9118_v8 = vld [vmem:[%s9886_s8 + $0x129] sm:$0xff] }
 0x47b   : > { %v5352_v54 = vadd.f32 %v5276_v48, %v5064_v18  ;;  %9089 = vmatmul.msk.bf16.gmra.mxu3 %vm311_vm1, %v4593_v21  ;;  %9189 = vmatmul.msk.bf16.gmra.mxu1 %vm311_vm1, %v11552_v7  ;;  %v9119_v18 = vld [vmem:[%s9886_s8 + $0x131] sm:$0xff]  ;;  %v9068_v21 = vld [vmem:[%s9886_s8 + $0x128] sm:$0xff] }
 0x47c   : > { %9239 = vmatmul.msk.bf16.gmra.mxu2 %vm311_vm1, %v5457_v58  ;;  %v9218_v58 = vld [vmem:[%s9886_s8 + $0x178] sm:$0xff] }
 0x47d   : > { %v11562_v55 = vadd.f32 %v5564_v39, %v5352_v54  ;;  %v9219_v39 = vld [vmem:[%s9886_s8 + $0x180] sm:$0xff] }
 0x47e   : > { %v4703_v5 = vpop.f32.mrf.mxu3 }
 0x47f   : > { %12457 = vst [vmem:[#allocation7_spill] sm:$0xff] %v11562_v55  ;;  %v4777_v22 = vadd.f32 %v4703_v5, %v12458_v13  ;;  %v5567_v2 = vpop.f32.mrf.mxu2  ;;  %v4993_v37 = vpop.f32.mrf.mxu0  ;;  %v11578_v55 = vpack.c.bf16 %v9119_v18, %v9118_v8  ;;  %v12462_v5 = vld [vmem:[#allocation11_spill] sm:$0xff] }
 0x480   : > { %v5281_v44 = vpop.f32.mrf.mxu1 }
 0x481   : > { %v5065_v23 = vadd.f32 %v4991_v14, %v4777_v22  ;;  %12461 = vst [vmem:[#allocation9_spill] sm:$0xff] %v11578_v55  ;;  %v4594_v14 = vpack.c.bf16 %v11198_v20, %v9068_v21 }
 0x483   : > { %v5353_v48 = vadd.f32 %v5279_v59, %v5065_v23  ;;  %v11584_v59 = vpack.c.bf16 %v11572_v35, %v11569_v60  ;;  %v5458_v23 = vpack.c.bf16 %v9219_v39, %v9218_v58 }
 0x485   : > { %v11574_v40 = vadd.f32 %v5567_v2, %v5353_v48  ;;  %12463 = vst [vmem:[#allocation10_spill] sm:$0xff] %v11584_v59 }
 0x486   : > { %v4705_v54 = vpop.f32.mrf.mxu3 }
 0x487   : > { %12460 = vst [vmem:[#allocation8_spill] sm:$0xff] %v11574_v40  ;;  %v4778_v13 = vadd.f32 %v4705_v54, %v12462_v5  ;;  %v5569_v46 = vpop.f32.mrf.mxu2  ;;  %v4996_v51 = vpop.f32.mrf.mxu0  ;;  %v9120_v5 = vld [vmem:[%s9886_s8 + $0x139] sm:$0xff]  ;;  %v11602_v40 = vld [vmem:[%s9886_s8 + $0x142] sm:$0xff] }
 0x488   : > { %v5284_v22 = vpop.f32.mrf.mxu1 }
 0x489   : > { %v5066_v2 = vadd.f32 %v4993_v37, %v4778_v13  ;;  %9140 = vmatmul.msk.bf16.gmra.mxu0 %vm311_vm1, %v11578_v55  ;;  %v12465_v37 = vld [vmem:[#allocation21_spill] sm:$0xff]  ;;  %v9121_v13 = vld [vmem:[%s9886_s8 + $0x141] sm:$0xff] }
 0x48a   : > { %12466 = vst [vmem:[#allocation21_spill] sm:$0xff] %v11602_v40 }
 0x48b   : > { %v5354_v48 = vadd.f32 %v5281_v44, %v5066_v2  ;;  %9090 = vmatmul.msk.bf16.gmra.mxu3 %vm311_vm1, %v4594_v14  ;;  %9190 = vmatmul.msk.bf16.gmra.mxu1 %vm311_vm1, %v11584_v59  ;;  %v9070_v14 = vld [vmem:[%s9886_s8 + $0x138] sm:$0xff] }
 0x48c   : > { %9240 = vmatmul.msk.bf16.gmra.mxu2 %vm311_vm1, %v5458_v23  ;;  %v11599_v2 = vld [vmem:[%s9886_s8 + $0x13a] sm:$0xff]  ;;  %v9220_v23 = vld [vmem:[%s9886_s8 + $0x188] sm:$0xff] }
 0x48d   : > { %v11592_v20 = vadd.f32 %v5569_v46, %v5354_v48  ;;  %v9221_v46 = vld [vmem:[%s9886_s8 + $0x190] sm:$0xff] }
 0x48e   : > { %v4708_v8 = vpop.f32.mrf.mxu3 }
 0x48f   : > { %12464 = vst [vmem:[#allocation11_spill] sm:$0xff] %v11592_v20  ;;  %v4779_v18 = vadd.f32 %v4708_v8, %v12465_v37  ;;  %v5572_v21 = vpop.f32.mrf.mxu2  ;;  %v4998_v58 = vpop.f32.mrf.mxu0  ;;  %v11608_v20 = vpack.c.bf16 %v9121_v13, %v9120_v5  ;;  %v12469_v8 = vld [vmem:[#allocation12_spill] sm:$0xff] }
 0x490   : > { %v5286_v39 = vpop.f32.mrf.mxu1 }
 0x491   : > { %v5067_v54 = vadd.f32 %v4996_v51, %v4779_v18  ;;  %12468 = vst [vmem:[#allocation28_spill] sm:$0xff] %v11608_v20  ;;  %v4595_v51 = vpack.c.bf16 %v11220_v17, %v9070_v14 }
 0x493   : > { %v5355_v44 = vadd.f32 %v5284_v22, %v5067_v54  ;;  %v11614_v22 = vpack.c.bf16 %v11602_v40, %v11599_v2  ;;  %v5459_v54 = vpack.c.bf16 %v9221_v46, %v9220_v23 }
 0x495   : > { %v11604_v55 = vadd.f32 %v5572_v21, %v5355_v44  ;;  %12470 = vst [vmem:[#allocation12_spill] sm:$0xff] %v11614_v22 }
 0x496   : > { %v4710_v48 = vpop.f32.mrf.mxu3 }
 0x497   : > { %12467 = vst [vmem:[#allocation27_spill] sm:$0xff] %v11604_v55  ;;  %v4780_v37 = vadd.f32 %v4710_v48, %v12469_v8  ;;  %v5574_v59 = vpop.f32.mrf.mxu2  ;;  %v5001_v35 = vpop.f32.mrf.mxu0  ;;  %v9122_v8 = vld [vmem:[%s9886_s8 + $0x149] sm:$0xff]  ;;  %v11632_v55 = vld [vmem:[%s9886_s8 + $0x152] sm:$0xff] }
 0x498   : > { %v5289_v18 = vpop.f32.mrf.mxu1  ;;  %12474 = vst [vmem:[#allocation30_spill] sm:$0xff] %v11632_v55 }
 0x499   : > { %v5068_v21 = vadd.f32 %v4998_v58, %v4780_v37  ;;  %9141 = vmatmul.msk.bf16.gmra.mxu0 %vm311_vm1, %v11608_v20  ;;  %v12472_v58 = vld [vmem:[#allocation23_spill] sm:$0xff]  ;;  %v9123_v37 = vld [vmem:[%s9886_s8 + $0x151] sm:$0xff] }
 0x49b   : > { %v5356_v44 = vadd.f32 %v5286_v39, %v5068_v21  ;;  %9091 = vmatmul.msk.bf16.gmra.mxu3 %vm311_vm1, %v4595_v51  ;;  %9191 = vmatmul.msk.bf16.gmra.mxu1 %vm311_vm1, %v11614_v22  ;;  %v9072_v51 = vld [vmem:[%s9886_s8 + $0x148] sm:$0xff] }
 0x49c   : > { %9241 = vmatmul.msk.bf16.gmra.mxu2 %vm311_vm1, %v5459_v54  ;;  %v11629_v21 = vld [vmem:[%s9886_s8 + $0x14a] sm:$0xff]  ;;  %v9222_v54 = vld [vmem:[%s9886_s8 + $0x198] sm:$0xff] }
 0x49d   : > { %v11622_v17 = vadd.f32 %v5574_v59, %v5356_v44  ;;  %12473 = vst [vmem:[#allocation23_spill] sm:$0xff] %v11629_v21  ;;  %v9223_v59 = vld [vmem:[%s9886_s8 + $0x1a0] sm:$0xff] }
 0x49e   : > { %v4713_v5 = vpop.f32.mrf.mxu3 }
 0x49f   : > { %12471 = vst [vmem:[#allocation29_spill] sm:$0xff] %v11622_v17  ;;  %v4781_v13 = vadd.f32 %v4713_v5, %v12472_v58  ;;  %v5577_v14 = vpop.f32.mrf.mxu2  ;;  %v5003_v23 = vpop.f32.mrf.mxu0  ;;  %v11638_v17 = vpack.c.bf16 %v9123_v37, %v9122_v8  ;;  %v12477_v5 = vld [vmem:[#allocation25_spill] sm:$0xff] }
 0x4a0   : > { %v5291_v46 = vpop.f32.mrf.mxu1 }
 0x4a1   : > { %v5069_v48 = vadd.f32 %v5001_v35, %v4781_v13  ;;  %12476 = vst [vmem:[#allocation32_spill] sm:$0xff] %v11638_v17  ;;  %v4596_v35 = vpack.c.bf16 %v12447_v25, %v9072_v51 }
 0x4a3   : > { %v5357_v39 = vadd.f32 %v5289_v18, %v5069_v48  ;;  %v11644_v18 = vpack.c.bf16 %v11632_v55, %v11629_v21  ;;  %v5460_v48 = vpack.c.bf16 %v9223_v59, %v9222_v54 }
 0x4a5   : > { %v11634_v20 = vadd.f32 %v5577_v14, %v5357_v39  ;;  %12478 = vst [vmem:[#allocation25_spill] sm:$0xff] %v11644_v18 }
 0x4a6   : > { %v4715_v44 = vpop.f32.mrf.mxu3 }
 0x4a7   : > { %12475 = vst [vmem:[#allocation31_spill] sm:$0xff] %v11634_v20  ;;  %v4782_v58 = vadd.f32 %v4715_v44, %v12477_v5  ;;  %v5579_v22 = vpop.f32.mrf.mxu2  ;;  %v5006_v40 = vpop.f32.mrf.mxu0  ;;  %v9124_v5 = vld [vmem:[%s9886_s8 + $0x159] sm:$0xff]  ;;  %v11662_v20 = vld [vmem:[%s9886_s8 + $0x162] sm:$0xff] }
 0x4a8   : > { %v5294_v13 = vpop.f32.mrf.mxu1 }
 0x4a9   : > { %v5070_v14 = vadd.f32 %v5003_v23, %v4782_v58  ;;  %9142 = vmatmul.msk.bf16.gmra.mxu0 %vm311_vm1, %v11638_v17  ;;  %v12480_v23 = vld [vmem:[#allocation14_spill] sm:$0xff] }
 0x4aa   : > { %v9125_v58 = vld [vmem:[%s9886_s8 + $0x161] sm:$0xff] }
 0x4ab   : > { %v5358_v39 = vadd.f32 %v5291_v46, %v5070_v14  ;;  %9092 = vmatmul.msk.bf16.gmra.mxu3 %vm311_vm1, %v4596_v35  ;;  %9192 = vmatmul.msk.bf16.gmra.mxu1 %vm311_vm1, %v11644_v18  ;;  %v9074_v35 = vld [vmem:[%s9886_s8 + $0x158] sm:$0xff] }
 0x4ac   : > { %9242 = vmatmul.msk.bf16.gmra.mxu2 %vm311_vm1, %v5460_v48  ;;  %v11659_v14 = vld [vmem:[%s9886_s8 + $0x15a] sm:$0xff]  ;;  %v9224_v48 = vld [vmem:[%s9886_s8 + $0x1a8] sm:$0xff] }
 0x4ad   : > { %v11652_v25 = vadd.f32 %v5579_v22, %v5358_v39  ;;  %v9225_v22 = vld [vmem:[%s9886_s8 + $0x1b0] sm:$0xff] }
 0x4ae   : > { %v4718_v8 = vpop.f32.mrf.mxu3 }
 0x4af   : > { %12479 = vst [vmem:[#allocation33_spill] sm:$0xff] %v11652_v25  ;;  %v4783_v37 = vadd.f32 %v4718_v8, %v12480_v23  ;;  %v5582_v51 = vpop.f32.mrf.mxu2  ;;  %v5008_v54 = vpop.f32.mrf.mxu0  ;;  %v11668_v25 = vpack.c.bf16 %v9125_v58, %v9124_v5  ;;  %v12483_v8 = vld [vmem:[#allocation17_spill] sm:$0xff] }
 0x4b0   : > { %v5296_v59 = vpop.f32.mrf.mxu1 }
 0x4b1   : > { %v5071_v44 = vadd.f32 %v5006_v40, %v4783_v37  ;;  %12482 = vst [vmem:[#allocation34_spill] sm:$0xff] %v11668_v25  ;;  %v4597_v40 = vpack.c.bf16 %v11264_v24, %v9074_v35 }
 0x4b3   : > { %v5359_v46 = vadd.f32 %v5294_v13, %v5071_v44  ;;  %v11674_v13 = vpack.c.bf16 %v11662_v20, %v11659_v14  ;;  %v5461_v44 = vpack.c.bf16 %v9225_v22, %v9224_v48 }
 0x4b5   : > { %v11664_v17 = vadd.f32 %v5582_v51, %v5359_v46  ;;  %12484 = vst [vmem:[#allocation17_spill] sm:$0xff] %v11674_v13  ;;  %v12486_v46 = vld [vmem:[#allocation18_spill] sm:$0xff] }
 0x4b6   : > { %v4720_v39 = vpop.f32.mrf.mxu3 }
 0x4b7   : > { %12481 = vst [vmem:[#allocation14_spill] sm:$0xff] %v11664_v17  ;;  %v4784_v23 = vadd.f32 %v4720_v39, %v12483_v8  ;;  %v5584_v18 = vpop.f32.mrf.mxu2  ;;  %v5011_v55 = vpop.f32.mrf.mxu0  ;;  %v9076_v39 = vld [vmem:[%s9886_s8 + $0x168] sm:$0xff] }
 0x4b8   : > { %v5299_v37 = vpop.f32.mrf.mxu1 }
 0x4b9   : > { %v5072_v21 = vadd.f32 %v5008_v54, %v4784_v23  ;;  %9143 = vmatmul.msk.bf16.gmra.mxu0 %vm311_vm1, %v11668_v25  ;;  %v9478_v54 = vld [vmem:[%s12348_s1 + $0x5c] sm:$0xf]  ;;  %v9127_v23 = vld [vmem:[%s9886_s8 + $0x171] sm:$0xff]  ;;  %v4598_v25 = vpack.c.bf16 %v11544_v57, %v9076_v39 }
 0x4bb   : > { %v5360_v51 = vadd.f32 %v5296_v59, %v5072_v21  ;;  %9093 = vmatmul.msk.bf16.gmra.mxu3 %vm311_vm1, %v4597_v40  ;;  %9193 = vmatmul.msk.bf16.gmra.mxu1 %vm311_vm1, %v11674_v13  ;;  %v6986_v59 = vsel %vm360_vm0, %v9478_v54, 0  ;;  %v9226_v40 = vld [vmem:[%s9886_s8 + $0x1b8] sm:$0xff]  ;;  %v9628_v54 = vld [vmem:[%s12348_s1 + $0x68] sm:$0xf] }
 0x4bc   : > { %9243 = vmatmul.msk.bf16.gmra.mxu2 %vm311_vm1, %v5461_v44  ;;  %6995 = vmatpush.bf16.msra.mxu3 %v6986_v59  ;;  %v9227_v44 = vld [vmem:[%s9886_s8 + $0x1c0] sm:$0xff] }
 0x4bd   : > { %v11682_v24 = vadd.f32 %v5584_v18, %v5360_v51  ;;  %v9126_v18 = vld [vmem:[%s9886_s8 + $0x169] sm:$0xff] }
 0x4be   : > { %v4723_v21 = vpop.f32.mrf.mxu3  ;;  %v11695_v51 = vld [vmem:[%s9886_s8 + $0x16a] sm:$0xff]  ;;  %v11711_v59 = vpack.c.bf16 %v9127_v23, %v9126_v18  ;;  %v5462_v23 = vpack.c.bf16 %v9227_v44, %v9226_v40 }
 0x4bf   : > { %12485 = vst [vmem:[#allocation35_spill] sm:$0xff] %v11682_v24  ;;  %v4785_v5 = vadd.f32 %v4723_v21, %v12486_v46  ;;  %v5587_v58 = vpop.f32.mrf.mxu2  ;;  %v5013_v35 = vpop.f32.mrf.mxu0  ;;  %v11698_v24 = vld [vmem:[%s9886_s8 + $0x172] sm:$0xff]  ;;  %v7850_v46 = vsel %vm360_vm0, %v9628_v54, 0 }
 0x4c0   : > { %v5301_v48 = vpop.f32.mrf.mxu1  ;;  %v11720_v13 = vpack.c.bf16 %v11698_v24, %v11695_v51  ;;  %7859 = vmatpush.bf16.msra.mxu2 %v7850_v46 }
 0x4c1   : > { %v5073_v22 = vadd.f32 %v5011_v55, %v4785_v5  ;;  %v9528_v55 = vld [vmem:[%s12348_s1 + $0x60] sm:$0xf] }
 0x4c2   : > { %v7274_v5 = vsel %vm360_vm0, %v9528_v55, 0 }
 0x4c3   : > { %v5361_v8 = vadd.f32 %v5299_v37, %v5073_v22  ;;  %v9578_v37 = vld [vmem:[%s12348_s1 + $0x64] sm:$0xf]  ;;  %7283 = vmatpush.bf16.msra.mxu0 %v7274_v5  ;;  %v9397_v5 = vld [vmem:[%s9886_s8 + $0xdb] sm:$0xff] }
 0x4c5   : > { %v11700_v17 = vadd.f32 %v5587_v58, %v5361_v8  ;;  %v7562_v58 = vsel %vm360_vm0, %v9578_v37, 0 }
 0x4c6   : > { %v4725_v21 = vpop.f32.mrf.mxu3  ;;  %7571 = vmatpush.bf16.msra.mxu1 %v7562_v58 }
 0x4c7   : > { %12487 = vst [vmem:[#allocation18_spill] sm:$0xff] %v11700_v17  ;;  %v4786_v22 = vadd.f32 %v4725_v21, %v11292_v49  ;;  %v5589_v8 = vpop.f32.mrf.mxu2  ;;  %v5016_v17 = vpop.f32.mrf.mxu0 }
 0x4c8   : > { %v5304_v18 = vpop.f32.mrf.mxu1 }
 0x4c9   : > { %v5074_v54 = vadd.f32 %v5013_v35, %v4786_v22  ;;  %9144 = vmatmul.msk.bf16.gmra.mxu0 %vm311_vm1, %v11711_v59 }
 0x4cb   : > { %v5362_v49 = vadd.f32 %v5301_v48, %v5074_v54  ;;  %9094 = vmatmul.msk.bf16.gmra.mxu3 %vm311_vm1, %v4598_v25  ;;  %9194 = vmatmul.msk.bf16.gmra.mxu1 %vm311_vm1, %v11720_v13  ;;  %v9396_v48 = vld [vmem:[%s9886_s8 + $0xd3] sm:$0xff] }
 0x4cc   : > { %9244 = vmatmul.msk.bf16.gmra.mxu2 %vm311_vm1, %v5462_v23 }
 0x4cd   : > { %v11728_v57 = vadd.f32 %v5589_v8, %v5362_v49  ;;  %v6311_v8 = vpack.c.bf16 %v11416_v28, %v11390_v34  ;;  %v6599_v49 = vpack.c.bf16 %v9397_v5, %v9396_v48 }
 0x4ce   : > { %v4728_v39 = vpop.f32.mrf.mxu3 }
 0x4cf   : > { %v4787_v40 = vadd.f32 %v4728_v39, %v11300_v9  ;;  %v5592_v44 = vpop.f32.mrf.mxu2  ;;  %v5018_v55 = vpop.f32.mrf.mxu0 }
 0x4d0   : > { %v5306_v35 = vpop.f32.mrf.mxu1 }
 0x4d1   : > { %v5075_v37 = vadd.f32 %v5016_v17, %v4787_v40 }
 0x4d3   : > { %v5363_v21 = vadd.f32 %v5304_v18, %v5075_v37 }
 0x4d5   : > { %v11731_v46 = vadd.f32 %v5592_v44, %v5363_v21 }
 0x4d6   : > { %v4730_v25 = vpop.f32.mrf.mxu3 }
 0x4d7   : > { %v4788_v58 = vadd.f32 %v4730_v25, %v11310_v47  ;;  %v5594_v22 = vpop.f32.mrf.mxu2  ;;  %v5021_v54 = vpop.f32.mrf.mxu0  ;;  %v6312_v25 = vpack.c.bf16 %v11446_v43, %v11419_v3 }
 0x4d8   : > { %v5309_v23 = vpop.f32.mrf.mxu1 }
 0x4d9   : > { %v5076_v9 = vadd.f32 %v5018_v55, %v4788_v58  ;;  %9329 = vmatmul.msk.bf16.vlgmr.msrb.gmra.mxu0 %vm311_vm1, %v11399_v30  ;;  %v9398_v30 = vld [vmem:[%s9886_s8 + $0xe3] sm:$0xff] }
 0x4db   : > { %v5364_v17 = vadd.f32 %v5306_v35, %v5076_v9  ;;  %9279 = vmatmul.msk.bf16.vlgmr.msrb.gmra.mxu3 %vm311_vm1, %v11394_v26  ;;  %9379 = vmatmul.msk.bf16.vlgmr.msrb.gmra.mxu1 %vm311_vm1, %v6311_v8  ;;  %v9399_v35 = vld [vmem:[%s9886_s8 + $0xeb] sm:$0xff] }
 0x4dc   : > { %9429 = vmatmul.msk.bf16.vlgmr.msrb.gmra.mxu2 %vm311_vm1, %v6599_v49 }
 0x4dd   : > { %v11744_v47 = vadd.f32 %v5594_v22, %v5364_v17  ;;  %v6600_v22 = vpack.c.bf16 %v9399_v35, %v9398_v30 }
 0x4de   : > { %v4733_v18 = vpop.f32.mrf.mxu3 }
 0x4df   : > { %v4789_v34 = vadd.f32 %v4733_v18, %v11318_v15  ;;  %v5597_v28 = vpop.f32.mrf.mxu2  ;;  %v5023_v39 = vpop.f32.mrf.mxu0 }
 0x4e0   : > { %v5311_v40 = vpop.f32.mrf.mxu1 }
 0x4e1   : > { %v5077_v44 = vadd.f32 %v5021_v54, %v4789_v34  ;;  %v9401_v34 = vld [vmem:[%s9886_s8 + $0xfb] sm:$0xff] }
 0x4e3   : > { %v5365_v55 = vadd.f32 %v5309_v23, %v5077_v44  ;;  %v6313_v44 = vpack.c.bf16 %v11476_v31, %v11449_v52 }
 0x4e5   : > { %v11747_v37 = vadd.f32 %v5597_v28, %v5365_v55 }
 0x4e6   : > { %v4735_v21 = vpop.f32.mrf.mxu3 }
 0x4e7   : > { %v4790_v26 = vadd.f32 %v4735_v21, %v11328_v1  ;;  %v5599_v48 = vpop.f32.mrf.mxu2  ;;  %v5026_v5 = vpop.f32.mrf.mxu0 }
 0x4e8   : > { %v5314_v58 = vpop.f32.mrf.mxu1 }
 0x4e9   : > { %v5078_v15 = vadd.f32 %v5023_v39, %v4790_v26  ;;  %9330 = vmatmul.msk.bf16.gmra.mxu0 %vm311_vm1, %v11429_v6  ;;  %v9400_v6 = vld [vmem:[%s9886_s8 + $0xf3] sm:$0xff] }
 0x4ea   : > { %v6601_v30 = vpack.c.bf16 %v9401_v34, %v9400_v6 }
 0x4eb   : > { %v5366_v54 = vadd.f32 %v5311_v40, %v5078_v15  ;;  %9280 = vmatmul.msk.bf16.gmra.mxu3 %vm311_vm1, %v11423_v33  ;;  %9380 = vmatmul.msk.bf16.gmra.mxu1 %vm311_vm1, %v6312_v25 }
 0x4ec   : > { %9430 = vmatmul.msk.bf16.gmra.mxu2 %vm311_vm1, %v6600_v22  ;;  %v9403_v22 = vld [vmem:[%s9886_s8 + $0x10b] sm:$0xff] }
 0x4ed   : > { %v11760_v1 = vadd.f32 %v5599_v48, %v5366_v54 }
 0x4ee   : > { %v4738_v8 = vpop.f32.mrf.mxu3 }
 0x4ef   : > { %v4791_v3 = vadd.f32 %v4738_v8, %v11336_v32  ;;  %v5602_v43 = vpop.f32.mrf.mxu2  ;;  %v5028_v23 = vpop.f32.mrf.mxu0 }
 0x4f0   : > { %v5316_v49 = vpop.f32.mrf.mxu1 }
 0x4f1   : > { %v5079_v9 = vadd.f32 %v5026_v5, %v4791_v3  ;;  %v6314_v3 = vpack.c.bf16 %v11506_v62, %v11479_v16 }
 0x4f3   : > { %v5367_v17 = vadd.f32 %v5314_v58, %v5079_v9 }
 0x4f5   : > { %v11763_v18 = vadd.f32 %v5602_v43, %v5367_v17 }
 0x4f6   : > { %v4740_v28 = vpop.f32.mrf.mxu3 }
 0x4f7   : > { %v4792_v33 = vadd.f32 %v4740_v28, %v11346_v11  ;;  %v5604_v39 = vpop.f32.mrf.mxu2  ;;  %v5031_v40 = vpop.f32.mrf.mxu0 }
 0x4f8   : > { %v5319_v55 = vpop.f32.mrf.mxu1 }
 0x4f9   : > { %v5080_v32 = vadd.f32 %v5028_v23, %v4792_v33  ;;  %9331 = vmatmul.msk.bf16.gmra.mxu0 %vm311_vm1, %v11459_v36  ;;  %v9402_v36 = vld [vmem:[%s9886_s8 + $0x103] sm:$0xff] }
 0x4fa   : > { %v6602_v23 = vpack.c.bf16 %v9403_v22, %v9402_v36  ;;  %v9407_v36 = vld [vmem:[%s9886_s8 + $0x12b] sm:$0xff] }
 0x4fb   : > { %v5368_v35 = vadd.f32 %v5316_v49, %v5080_v32  ;;  %9281 = vmatmul.msk.bf16.gmra.mxu3 %vm311_vm1, %v11453_v41  ;;  %9381 = vmatmul.msk.bf16.gmra.mxu1 %vm311_vm1, %v6313_v44 }
 0x4fc   : > { %9431 = vmatmul.msk.bf16.gmra.mxu2 %vm311_vm1, %v6601_v30  ;;  %v6315_v30 = vpack.c.bf16 %v11536_v63, %v11509_v38 }
 0x4fd   : > { %v11776_v11 = vadd.f32 %v5604_v39, %v5368_v35  ;;  %v9405_v39 = vld [vmem:[%s9886_s8 + $0x11b] sm:$0xff] }
 0x4fe   : > { %v4743_v21 = vpop.f32.mrf.mxu3 }
 0x4ff   : > { %v4793_v52 = vadd.f32 %v4743_v21, %v11354_v10  ;;  %v5607_v31 = vpop.f32.mrf.mxu2  ;;  %v5033_v26 = vpop.f32.mrf.mxu0 }
 0x500   : > { %v5321_v48 = vpop.f32.mrf.mxu1 }
 0x501   : > { %v5081_v5 = vadd.f32 %v5031_v40, %v4793_v52 }
 0x503   : > { %v5369_v25 = vadd.f32 %v5319_v55, %v5081_v5 }
 0x505   : > { %v11779_v58 = vadd.f32 %v5607_v31, %v5369_v25 }
 0x506   : > { %v4745_v15 = vpop.f32.mrf.mxu3 }
 0x507   : > { %v4794_v41 = vadd.f32 %v4745_v15, %v11364_v0  ;;  %v5609_v54 = vpop.f32.mrf.mxu2  ;;  %v5036_v8 = vpop.f32.mrf.mxu0 }
 0x508   : > { %v5324_v43 = vpop.f32.mrf.mxu1 }
 0x509   : > { %v5082_v10 = vadd.f32 %v5033_v26, %v4794_v41  ;;  %9332 = vmatmul.msk.bf16.gmra.mxu0 %vm311_vm1, %v11489_v27  ;;  %v9404_v27 = vld [vmem:[%s9886_s8 + $0x113] sm:$0xff] }
 0x50a   : > { %v6603_v35 = vpack.c.bf16 %v9405_v39, %v9404_v27  ;;  %v12489_v39 = vld [vmem:[#allocation16_spill] sm:$0xff] }
 0x50b   : > { %v5370_v49 = vadd.f32 %v5321_v48, %v5082_v10  ;;  %9282 = vmatmul.msk.bf16.gmra.mxu3 %vm311_vm1, %v11483_v45  ;;  %9382 = vmatmul.msk.bf16.gmra.mxu1 %vm311_vm1, %v6314_v3 }
 0x50c   : > { %9432 = vmatmul.msk.bf16.gmra.mxu2 %vm311_vm1, %v6602_v23 }
 0x50d   : > { %v11792_v0 = vadd.f32 %v5609_v54, %v5370_v49  ;;  %v6316_v54 = vpack.c.bf16 %v11569_v60, %v11539_v50 }
 0x50e   : > { %v4748_v9 = vpop.f32.mrf.mxu3 }
 0x50f   : > { %v4795_v16 = vadd.f32 %v4748_v9, %v11372_v61  ;;  %v5612_v62 = vpop.f32.mrf.mxu2  ;;  %v5038_v17 = vpop.f32.mrf.mxu0 }
 0x510   : > { %v5326_v6 = vpop.f32.mrf.mxu1 }
 0x511   : > { %v5083_v34 = vadd.f32 %v5036_v8, %v4795_v16 }
 0x513   : > { %v5371_v28 = vadd.f32 %v5324_v43, %v5083_v34 }
 0x515   : > { %v11795_v33 = vadd.f32 %v5612_v62, %v5371_v28 }
 0x516   : > { %v4750_v40 = vpop.f32.mrf.mxu3 }
 0x517   : > { %v4796_v45 = vadd.f32 %v4750_v40, %v11382_v12  ;;  %v5614_v44 = vpop.f32.mrf.mxu2  ;;  %v5041_v55 = vpop.f32.mrf.mxu0  ;;  %v6317_v40 = vpack.c.bf16 %v11599_v2, %v12489_v39  ;;  %v12492_v2 = vld [vmem:[#allocation20_spill] sm:$0xff] }
 0x518   : > { %v5329_v32 = vpop.f32.mrf.mxu1  ;;  %v9412_v39 = vld [vmem:[%s9886_s8 + $0x153] sm:$0xff] }
 0x519   : > { %v5084_v61 = vadd.f32 %v5038_v17, %v4796_v45  ;;  %9333 = vmatmul.msk.bf16.gmra.mxu0 %vm311_vm1, %v11519_v29  ;;  %v9406_v29 = vld [vmem:[%s9886_s8 + $0x123] sm:$0xff]  ;;  %v9409_v17 = vld [vmem:[%s9886_s8 + $0x13b] sm:$0xff] }
 0x51a   : > { %v6604_v3 = vpack.c.bf16 %v9407_v36, %v9406_v29  ;;  %v9411_v29 = vld [vmem:[%s9886_s8 + $0x14b] sm:$0xff] }
 0x51b   : > { %v5372_v21 = vadd.f32 %v5326_v6, %v5084_v61  ;;  %9283 = vmatmul.msk.bf16.gmra.mxu3 %vm311_vm1, %v11513_v56  ;;  %9383 = vmatmul.msk.bf16.gmra.mxu1 %vm311_vm1, %v6315_v30 }
 0x51c   : > { %9433 = vmatmul.msk.bf16.gmra.mxu2 %vm311_vm1, %v6603_v35 }
 0x51d   : > { %v11808_v12 = vadd.f32 %v5614_v44, %v5372_v21 }
 0x51e   : > { %v4753_v52 = vpop.f32.mrf.mxu3 }
 0x51f   : > { %v4797_v38 = vadd.f32 %v4753_v52, %v11392_v42  ;;  %v5617_v63 = vpop.f32.mrf.mxu2  ;;  %v5043_v31 = vpop.f32.mrf.mxu0 }
 0x520   : > { %v5331_v26 = vpop.f32.mrf.mxu1 }
 0x521   : > { %v5085_v48 = vadd.f32 %v5041_v55, %v4797_v38  ;;  %v12490_v55 = vld [vmem:[#allocation10_spill] sm:$0xff] }
 0x523   : > { %v5373_v5 = vadd.f32 %v5329_v32, %v5085_v48  ;;  %v12491_v32 = vld [vmem:[#allocation9_spill] sm:$0xff] }
 0x525   : > { %v11811_v25 = vadd.f32 %v5617_v63, %v5373_v5  ;;  %v9410_v5 = vld [vmem:[%s9886_s8 + $0x143] sm:$0xff] }
 0x526   : > { %v4755_v22 = vpop.f32.mrf.mxu3 }
 0x527   : > { %v4798_v56 = vadd.f32 %v4755_v22, %v11409_v4  ;;  %v5619_v15 = vpop.f32.mrf.mxu2  ;;  %v5046_v41 = vpop.f32.mrf.mxu0  ;;  %v12493_v22 = vld [vmem:[#allocation22_spill] sm:$0xff] }
 0x528   : > { %v5334_v8 = vpop.f32.mrf.mxu1 }
 0x529   : > { %v5086_v42 = vadd.f32 %v5043_v31, %v4798_v56  ;;  %9334 = vmatmul.msk.bf16.gmra.mxu0 %vm311_vm1, %v11552_v7  ;;  %v9408_v7 = vld [vmem:[%s9886_s8 + $0x133] sm:$0xff] }
 0x52a   : > { %v6605_v44 = vpack.c.bf16 %v9409_v17, %v9408_v7 }
 0x52b   : > { %v5374_v43 = vadd.f32 %v5331_v26, %v5086_v42  ;;  %9284 = vmatmul.msk.bf16.gmra.mxu3 %vm311_vm1, %v11546_v19  ;;  %9384 = vmatmul.msk.bf16.gmra.mxu1 %vm311_vm1, %v6316_v54  ;;  %v12488_v19 = vld [vmem:[#allocation19_spill] sm:$0xff]  ;;  %v12494_v54 = vld [vmem:[#allocation21_spill] sm:$0xff] }
 0x52c   : > { %9434 = vmatmul.msk.bf16.gmra.mxu2 %vm311_vm1, %v6604_v3 }
 0x52d   : > { %v11824_v4 = vadd.f32 %v5619_v15, %v5374_v43  ;;  %v6606_v43 = vpack.c.bf16 %v9411_v29, %v9410_v5 }
 0x52e   : > { %v4758_v23 = vpop.f32.mrf.mxu3 }
 0x52f   : > { %v4799_v60 = vadd.f32 %v4758_v23, %v11421_v53  ;;  %v5622_v50 = vpop.f32.mrf.mxu2  ;;  %v5048_v10 = vpop.f32.mrf.mxu0 }
 0x530   : > { %v5336_v49 = vpop.f32.mrf.mxu1 }
 0x531   : > { %v5087_v9 = vadd.f32 %v5046_v41, %v4799_v60  ;;  %v12496_v60 = vld [vmem:[#allocation12_spill] sm:$0xff] }
 0x533   : > { %v5375_v16 = vadd.f32 %v5334_v8, %v5087_v9  ;;  %v12495_v8 = vld [vmem:[#allocation23_spill] sm:$0xff] }
 0x534   : > { %v6318_v3 = vpack.c.bf16 %v12495_v8, %v12494_v54  ;;  %v9414_v8 = vld [vmem:[%s9886_s8 + $0x163] sm:$0xff] }
 0x535   : > { %v11827_v62 = vadd.f32 %v5622_v50, %v5375_v16  ;;  %v12498_v16 = vld [vmem:[#allocation24_spill] sm:$0xff] }
 0x536   : > { %v4760_v6 = vpop.f32.mrf.mxu3 }
 0x537   : > { %v4800_v34 = vadd.f32 %v4760_v6, %v12488_v19  ;;  %v5624_v28 = vpop.f32.mrf.mxu2  ;;  %v5051_v27 = vpop.f32.mrf.mxu0 }
 0x538   : > { %v5339_v45 = vpop.f32.mrf.mxu1 }
 0x539   : > { %v5088_v53 = vadd.f32 %v5048_v10, %v4800_v34  ;;  %9335 = vmatmul.msk.bf16.gmra.mxu0 %vm311_vm1, %v12490_v55  ;;  %v12497_v10 = vld [vmem:[#allocation28_spill] sm:$0xff] }
 0x53b   : > { %v5376_v30 = vadd.f32 %v5336_v49, %v5088_v53  ;;  %9285 = vmatmul.msk.bf16.gmra.mxu3 %vm311_vm1, %v12491_v32  ;;  %9385 = vmatmul.msk.bf16.gmra.mxu1 %vm311_vm1, %v6317_v40  ;;  %v9413_v40 = vld [vmem:[%s9886_s8 + $0x15b] sm:$0xff] }
 0x53c   : > { %9435 = vmatmul.msk.bf16.gmra.mxu2 %vm311_vm1, %v6605_v44  ;;  %v12499_v44 = vld [vmem:[#allocation26_spill] sm:$0xff] }
 0x53d   : > { %v11840_v35 = vadd.f32 %v5624_v28, %v5376_v30  ;;  %v12500_v32 = vld [vmem:[#allocation30_spill] sm:$0xff] }
 0x53e   : > { %v4763_v61 = vpop.f32.mrf.mxu3 }
 0x53f   : > { %v4801_v21 = vadd.f32 %v4763_v61, %v12492_v2  ;;  %v5627_v52 = vpop.f32.mrf.mxu2  ;;  %v5053_v38 = vpop.f32.mrf.mxu0  ;;  %v6319_v61 = vpack.c.bf16 %v11659_v14, %v12500_v32  ;;  %v12503_v14 = vld [vmem:[#allocation13_spill] sm:$0xff] }
 0x540   : > { %v5341_v63 = vpop.f32.mrf.mxu1  ;;  %v9416_v32 = vld [vmem:[%s9886_s8 + $0x173] sm:$0xff] }
 0x541   : > { %v5089_v31 = vadd.f32 %v5051_v27, %v4801_v21  ;;  %v6607_v21 = vpack.c.bf16 %v9413_v40, %v9412_v39 }
 0x543   : > { %v5377_v26 = vadd.f32 %v5339_v45, %v5089_v31  ;;  %v12502_v31 = vld [vmem:[#allocation32_spill] sm:$0xff] }
 0x545   : > { %v11843_v48 = vadd.f32 %v5627_v52, %v5377_v26 }
 0x546   : > { %v4765_v36 = vpop.f32.mrf.mxu3 }
 0x547   : > { %v4802_v56 = vadd.f32 %v4765_v36, %v12493_v22  ;;  %v5629_v15 = vpop.f32.mrf.mxu2  ;;  %v5056_v41 = vpop.f32.mrf.mxu0 }
 0x548   : > { %v5344_v42 = vpop.f32.mrf.mxu1 }
 0x549   : > { %v5090_v23 = vadd.f32 %v5053_v38, %v4802_v56  ;;  %9336 = vmatmul.msk.bf16.gmra.mxu0 %vm311_vm1, %v12496_v60  ;;  %v12501_v38 = vld [vmem:[#allocation25_spill] sm:$0xff] }
 0x54b   : > { %v5378_v50 = vadd.f32 %v5341_v63, %v5090_v23  ;;  %9286 = vmatmul.msk.bf16.gmra.mxu3 %vm311_vm1, %v12497_v10  ;;  %9386 = vmatmul.msk.bf16.gmra.mxu1 %vm311_vm1, %v6318_v3  ;;  %v9415_v3 = vld [vmem:[%s9886_s8 + $0x16b] sm:$0xff]  ;;  %v6320_v10 = vpack.c.bf16 %v11695_v51, %v11662_v20  ;;  %v12507_v51 = vld [vmem:[#allocation6_spill] sm:$0xff] }
 0x54c   : > { %9436 = vmatmul.msk.bf16.gmra.mxu2 %vm311_vm1, %v6606_v43  ;;  %v12504_v43 = vld [vmem:[#allocation15_spill] sm:$0xff] }
 0x54d   : > { %v11856_v49 = vadd.f32 %v5629_v15, %v5378_v50 }
 0x54e   : > { %v4768_v9 = vpop.f32.mrf.mxu3 }
 0x54f   : > { %v4803_v7 = vadd.f32 %v4768_v9, %v12498_v16  ;;  %v5632_v17 = vpop.f32.mrf.mxu2  ;;  %v5058_v6 = vpop.f32.mrf.mxu0  ;;  %v6608_v16 = vpack.c.bf16 %v9415_v3, %v9414_v8 }
 0x550   : > { %v5346_v19 = vpop.f32.mrf.mxu1 }
 0x551   : > { %v5091_v34 = vadd.f32 %v5056_v41, %v4803_v7 }
 0x553   : > { %v5379_v28 = vadd.f32 %v5344_v42, %v5091_v34 }
 0x555   : > { %v11859_v27 = vadd.f32 %v5632_v17, %v5379_v28  ;;  %v12505_v17 = vld [vmem:[#allocation17_spill] sm:$0xff] }
 0x556   : > { %v4770_v45 = vpop.f32.mrf.mxu3 }
 0x557   : > { %v4804_v53 = vadd.f32 %v4770_v45, %v12499_v44  ;;  %v5634_v55 = vpop.f32.mrf.mxu2  ;;  %v6133_v30 = vpop.f32.mrf.mxu0 }
 0x558   : > { %v6421_v2 = vpop.f32.mrf.mxu1 }
 0x559   : > { %v5092_v52 = vadd.f32 %v5058_v6, %v4804_v53  ;;  %9337 = vmatmul.msk.bf16.gmra.mxu0 %vm311_vm1, %v12501_v38 }
 0x55b   : > { %v5380_v63 = vadd.f32 %v5346_v19, %v5092_v52  ;;  %9287 = vmatmul.msk.bf16.gmra.mxu3 %vm311_vm1, %v12502_v31  ;;  %9387 = vmatmul.msk.bf16.gmra.mxu1 %vm311_vm1, %v6319_v61  ;;  %v12506_v19 = vld [vmem:[#allocation34_spill] sm:$0xff] }
 0x55c   : > { %9437 = vmatmul.msk.bf16.gmra.mxu2 %vm311_vm1, %v6607_v21  ;;  %v9417_v61 = vld [vmem:[%s9886_s8 + $0x17b] sm:$0xff]  ;;  %v12508_v21 = vld [vmem:[#allocation7_spill] sm:$0xff] }
 0x55d   : > { %v11872_v26 = vadd.f32 %v5634_v55, %v5380_v63  ;;  %v9367_v55 = vld [vmem:[%s9886_s8 + $0x17a] sm:$0xff] }
 0x55e   : > { %v5845_v5 = vpop.f32.mrf.mxu3  ;;  %v6321_v31 = vpack.c.bf16 %v9367_v55, %v11698_v24 }
 0x55f   : > { %v5925_v29 = vadd.f32 %v5845_v5, %v12503_v14  ;;  %v6709_v36 = vpop.f32.mrf.mxu2  ;;  %v6135_v22 = vpop.f32.mrf.mxu0  ;;  %v6609_v14 = vpack.c.bf16 %v9417_v61, %v9416_v32  ;;  %v12511_v32 = vld [vmem:[#allocation27_spill] sm:$0xff] }
 0x560   : > { %v6423_v56 = vpop.f32.mrf.mxu1 }
 0x561   : > { %v6213_v15 = vadd.f32 %v6133_v30, %v5925_v29 }
 0x563   : > { %v6501_v41 = vadd.f32 %v6421_v2, %v6213_v15 }
 0x565   : > { %v11875_v54 = vadd.f32 %v6709_v36, %v6501_v41 }
 0x566   : > { %v5847_v42 = vpop.f32.mrf.mxu3 }
 0x567   : > { %v5926_v23 = vadd.f32 %v5847_v42, %v12504_v43  ;;  %v6711_v60 = vpop.f32.mrf.mxu2  ;;  %v6138_v50 = vpop.f32.mrf.mxu0  ;;  %v9319_v43 = vld [vmem:[%s9886_s8 + $0x182] sm:$0xff] }
 0x568   : > { %v6426_v9 = vpop.f32.mrf.mxu1 }
 0x569   : > { %v6214_v7 = vadd.f32 %v6135_v22, %v5926_v23  ;;  %9338 = vmatmul.msk.bf16.gmra.mxu0 %vm311_vm1, %v12505_v17  ;;  %v9268_v23 = vld [vmem:[%s9886_s8 + $0x179] sm:$0xff]  ;;  %v12510_v17 = vld [vmem:[#allocation11_spill] sm:$0xff] }
 0x56b   : > { %v6502_v6 = vadd.f32 %v6423_v56, %v6214_v7  ;;  %9288 = vmatmul.msk.bf16.gmra.mxu3 %vm311_vm1, %v12506_v19  ;;  %9388 = vmatmul.msk.bf16.gmra.mxu1 %vm311_vm1, %v6320_v10  ;;  %v12509_v56 = vld [vmem:[#allocation8_spill] sm:$0xff]  ;;  %v9418_v10 = vld [vmem:[%s9886_s8 + $0x183] sm:$0xff]  ;;  %v6034_v7 = vpack.c.bf16 %v9319_v43, %v9367_v55 }
 0x56c   : > { %9438 = vmatmul.msk.bf16.gmra.mxu2 %vm311_vm1, %v6608_v16 }
 0x56d   : > { %v11888_v34 = vadd.f32 %v6711_v60, %v6502_v6  ;;  %v9269_v60 = vld [vmem:[%s9886_s8 + $0x181] sm:$0xff] }
 0x56e   : > { %v5850_v20 = vpop.f32.mrf.mxu3 }
 0x56f   : > { %v5927_v28 = vadd.f32 %v5850_v20, %v12507_v51  ;;  %v6714_v39 = vpop.f32.mrf.mxu2  ;;  %v6140_v40 = vpop.f32.mrf.mxu0  ;;  %v5746_v51 = vpack.c.bf16 %v9269_v60, %v9268_v23 }
 0x570   : > { %v6428_v45 = vpop.f32.mrf.mxu1 }
 0x571   : > { %v6215_v44 = vadd.f32 %v6138_v50, %v5927_v28 }
 0x573   : > { %v6503_v53 = vadd.f32 %v6426_v9, %v6215_v44  ;;  %v9419_v9 = vld [vmem:[%s9886_s8 + $0x18b] sm:$0xff] }
 0x575   : > { %v11892_v30 = vadd.f32 %v6714_v39, %v6503_v53 }
 0x576   : > { %v5852_v2 = vpop.f32.mrf.mxu3 }
 0x577   : > { %v5928_v52 = vadd.f32 %v5852_v2, %v12508_v21  ;;  %v6716_v38 = vpop.f32.mrf.mxu2  ;;  %v6143_v63 = vpop.f32.mrf.mxu0 }
 0x578   : > { %v6431_v5 = vpop.f32.mrf.mxu1 }
 0x579   : > { %v6216_v29 = vadd.f32 %v6140_v40, %v5928_v52  ;;  %9339 = vmatmul.msk.bf16.gmra.mxu0 %vm311_vm1, %v11720_v13  ;;  %v6610_v40 = vpack.c.bf16 %v9419_v9, %v9418_v10 }
 0x57b   : > { %v6504_v36 = vadd.f32 %v6428_v45, %v6216_v29  ;;  %9289 = vmatmul.msk.bf16.gmra.mxu3 %vm311_vm1, %v11711_v59  ;;  %9389 = vmatmul.msk.bf16.gmra.mxu1 %vm311_vm1, %v6321_v31  ;;  %v9369_v59 = vld [vmem:[%s9886_s8 + $0x18a] sm:$0xff]  ;;  %v9321_v31 = vld [vmem:[%s9886_s8 + $0x192] sm:$0xff]  ;;  %v9371_v29 = vld [vmem:[%s9886_s8 + $0x19a] sm:$0xff] }
 0x57c   : > { %9439 = vmatmul.msk.bf16.gmra.mxu2 %vm311_vm1, %v6609_v14  ;;  %v6322_v28 = vpack.c.bf16 %v9369_v59, %v9319_v43  ;;  %v9271_v14 = vld [vmem:[%s9886_s8 + $0x191] sm:$0xff]  ;;  %v6323_v23 = vpack.c.bf16 %v9371_v29, %v9321_v31 }
 0x57d   : > { %v11904_v24 = vadd.f32 %v6716_v38, %v6504_v36 }
 0x57e   : > { %v5855_v22 = vpop.f32.mrf.mxu3 }
 0x57f   : > { %v5929_v15 = vadd.f32 %v5855_v22, %v12509_v56  ;;  %v6719_v41 = vpop.f32.mrf.mxu2  ;;  %v6145_v8 = vpop.f32.mrf.mxu0  ;;  %v9420_v22 = vld [vmem:[%s9886_s8 + $0x193] sm:$0xff]  ;;  %v9421_v56 = vld [vmem:[%s9886_s8 + $0x19b] sm:$0xff] }
 0x580   : > { %v6433_v3 = vpop.f32.mrf.mxu1  ;;  %v6611_v10 = vpack.c.bf16 %v9421_v56, %v9420_v22 }
 0x581   : > { %v6217_v13 = vadd.f32 %v6143_v63, %v5929_v15 }
 0x583   : > { %v6505_v42 = vadd.f32 %v6431_v5, %v6217_v13  ;;  %v9270_v5 = vld [vmem:[%s9886_s8 + $0x189] sm:$0xff] }
 0x584   : > { %v5747_v43 = vpack.c.bf16 %v9271_v14, %v9270_v5 }
 0x585   : > { %v11911_v50 = vadd.f32 %v6719_v41, %v6505_v42  ;;  %v6035_v41 = vpack.c.bf16 %v9321_v31, %v9369_v59 }
 0x586   : > { %v5857_v16 = vpop.f32.mrf.mxu3 }
 0x587   : > { %v5930_v6 = vadd.f32 %v5857_v16, %v12510_v17  ;;  %v6721_v19 = vpop.f32.mrf.mxu2  ;;  %v6148_v20 = vpop.f32.mrf.mxu0  ;;  %v12513_v17 = vld [vmem:[#allocation31_spill] sm:$0xff] }
 0x588   : > { %v6436_v39 = vpop.f32.mrf.mxu1 }
 0x589   : > { %v6218_v45 = vadd.f32 %v6145_v8, %v5930_v6  ;;  %9340 = vmatmul.msk.bf16.gmra.mxu0 %vm311_vm1, %v6034_v7  ;;  %v12512_v8 = vld [vmem:[#allocation29_spill] sm:$0xff] }
 0x58b   : > { %v6506_v44 = vadd.f32 %v6433_v3, %v6218_v45  ;;  %9290 = vmatmul.msk.bf16.gmra.mxu3 %vm311_vm1, %v5746_v51  ;;  %9390 = vmatmul.msk.bf16.gmra.mxu1 %vm311_vm1, %v6322_v28  ;;  %v9272_v45 = vld [vmem:[%s9886_s8 + $0x199] sm:$0xff] }
 0x58c   : > { %9440 = vmatmul.msk.bf16.gmra.mxu2 %vm311_vm1, %v6610_v40  ;;  %v9323_v40 = vld [vmem:[%s9886_s8 + $0x1a2] sm:$0xff] }
 0x58d   : > { %v11920_v53 = vadd.f32 %v6721_v19, %v6506_v44  ;;  %v9273_v44 = vld [vmem:[%s9886_s8 + $0x1a1] sm:$0xff] }
 0x58e   : > { %v5860_v55 = vpop.f32.mrf.mxu3  ;;  %v5748_v14 = vpack.c.bf16 %v9273_v44, %v9272_v45 }
 0x58f   : > { %v5931_v61 = vadd.f32 %v5860_v55, %v12511_v32  ;;  %v6724_v2 = vpop.f32.mrf.mxu2  ;;  %v6150_v21 = vpop.f32.mrf.mxu0  ;;  %v9373_v55 = vld [vmem:[%s9886_s8 + $0x1aa] sm:$0xff] }
 0x590   : > { %v6438_v52 = vpop.f32.mrf.mxu1  ;;  %v6324_v22 = vpack.c.bf16 %v9373_v55, %v9323_v40 }
 0x591   : > { %v6219_v38 = vadd.f32 %v6148_v20, %v5931_v61  ;;  %v9422_v61 = vld [vmem:[%s9886_s8 + $0x1a3] sm:$0xff] }
 0x593   : > { %v6507_v63 = vadd.f32 %v6436_v39, %v6219_v38  ;;  %v12514_v38 = vld [vmem:[#allocation33_spill] sm:$0xff] }
 0x595   : > { %v11927_v36 = vadd.f32 %v6724_v2, %v6507_v63  ;;  %v9423_v2 = vld [vmem:[%s9886_s8 + $0x1ab] sm:$0xff] }
 0x596   : > { %v5862_v15 = vpop.f32.mrf.mxu3 }
 0x597   : > { %v5932_v3 = vadd.f32 %v5862_v15, %v12512_v8  ;;  %v6726_v13 = vpop.f32.mrf.mxu2  ;;  %v6153_v42 = vpop.f32.mrf.mxu0  ;;  %v6612_v15 = vpack.c.bf16 %v9423_v2, %v9422_v61 }
 0x598   : > { %v6441_v60 = vpop.f32.mrf.mxu1 }
 0x599   : > { %v6220_v9 = vadd.f32 %v6150_v21, %v5932_v3  ;;  %9341 = vmatmul.msk.bf16.gmra.mxu0 %vm311_vm1, %v6035_v41 }
 0x59b   : > { %v6508_v16 = vadd.f32 %v6438_v52, %v6220_v9  ;;  %9291 = vmatmul.msk.bf16.gmra.mxu3 %vm311_vm1, %v5747_v43  ;;  %9391 = vmatmul.msk.bf16.gmra.mxu1 %vm311_vm1, %v6323_v23  ;;  %v6036_v52 = vpack.c.bf16 %v9323_v40, %v9371_v29  ;;  %v12516_v40 = vld [vmem:[#allocation35_spill] sm:$0xff] }
 0x59c   : > { %9441 = vmatmul.msk.bf16.gmra.mxu2 %vm311_vm1, %v6611_v10 }
 0x59d   : > { %v11936_v59 = vadd.f32 %v6726_v13, %v6508_v16  ;;  %v12515_v13 = vld [vmem:[#allocation14_spill] sm:$0xff]  ;;  %v9325_v16 = vld [vmem:[%s9886_s8 + $0x1b2] sm:$0xff] }
 0x59e   : > { %v5865_v7 = vpop.f32.mrf.mxu3 }
 0x59f   : > { %v5933_v6 = vadd.f32 %v5865_v7, %v12513_v17  ;;  %v6729_v19 = vpop.f32.mrf.mxu2  ;;  %v6155_v20 = vpop.f32.mrf.mxu0  ;;  %v9274_v7 = vld [vmem:[%s9886_s8 + $0x1a9] sm:$0xff]  ;;  %v9275_v17 = vld [vmem:[%s9886_s8 + $0x1b1] sm:$0xff] }
 0x5a0   : > { %v6443_v51 = vpop.f32.mrf.mxu1  ;;  %v5749_v2 = vpack.c.bf16 %v9275_v17, %v9274_v7 }
 0x5a1   : > { %v6221_v28 = vadd.f32 %v6153_v42, %v5933_v6  ;;  %v9375_v6 = vld [vmem:[%s9886_s8 + $0x1ba] sm:$0xff] }
 0x5a3   : > { %v6509_v39 = vadd.f32 %v6441_v60, %v6221_v28 }
 0x5a5   : > { %v11943_v32 = vadd.f32 %v6729_v19, %v6509_v39  ;;  %v6037_v39 = vpack.c.bf16 %v9325_v16, %v9373_v55 }
 0x5a6   : > { %v5867_v21 = vpop.f32.mrf.mxu3 }
 0x5a7   : > { %v5934_v63 = vadd.f32 %v5867_v21, %v12514_v38  ;;  %v6731_v31 = vpop.f32.mrf.mxu2  ;;  %v6158_v5 = vpop.f32.mrf.mxu0  ;;  %v6325_v21 = vpack.c.bf16 %v9375_v6, %v9325_v16 }
 0x5a8   : > { %v6446_v56 = vpop.f32.mrf.mxu1 }
 0x5a9   : > { %v6222_v41 = vadd.f32 %v6155_v20, %v5934_v63  ;;  %9342 = vmatmul.msk.bf16.gmra.mxu0 %vm311_vm1, %v6036_v52  ;;  %v9424_v20 = vld [vmem:[%s9886_s8 + $0x1b3] sm:$0xff] }
 0x5ab   : > { %v6510_v8 = vadd.f32 %v6443_v51, %v6222_v41  ;;  %9292 = vmatmul.msk.bf16.gmra.mxu3 %vm311_vm1, %v5748_v14  ;;  %9392 = vmatmul.msk.bf16.gmra.mxu1 %vm311_vm1, %v6324_v22  ;;  %v9425_v51 = vld [vmem:[%s9886_s8 + $0x1bb] sm:$0xff] }
 0x5ac   : > { %9442 = vmatmul.msk.bf16.gmra.mxu2 %vm311_vm1, %v6612_v15  ;;  %v6613_v38 = vpack.c.bf16 %v9425_v51, %v9424_v20  ;;  %v12517_v14 = vld [vmem:[#allocation18_spill] sm:$0xff] }
 0x5ad   : > { %v11952_v29 = vadd.f32 %v6731_v31, %v6510_v8 }
 0x5ae   : > { %v5870_v3 = vpop.f32.mrf.mxu3 }
 0x5af   : > { %v5935_v42 = vadd.f32 %v5870_v3, %v12515_v13  ;;  %v6734_v43 = vpop.f32.mrf.mxu2  ;;  %v6160_v23 = vpop.f32.mrf.mxu0  ;;  %v9327_v13 = vld [vmem:[%s9886_s8 + $0x1c2] sm:$0xff] }
 0x5b0   : > { %v6448_v60 = vpop.f32.mrf.mxu1  ;;  %v6038_v7 = vpack.c.bf16 %v9327_v13, %v9375_v6 }
 0x5b1   : > { %v6223_v10 = vadd.f32 %v6158_v5, %v5935_v42  ;;  %v9276_v42 = vld [vmem:[%s9886_s8 + $0x1b9] sm:$0xff] }
 0x5b3   : > { %v6511_v9 = vadd.f32 %v6446_v56, %v6223_v10  ;;  %v9426_v10 = vld [vmem:[%s9886_s8 + $0x1c3] sm:$0xff] }
 0x5b5   : > { %v11959_v19 = vadd.f32 %v6734_v43, %v6511_v9  ;;  %v9277_v43 = vld [vmem:[%s9886_s8 + $0x1c1] sm:$0xff]  ;;  %v9427_v9 = vld [vmem:[%s9886_s8 + $0x1cb] sm:$0xff] }
 0x5b6   : > { %v5872_v28 = vpop.f32.mrf.mxu3 }
 0x5b7   : > { %v5936_v45 = vadd.f32 %v5872_v28, %v12516_v40  ;;  %v6736_v44 = vpop.f32.mrf.mxu2  ;;  %v6163_v61 = vpop.f32.mrf.mxu0  ;;  %v5750_v28 = vpack.c.bf16 %v9277_v43, %v9276_v42 }
 0x5b8   : > { %v6451_v52 = vpop.f32.mrf.mxu1 }
 0x5b9   : > { %v6224_v63 = vadd.f32 %v6160_v23, %v5936_v45  ;;  %9343 = vmatmul.msk.bf16.gmra.mxu0 %vm311_vm1, %v6037_v39  ;;  %v9377_v23 = vld [vmem:[%s9886_s8 + $0x1ca] sm:$0xff]  ;;  %v6614_v45 = vpack.c.bf16 %v9427_v9, %v9426_v10 }
 0x5ba   : > { %v6326_v39 = vpack.c.bf16 %v9377_v23, %v9327_v13 }
 0x5bb   : > { %v6512_v31 = vadd.f32 %v6448_v60, %v6224_v63  ;;  %9293 = vmatmul.msk.bf16.gmra.mxu3 %vm311_vm1, %v5749_v2  ;;  %9393 = vmatmul.msk.bf16.gmra.mxu1 %vm311_vm1, %v6325_v21 }
 0x5bc   : > { %9443 = vmatmul.msk.bf16.gmra.mxu2 %vm311_vm1, %v6613_v38 }
 0x5bd   : > { %v11968_v55 = vadd.f32 %v6736_v44, %v6512_v31 }
 0x5be   : > { %v5875_v5 = vpop.f32.mrf.mxu3 }
 0x5bf   : > { %v5937_v22 = vadd.f32 %v5875_v5, %v12517_v14  ;;  %v6739_v56 = vpop.f32.mrf.mxu2  ;;  %v6165_v15 = vpop.f32.mrf.mxu0  ;;  %v9447_v5 = vld [vmem:[%s9886_s8 + $0xdc] sm:$0xff]  ;;  %v9497_v14 = vld [vmem:[%s9886_s8 + $0xe4] sm:$0xff] }
 0x5c0   : > { %v6453_v41 = vpop.f32.mrf.mxu1  ;;  %v7175_v42 = vpack.c.bf16 %v9497_v14, %v9447_v5 }
 0x5c1   : > { %v6225_v8 = vadd.f32 %v6163_v61, %v5937_v22  ;;  %v9446_v22 = vld [vmem:[%s9886_s8 + $0xd4] sm:$0xff] }
 0x5c2   : > { %v6887_v10 = vpack.c.bf16 %v9447_v5, %v9446_v22 }
 0x5c3   : > { %v6513_v3 = vadd.f32 %v6451_v52, %v6225_v8  ;;  %v9596_v8 = vld [vmem:[%s9886_s8 + $0xde] sm:$0xff] }
 0x5c5   : > { %v11975_v60 = vadd.f32 %v6739_v56, %v6513_v3  ;;  %v9546_v56 = vld [vmem:[%s9886_s8 + $0xdd] sm:$0xff]  ;;  %v9597_v3 = vld [vmem:[%s9886_s8 + $0xe6] sm:$0xff] }
 0x5c6   : > { %v5877_v16 = vpop.f32.mrf.mxu3 }
 0x5c7   : > { %v5938_v17 = vadd.f32 %v5877_v16, %v11728_v57  ;;  %v6741_v20 = vpop.f32.mrf.mxu2  ;;  %v6168_v51 = vpop.f32.mrf.mxu0 }
 0x5c8   : > { %v6456_v40 = vpop.f32.mrf.mxu1 }
 0x5c9   : > { %v6226_v44 = vadd.f32 %v6165_v15, %v5938_v17  ;;  %9344 = vmatmul.msk.bf16.gmra.mxu0 %vm311_vm1, %v6038_v7  ;;  %v9547_v15 = vld [vmem:[%s9886_s8 + $0xe5] sm:$0xff]  ;;  %v7751_v7 = vpack.c.bf16 %v9597_v3, %v9596_v8 }
 0x5ca   : > { %v7463_v9 = vpack.c.bf16 %v9547_v15, %v9546_v56 }
 0x5cb   : > { %v6514_v61 = vadd.f32 %v6453_v41, %v6226_v44  ;;  %9294 = vmatmul.msk.bf16.gmra.mxu3 %vm311_vm1, %v5750_v28  ;;  %9394 = vmatmul.msk.bf16.gmra.mxu1 %vm311_vm1, %v6326_v39 }
 0x5cc   : > { %9444 = vmatmul.msk.bf16.gmra.mxu2 %vm311_vm1, %v6614_v45 }
 0x5cd   : > { %v11984_v57 = vadd.f32 %v6741_v20, %v6514_v61 }
 0x5ce   : > { %v5880_v6 = vpop.f32.mrf.mxu3 }
 0x5cf   : > { %v5939_v2 = vadd.f32 %v5880_v6, %v11731_v46  ;;  %v6744_v21 = vpop.f32.mrf.mxu2  ;;  %v6170_v52 = vpop.f32.mrf.mxu0  ;;  %v9449_v6 = vld [vmem:[%s9886_s8 + $0xec] sm:$0xff] }
 0x5d0   : > { %v6458_v38 = vpop.f32.mrf.mxu1 }
 0x5d1   : > { %v6227_v63 = vadd.f32 %v6168_v51, %v5939_v2  ;;  %v9499_v2 = vld [vmem:[%s9886_s8 + $0xf4] sm:$0xff] }
 0x5d2   : > { %v7176_v22 = vpack.c.bf16 %v9499_v2, %v9449_v6 }
 0x5d3   : > { %v6515_v31 = vadd.f32 %v6456_v40, %v6227_v63  ;;  %v9598_v63 = vld [vmem:[%s9886_s8 + $0xee] sm:$0xff] }
 0x5d5   : > { %v11992_v41 = vadd.f32 %v6744_v21, %v6515_v31  ;;  %v9548_v21 = vld [vmem:[%s9886_s8 + $0xed] sm:$0xff]  ;;  %v9599_v31 = vld [vmem:[%s9886_s8 + $0xf6] sm:$0xff] }
 0x5d6   : > { %v5882_v13 = vpop.f32.mrf.mxu3 }
 0x5d7   : > { %v5940_v43 = vadd.f32 %v5882_v13, %v11744_v47  ;;  %v6746_v23 = vpop.f32.mrf.mxu2  ;;  %v6173_v46 = vpop.f32.mrf.mxu0 }
 0x5d8   : > { %v6461_v16 = vpop.f32.mrf.mxu1 }
 0x5d9   : > { %v6228_v17 = vadd.f32 %v6170_v52, %v5940_v43  ;;  %9529 = vmatmul.msk.bf16.vlgmr.msra.gmra.mxu0 %vm311_vm1, %v7175_v42  ;;  %v9549_v52 = vld [vmem:[%s9886_s8 + $0xf5] sm:$0xff]  ;;  %v7752_v42 = vpack.c.bf16 %v9599_v31, %v9598_v63 }
 0x5da   : > { %v7464_v3 = vpack.c.bf16 %v9549_v52, %v9548_v21 }
 0x5db   : > { %v6516_v20 = vadd.f32 %v6458_v38, %v6228_v17  ;;  %9479 = vmatmul.msk.bf16.vlgmr.msra.gmra.mxu3 %vm311_vm1, %v6887_v10  ;;  %9579 = vmatmul.msk.bf16.vlgmr.msra.gmra.mxu1 %vm311_vm1, %v7463_v9 }
 0x5dc   : > { %9629 = vmatmul.msk.bf16.vlgmr.msra.gmra.mxu2 %vm311_vm1, %v7751_v7 }
 0x5dd   : > { %v12001_v47 = vadd.f32 %v6746_v23, %v6516_v20  ;;  %v9451_v20 = vld [vmem:[%s9886_s8 + $0xfc] sm:$0xff] }
 0x5de   : > { %v5885_v51 = vpop.f32.mrf.mxu3 }
 0x5df   : > { %v5941_v28 = vadd.f32 %v5885_v51, %v11747_v37  ;;  %v6749_v39 = vpop.f32.mrf.mxu2  ;;  %v6175_v40 = vpop.f32.mrf.mxu0  ;;  %v6888_v37 = vpack.c.bf16 %v9449_v6, %v9497_v14  ;;  %v9501_v51 = vld [vmem:[%s9886_s8 + $0x104] sm:$0xff] }
 0x5e0   : > { %v6463_v45 = vpop.f32.mrf.mxu1  ;;  %v7177_v6 = vpack.c.bf16 %v9501_v51, %v9451_v20 }
 0x5e1   : > { %v6229_v44 = vadd.f32 %v6173_v46, %v5941_v28  ;;  %v9550_v28 = vld [vmem:[%s9886_s8 + $0xfd] sm:$0xff] }
 0x5e3   : > { %v6517_v61 = vadd.f32 %v6461_v16, %v6229_v44  ;;  %v9601_v44 = vld [vmem:[%s9886_s8 + $0x106] sm:$0xff] }
 0x5e5   : > { %v12008_v38 = vadd.f32 %v6749_v39, %v6517_v61  ;;  %v9551_v39 = vld [vmem:[%s9886_s8 + $0x105] sm:$0xff] }
 0x5e6   : > { %v5887_v5 = vpop.f32.mrf.mxu3  ;;  %v7465_v31 = vpack.c.bf16 %v9551_v39, %v9550_v28 }
 0x5e7   : > { %v5942_v56 = vadd.f32 %v5887_v5, %v11760_v1  ;;  %v6751_v15 = vpop.f32.mrf.mxu2  ;;  %v6178_v8 = vpop.f32.mrf.mxu0 }
 0x5e8   : > { %v6466_v13 = vpop.f32.mrf.mxu1 }
 0x5e9   : > { %v6230_v43 = vadd.f32 %v6175_v40, %v5942_v56  ;;  %9530 = vmatmul.msk.bf16.gmra.mxu0 %vm311_vm1, %v7176_v22 }
 0x5eb   : > { %v6518_v23 = vadd.f32 %v6463_v45, %v6230_v43  ;;  %9480 = vmatmul.msk.bf16.gmra.mxu3 %vm311_vm1, %v6888_v37  ;;  %9580 = vmatmul.msk.bf16.gmra.mxu1 %vm311_vm1, %v7464_v3  ;;  %v9600_v45 = vld [vmem:[%s9886_s8 + $0xfe] sm:$0xff] }
 0x5ec   : > { %9630 = vmatmul.msk.bf16.gmra.mxu2 %vm311_vm1, %v7752_v42  ;;  %v7753_v22 = vpack.c.bf16 %v9601_v44, %v9600_v45 }
 0x5ed   : > { %v12017_v1 = vadd.f32 %v6751_v15, %v6518_v23  ;;  %v9453_v23 = vld [vmem:[%s9886_s8 + $0x10c] sm:$0xff] }
 0x5ee   : > { %v5890_v14 = vpop.f32.mrf.mxu3 }
 0x5ef   : > { %v5943_v46 = vadd.f32 %v5890_v14, %v11763_v18  ;;  %v6754_v10 = vpop.f32.mrf.mxu2  ;;  %v6180_v9 = vpop.f32.mrf.mxu0  ;;  %v6889_v18 = vpack.c.bf16 %v9451_v20, %v9499_v2  ;;  %v9503_v14 = vld [vmem:[%s9886_s8 + $0x114] sm:$0xff] }
 0x5f0   : > { %v6468_v16 = vpop.f32.mrf.mxu1  ;;  %v7178_v20 = vpack.c.bf16 %v9503_v14, %v9453_v23 }
 0x5f1   : > { %v6231_v7 = vadd.f32 %v6178_v8, %v5943_v46  ;;  %v9552_v46 = vld [vmem:[%s9886_s8 + $0x10d] sm:$0xff] }
 0x5f3   : > { %v6519_v17 = vadd.f32 %v6466_v13, %v6231_v7  ;;  %v9603_v7 = vld [vmem:[%s9886_s8 + $0x116] sm:$0xff] }
 0x5f5   : > { %v12024_v40 = vadd.f32 %v6754_v10, %v6519_v17  ;;  %v9553_v10 = vld [vmem:[%s9886_s8 + $0x115] sm:$0xff] }
 0x5f6   : > { %v5892_v61 = vpop.f32.mrf.mxu3  ;;  %v7466_v44 = vpack.c.bf16 %v9553_v10, %v9552_v46 }
 0x5f7   : > { %v5944_v21 = vadd.f32 %v5892_v61, %v11776_v11  ;;  %v6756_v52 = vpop.f32.mrf.mxu2  ;;  %v6183_v63 = vpop.f32.mrf.mxu0 }
 0x5f8   : > { %v6471_v5 = vpop.f32.mrf.mxu1 }
 0x5f9   : > { %v6232_v56 = vadd.f32 %v6180_v9, %v5944_v21  ;;  %9531 = vmatmul.msk.bf16.gmra.mxu0 %vm311_vm1, %v7177_v6 }
 0x5fb   : > { %v6520_v15 = vadd.f32 %v6468_v16, %v6232_v56  ;;  %9481 = vmatmul.msk.bf16.gmra.mxu3 %vm311_vm1, %v6889_v18  ;;  %9581 = vmatmul.msk.bf16.gmra.mxu1 %vm311_vm1, %v7465_v31  ;;  %v9602_v16 = vld [vmem:[%s9886_s8 + $0x10e] sm:$0xff] }
 0x5fc   : > { %9631 = vmatmul.msk.bf16.gmra.mxu2 %vm311_vm1, %v7753_v22  ;;  %v7754_v6 = vpack.c.bf16 %v9603_v7, %v9602_v16 }
 0x5fd   : > { %v12033_v11 = vadd.f32 %v6756_v52, %v6520_v15  ;;  %v9455_v15 = vld [vmem:[%s9886_s8 + $0x11c] sm:$0xff] }
 0x5fe   : > { %v5895_v2 = vpop.f32.mrf.mxu3 }
 0x5ff   : > { %v5945_v8 = vadd.f32 %v5895_v2, %v11779_v58  ;;  %v6759_v37 = vpop.f32.mrf.mxu2  ;;  %v6185_v3 = vpop.f32.mrf.mxu0  ;;  %v6890_v58 = vpack.c.bf16 %v9453_v23, %v9501_v51  ;;  %v9505_v2 = vld [vmem:[%s9886_s8 + $0x124] sm:$0xff] }
 0x600   : > { %v6473_v13 = vpop.f32.mrf.mxu1  ;;  %v7179_v23 = vpack.c.bf16 %v9505_v2, %v9455_v15 }
 0x601   : > { %v6233_v42 = vadd.f32 %v6183_v63, %v5945_v8  ;;  %v9554_v8 = vld [vmem:[%s9886_s8 + $0x11d] sm:$0xff] }
 0x603   : > { %v6521_v43 = vadd.f32 %v6471_v5, %v6233_v42  ;;  %v9605_v42 = vld [vmem:[%s9886_s8 + $0x126] sm:$0xff] }
 0x605   : > { %v12040_v9 = vadd.f32 %v6759_v37, %v6521_v43  ;;  %v9555_v37 = vld [vmem:[%s9886_s8 + $0x125] sm:$0xff] }
 0x606   : > { %v5897_v17 = vpop.f32.mrf.mxu3  ;;  %v7467_v7 = vpack.c.bf16 %v9555_v37, %v9554_v8 }
 0x607   : > { %v5946_v28 = vadd.f32 %v5897_v17, %v11792_v0  ;;  %v6761_v39 = vpop.f32.mrf.mxu2  ;;  %v6188_v45 = vpop.f32.mrf.mxu0 }
 0x608   : > { %v6476_v61 = vpop.f32.mrf.mxu1 }
 0x609   : > { %v6234_v21 = vadd.f32 %v6185_v3, %v5946_v28  ;;  %9532 = vmatmul.msk.bf16.gmra.mxu0 %vm311_vm1, %v7178_v20 }
 0x60b   : > { %v6522_v52 = vadd.f32 %v6473_v13, %v6234_v21  ;;  %9482 = vmatmul.msk.bf16.gmra.mxu3 %vm311_vm1, %v6890_v58  ;;  %9582 = vmatmul.msk.bf16.gmra.mxu1 %vm311_vm1, %v7466_v44  ;;  %v9604_v13 = vld [vmem:[%s9886_s8 + $0x11e] sm:$0xff] }
 0x60c   : > { %9632 = vmatmul.msk.bf16.gmra.mxu2 %vm311_vm1, %v7754_v6  ;;  %v7755_v20 = vpack.c.bf16 %v9605_v42, %v9604_v13 }
 0x60d   : > { %v12049_v0 = vadd.f32 %v6761_v39, %v6522_v52  ;;  %v9457_v52 = vld [vmem:[%s9886_s8 + $0x12c] sm:$0xff] }
 0x60e   : > { %v5900_v51 = vpop.f32.mrf.mxu3 }
 0x60f   : > { %v5947_v63 = vadd.f32 %v5900_v51, %v11795_v33  ;;  %v6764_v18 = vpop.f32.mrf.mxu2  ;;  %v6190_v31 = vpop.f32.mrf.mxu0  ;;  %v6891_v33 = vpack.c.bf16 %v9455_v15, %v9503_v14  ;;  %v9507_v51 = vld [vmem:[%s9886_s8 + $0x134] sm:$0xff] }
 0x610   : > { %v6478_v5 = vpop.f32.mrf.mxu1  ;;  %v7180_v15 = vpack.c.bf16 %v9507_v51, %v9457_v52 }
 0x611   : > { %v6235_v22 = vadd.f32 %v6188_v45, %v5947_v63  ;;  %v9556_v63 = vld [vmem:[%s9886_s8 + $0x12d] sm:$0xff] }
 0x613   : > { %v6523_v56 = vadd.f32 %v6476_v61, %v6235_v22  ;;  %v9607_v22 = vld [vmem:[%s9886_s8 + $0x136] sm:$0xff] }
 0x615   : > { %v12056_v3 = vadd.f32 %v6764_v18, %v6523_v56  ;;  %v9557_v18 = vld [vmem:[%s9886_s8 + $0x135] sm:$0xff] }
 0x616   : > { %v5902_v43 = vpop.f32.mrf.mxu3  ;;  %v7468_v42 = vpack.c.bf16 %v9557_v18, %v9556_v63 }
 0x617   : > { %v5948_v46 = vadd.f32 %v5902_v43, %v11808_v12  ;;  %v6766_v10 = vpop.f32.mrf.mxu2  ;;  %v6193_v16 = vpop.f32.mrf.mxu0 }
 0x618   : > { %v6481_v17 = vpop.f32.mrf.mxu1 }
 0x619   : > { %v6236_v28 = vadd.f32 %v6190_v31, %v5948_v46  ;;  %9533 = vmatmul.msk.bf16.gmra.mxu0 %vm311_vm1, %v7179_v23 }
 0x61b   : > { %v6524_v39 = vadd.f32 %v6478_v5, %v6236_v28  ;;  %9483 = vmatmul.msk.bf16.gmra.mxu3 %vm311_vm1, %v6891_v33  ;;  %9583 = vmatmul.msk.bf16.gmra.mxu1 %vm311_vm1, %v7467_v7  ;;  %v9606_v5 = vld [vmem:[%s9886_s8 + $0x12e] sm:$0xff] }
 0x61c   : > { %9633 = vmatmul.msk.bf16.gmra.mxu2 %vm311_vm1, %v7755_v20  ;;  %v7756_v23 = vpack.c.bf16 %v9607_v22, %v9606_v5 }
 0x61d   : > { %v12065_v12 = vadd.f32 %v6766_v10, %v6524_v39  ;;  %v9459_v39 = vld [vmem:[%s9886_s8 + $0x13c] sm:$0xff] }
 0x61e   : > { %v5905_v14 = vpop.f32.mrf.mxu3 }
 0x61f   : > { %v5949_v45 = vadd.f32 %v5905_v14, %v11811_v25  ;;  %v6769_v58 = vpop.f32.mrf.mxu2  ;;  %v6195_v44 = vpop.f32.mrf.mxu0  ;;  %v6892_v25 = vpack.c.bf16 %v9457_v52, %v9505_v2  ;;  %v9509_v14 = vld [vmem:[%s9886_s8 + $0x144] sm:$0xff] }
 0x620   : > { %v6483_v61 = vpop.f32.mrf.mxu1  ;;  %v7181_v52 = vpack.c.bf16 %v9509_v14, %v9459_v39 }
 0x621   : > { %v6237_v6 = vadd.f32 %v6193_v16, %v5949_v45  ;;  %v9558_v45 = vld [vmem:[%s9886_s8 + $0x13d] sm:$0xff] }
 0x623   : > { %v6525_v21 = vadd.f32 %v6481_v17, %v6237_v6  ;;  %v9609_v6 = vld [vmem:[%s9886_s8 + $0x146] sm:$0xff] }
 0x625   : > { %v12072_v31 = vadd.f32 %v6769_v58, %v6525_v21  ;;  %v9559_v58 = vld [vmem:[%s9886_s8 + $0x145] sm:$0xff] }
 0x626   : > { %v5907_v56 = vpop.f32.mrf.mxu3  ;;  %v7469_v22 = vpack.c.bf16 %v9559_v58, %v9558_v45 }
 0x627   : > { %v5950_v8 = vadd.f32 %v5907_v56, %v11824_v4  ;;  %v6771_v37 = vpop.f32.mrf.mxu2  ;;  %v6198_v13 = vpop.f32.mrf.mxu0 }
 0x628   : > { %v6486_v43 = vpop.f32.mrf.mxu1 }
 0x629   : > { %v6238_v46 = vadd.f32 %v6195_v44, %v5950_v8  ;;  %9534 = vmatmul.msk.bf16.gmra.mxu0 %vm311_vm1, %v7180_v15 }
 0x62b   : > { %v6526_v10 = vadd.f32 %v6483_v61, %v6238_v46  ;;  %9484 = vmatmul.msk.bf16.gmra.mxu3 %vm311_vm1, %v6892_v25  ;;  %9584 = vmatmul.msk.bf16.gmra.mxu1 %vm311_vm1, %v7468_v42  ;;  %v9608_v61 = vld [vmem:[%s9886_s8 + $0x13e] sm:$0xff] }
 0x62c   : > { %9634 = vmatmul.msk.bf16.gmra.mxu2 %vm311_vm1, %v7756_v23  ;;  %v7757_v15 = vpack.c.bf16 %v9609_v6, %v9608_v61 }
 0x62d   : > { %v12081_v4 = vadd.f32 %v6771_v37, %v6526_v10  ;;  %v9461_v10 = vld [vmem:[%s9886_s8 + $0x14c] sm:$0xff] }
 0x62e   : > { %v5910_v2 = vpop.f32.mrf.mxu3 }
 0x62f   : > { %v5951_v16 = vadd.f32 %v5910_v2, %v11827_v62  ;;  %v6774_v33 = vpop.f32.mrf.mxu2  ;;  %v6200_v7 = vpop.f32.mrf.mxu0  ;;  %v6893_v62 = vpack.c.bf16 %v9459_v39, %v9507_v51  ;;  %v9511_v2 = vld [vmem:[%s9886_s8 + $0x154] sm:$0xff] }
 0x630   : > { %v6488_v17 = vpop.f32.mrf.mxu1  ;;  %v7182_v39 = vpack.c.bf16 %v9511_v2, %v9461_v10 }
 0x631   : > { %v6239_v20 = vadd.f32 %v6198_v13, %v5951_v16  ;;  %v9560_v16 = vld [vmem:[%s9886_s8 + $0x14d] sm:$0xff] }
 0x633   : > { %v6527_v28 = vadd.f32 %v6486_v43, %v6239_v20  ;;  %v9611_v20 = vld [vmem:[%s9886_s8 + $0x156] sm:$0xff] }
 0x635   : > { %v12088_v44 = vadd.f32 %v6774_v33, %v6527_v28  ;;  %v9561_v33 = vld [vmem:[%s9886_s8 + $0x155] sm:$0xff] }
 0x636   : > { %v5912_v21 = vpop.f32.mrf.mxu3  ;;  %v7470_v6 = vpack.c.bf16 %v9561_v33, %v9560_v16 }
 0x637   : > { %v5952_v63 = vadd.f32 %v5912_v21, %v11840_v35  ;;  %v6776_v18 = vpop.f32.mrf.mxu2  ;;  %v6203_v5 = vpop.f32.mrf.mxu0 }
 0x638   : > { %v6491_v56 = vpop.f32.mrf.mxu1 }
 0x639   : > { %v6240_v8 = vadd.f32 %v6200_v7, %v5952_v63  ;;  %9535 = vmatmul.msk.bf16.gmra.mxu0 %vm311_vm1, %v7181_v52 }
 0x63b   : > { %v6528_v37 = vadd.f32 %v6488_v17, %v6240_v8  ;;  %9485 = vmatmul.msk.bf16.gmra.mxu3 %vm311_vm1, %v6893_v62  ;;  %9585 = vmatmul.msk.bf16.gmra.mxu1 %vm311_vm1, %v7469_v22  ;;  %v9610_v17 = vld [vmem:[%s9886_s8 + $0x14e] sm:$0xff] }
 0x63c   : > { %9635 = vmatmul.msk.bf16.gmra.mxu2 %vm311_vm1, %v7757_v15  ;;  %v7758_v52 = vpack.c.bf16 %v9611_v20, %v9610_v17 }
 0x63d   : > { %v12097_v35 = vadd.f32 %v6776_v18, %v6528_v37  ;;  %v9463_v37 = vld [vmem:[%s9886_s8 + $0x15c] sm:$0xff] }
 0x63e   : > { %v5915_v51 = vpop.f32.mrf.mxu3 }
 0x63f   : > { %v5953_v13 = vadd.f32 %v5915_v51, %v11843_v48  ;;  %v6779_v25 = vpop.f32.mrf.mxu2  ;;  %v6205_v42 = vpop.f32.mrf.mxu0  ;;  %v6894_v48 = vpack.c.bf16 %v9461_v10, %v9509_v14  ;;  %v9513_v51 = vld [vmem:[%s9886_s8 + $0x164] sm:$0xff] }
 0x640   : > { %v6493_v43 = vpop.f32.mrf.mxu1  ;;  %v7183_v10 = vpack.c.bf16 %v9513_v51, %v9463_v37 }
 0x641   : > { %v6241_v23 = vadd.f32 %v6203_v5, %v5953_v13  ;;  %v9562_v13 = vld [vmem:[%s9886_s8 + $0x15d] sm:$0xff] }
 0x643   : > { %v6529_v46 = vadd.f32 %v6491_v56, %v6241_v23  ;;  %v9613_v23 = vld [vmem:[%s9886_s8 + $0x166] sm:$0xff] }
 0x645   : > { %v12104_v7 = vadd.f32 %v6779_v25, %v6529_v46  ;;  %v9563_v25 = vld [vmem:[%s9886_s8 + $0x165] sm:$0xff] }
 0x646   : > { %v5917_v28 = vpop.f32.mrf.mxu3  ;;  %v7471_v20 = vpack.c.bf16 %v9563_v25, %v9562_v13 }
 0x647   : > { %v5954_v45 = vadd.f32 %v5917_v28, %v11856_v49  ;;  %v6781_v58 = vpop.f32.mrf.mxu2  ;;  %v6208_v61 = vpop.f32.mrf.mxu0 }
 0x648   : > { %v6496_v21 = vpop.f32.mrf.mxu1 }
 0x649   : > { %v6242_v63 = vadd.f32 %v6205_v42, %v5954_v45  ;;  %9536 = vmatmul.msk.bf16.gmra.mxu0 %vm311_vm1, %v7182_v39 }
 0x64b   : > { %v6530_v18 = vadd.f32 %v6493_v43, %v6242_v63  ;;  %9486 = vmatmul.msk.bf16.gmra.mxu3 %vm311_vm1, %v6894_v48  ;;  %9586 = vmatmul.msk.bf16.gmra.mxu1 %vm311_vm1, %v7470_v6  ;;  %v9612_v43 = vld [vmem:[%s9886_s8 + $0x15e] sm:$0xff] }
 0x64c   : > { %9636 = vmatmul.msk.bf16.gmra.mxu2 %vm311_vm1, %v7758_v52  ;;  %v7759_v39 = vpack.c.bf16 %v9613_v23, %v9612_v43 }
 0x64d   : > { %v12113_v49 = vadd.f32 %v6781_v58, %v6530_v18  ;;  %v12136_v18 = vld [vmem:[%s12349_s2] ss:$0 sm:$0xff] }
 0x64e   : > { %v5920_v14 = vpop.f32.mrf.mxu3 }
 0x64f   : > { %v5955_v5 = vadd.f32 %v5920_v14, %v11859_v27  ;;  %v6784_v62 = vpop.f32.mrf.mxu2  ;;  %v6210_v22 = vpop.f32.mrf.mxu0  ;;  %v6895_v27 = vpack.c.bf16 %v9463_v37, %v9511_v2  ;;  %v9465_v14 = vld [vmem:[%s9886_s8 + $0x16c] sm:$0xff] }
 0x650   : > { %v6498_v56 = vpop.f32.mrf.mxu1 }
 0x651   : > { %v6243_v15 = vadd.f32 %v6208_v61, %v5955_v5  ;;  %v9515_v5 = vld [vmem:[%s9886_s8 + $0x174] sm:$0xff] }
 0x652   : > { %v7184_v37 = vpack.c.bf16 %v9515_v5, %v9465_v14 }
 0x653   : > { %v6531_v8 = vadd.f32 %v6496_v21, %v6243_v15  ;;  %v9614_v15 = vld [vmem:[%s9886_s8 + $0x16e] sm:$0xff] }
 0x655   : > { %v12120_v42 = vadd.f32 %v6784_v62, %v6531_v8  ;;  %v9564_v62 = vld [vmem:[%s9886_s8 + $0x16d] sm:$0xff] }
 0x656   : > { %v5922_v46 = vpop.f32.mrf.mxu3 }
 0x657   : > { %v5956_v16 = vadd.f32 %v5922_v46, %v11872_v26  ;;  %v6786_v33 = vpop.f32.mrf.mxu2  ;;  %v7285_v17 = vpop.f32.mrf.mxu0  ;;  %v6896_v46 = vpack.c.bf16 %v9465_v14, %v9513_v51  ;;  %v9567_v14 = vld [vmem:[%s9886_s8 + $0x185] sm:$0xff] }
 0x658   : > { %v7573_v28 = vpop.f32.mrf.mxu1 }
 0x659   : > { %v6244_v45 = vadd.f32 %v6210_v22, %v5956_v16  ;;  %9537 = vmatmul.msk.bf16.gmra.mxu0 %vm311_vm1, %v7183_v10  ;;  %v9565_v22 = vld [vmem:[%s9886_s8 + $0x175] sm:$0xff] }
 0x65a   : > { %v7472_v10 = vpack.c.bf16 %v9565_v22, %v9564_v62  ;;  %v9616_v22 = vld [vmem:[%s9886_s8 + $0x17e] sm:$0xff] }
 0x65b   : > { %v6532_v58 = vadd.f32 %v6498_v56, %v6244_v45  ;;  %9487 = vmatmul.msk.bf16.gmra.mxu3 %vm311_vm1, %v6895_v27  ;;  %9587 = vmatmul.msk.bf16.gmra.mxu1 %vm311_vm1, %v7471_v20 }
 0x65c   : > { %9637 = vmatmul.msk.bf16.gmra.mxu2 %vm311_vm1, %v7759_v39 }
 0x65d   : > { %v12129_v26 = vadd.f32 %v6786_v33, %v6532_v58 }
 0x65e   : > { %v6997_v2 = vpop.f32.mrf.mxu3 }
 0x65f   : > { %v7077_v61 = vadd.f32 %v6997_v2, %v11875_v54  ;;  %v7861_v48 = vpop.f32.mrf.mxu2  ;;  %v7287_v6 = vpop.f32.mrf.mxu0  ;;  %v9615_v54 = vld [vmem:[%s9886_s8 + $0x176] sm:$0xff] }
 0x660   : > { %v7575_v21 = vpop.f32.mrf.mxu1  ;;  %v7760_v33 = vpack.c.bf16 %v9615_v54, %v9614_v15 }
 0x661   : > { %v7365_v52 = vadd.f32 %v7285_v17, %v7077_v61 }
 0x663   : > { %v7653_v63 = vadd.f32 %v7573_v28, %v7365_v52  ;;  %v9517_v52 = vld [vmem:[%s9886_s8 + $0x184] sm:$0xff] }
 0x665   : > { %v7941_v56 = vadd.f32 %v7861_v48, %v7653_v63  ;;  %v9566_v63 = vld [vmem:[%s9886_s8 + $0x17d] sm:$0xff] }
 0x666   : > { %v6999_v8 = vpop.f32.mrf.mxu3 }
 0x667   : > { %v8041_v13 = vadd.f32 %v12136_v18, %v7941_v56  ;;  %v7078_v25 = vadd.f32 %v6999_v8, %v11888_v34  ;;  %v7863_v43 = vpop.f32.mrf.mxu2  ;;  %v7290_v23 = vpop.f32.mrf.mxu0  ;;  %v9617_v56 = vld [vmem:[%s9886_s8 + $0x186] sm:$0xff] }
 0x668   : > { %v7578_v16 = vpop.f32.mrf.mxu1 }
 0x669   : > { %v8073_v17 = vmax.f32 %v8041_v13, 0.0  ;;  %v7366_v27 = vadd.f32 %v7287_v6, %v7078_v25  ;;  %9538 = vmatmul.msk.bf16.gmra.mxu0 %vm311_vm1, %v7184_v37 }
 0x66b   : > { %8105 = vst [vmem:[%s12149_s26] sm:$0xff] %v8073_v17  ;;  %v7654_v20 = vadd.f32 %v7575_v21, %v7366_v27  ;;  %9488 = vmatmul.msk.bf16.gmra.mxu3 %vm311_vm1, %v6896_v46  ;;  %9588 = vmatmul.msk.bf16.gmra.mxu1 %vm311_vm1, %v7472_v10  ;;  %v9467_v21 = vld [vmem:[%s9886_s8 + $0x17c] sm:$0xff]  ;;  %v7761_v46 = vpack.c.bf16 %v9617_v56, %v9616_v22 }
 0x66c   : > { %9638 = vmatmul.msk.bf16.gmra.mxu2 %vm311_vm1, %v7760_v33  ;;  %v7185_v54 = vpack.c.bf16 %v9517_v52, %v9467_v21  ;;  %v6897_v25 = vpack.c.bf16 %v9467_v21, %v9515_v5  ;;  %v9618_v21 = vld [vmem:[%s9886_s8 + $0x18e] sm:$0xff] }
 0x66d   : > { %v7942_v34 = vadd.f32 %v7863_v43, %v7654_v20  ;;  %v7473_v43 = vpack.c.bf16 %v9567_v14, %v9566_v63  ;;  %v9619_v63 = vld [vmem:[%s9886_s8 + $0x196] sm:$0xff] }
 0x66e   : > { %v7002_v51 = vpop.f32.mrf.mxu3 }
 0x66f   : > { %v8042_v28 = vadd.f32 %v12136_v18, %v7942_v34  ;;  %v7079_v39 = vadd.f32 %v7002_v51, %v11892_v30  ;;  %v7866_v45 = vpop.f32.mrf.mxu2  ;;  %v7292_v58 = vpop.f32.mrf.mxu0 }
 0x670   : > { %v7580_v2 = vpop.f32.mrf.mxu1 }
 0x671   : > { %v8074_v61 = vmax.f32 %v8042_v28, 0.0  ;;  %v7367_v48 = vadd.f32 %v7290_v23, %v7079_v39 }
 0x673   : > { %8106 = vst [vmem:[%s12149_s26 + $0x8] sm:$0xff] %v8074_v61  ;;  %v7655_v6 = vadd.f32 %v7578_v16, %v7367_v48  ;;  %v9568_v61 = vld [vmem:[%s9886_s8 + $0x18d] sm:$0xff]  ;;  %v9569_v48 = vld [vmem:[%s9886_s8 + $0x195] sm:$0xff] }
 0x675   : > { %v7943_v62 = vadd.f32 %v7866_v45, %v7655_v6 }
 0x676   : > { %v7004_v15 = vpop.f32.mrf.mxu3 }
 0x677   : > { %v8043_v8 = vadd.f32 %v12136_v18, %v7943_v62  ;;  %v7080_v30 = vadd.f32 %v7004_v15, %v11904_v24  ;;  %v7868_v37 = vpop.f32.mrf.mxu2  ;;  %v7295_v13 = vpop.f32.mrf.mxu0 }
 0x678   : > { %v7583_v23 = vpop.f32.mrf.mxu1 }
 0x679   : > { %v8075_v10 = vmax.f32 %v8043_v8, 0.0  ;;  %v7368_v16 = vadd.f32 %v7292_v58, %v7080_v30  ;;  %9539 = vmatmul.msk.bf16.gmra.mxu0 %vm311_vm1, %v7185_v54  ;;  %v9469_v58 = vld [vmem:[%s9886_s8 + $0x18c] sm:$0xff]  ;;  %v7474_v8 = vpack.c.bf16 %v9569_v48, %v9568_v61 }
 0x67a   : > { %v6898_v54 = vpack.c.bf16 %v9469_v58, %v9517_v52 }
 0x67b   : > { %8107 = vst [vmem:[%s12149_s26 + $0x10] sm:$0xff] %v8075_v10  ;;  %v7656_v33 = vadd.f32 %v7580_v2, %v7368_v16  ;;  %9489 = vmatmul.msk.bf16.gmra.mxu3 %vm311_vm1, %v6897_v25  ;;  %9589 = vmatmul.msk.bf16.gmra.mxu1 %vm311_vm1, %v7473_v43  ;;  %v9519_v2 = vld [vmem:[%s9886_s8 + $0x194] sm:$0xff] }
 0x67c   : > { %9639 = vmatmul.msk.bf16.gmra.mxu2 %vm311_vm1, %v7761_v46  ;;  %v7186_v62 = vpack.c.bf16 %v9519_v2, %v9469_v58 }
 0x67d   : > { %v7944_v24 = vadd.f32 %v7868_v37, %v7656_v33  ;;  %v7762_v37 = vpack.c.bf16 %v9619_v63, %v9618_v21 }
 0x67e   : > { %v7007_v5 = vpop.f32.mrf.mxu3 }
 0x67f   : > { %v8044_v17 = vadd.f32 %v12136_v18, %v7944_v24  ;;  %v7081_v27 = vadd.f32 %v7007_v5, %v11911_v50  ;;  %v7871_v20 = vpop.f32.mrf.mxu2  ;;  %v7297_v34 = vpop.f32.mrf.mxu0 }
 0x680   : > { %v7585_v51 = vpop.f32.mrf.mxu1 }
 0x681   : > { %v8076_v28 = vmax.f32 %v8044_v17, 0.0  ;;  %v7369_v39 = vadd.f32 %v7295_v13, %v7081_v27  ;;  %v9471_v27 = vld [vmem:[%s9886_s8 + $0x19c] sm:$0xff] }
 0x682   : > { %v6899_v63 = vpack.c.bf16 %v9471_v27, %v9519_v2 }
 0x683   : > { %8108 = vst [vmem:[%s12149_s26 + $0x18] sm:$0xff] %v8076_v28  ;;  %v7657_v45 = vadd.f32 %v7583_v23, %v7369_v39  ;;  %v9620_v39 = vld [vmem:[%s9886_s8 + $0x19e] sm:$0xff] }
 0x685   : > { %v7945_v6 = vadd.f32 %v7871_v20, %v7657_v45  ;;  %v9521_v20 = vld [vmem:[%s9886_s8 + $0x1a4] sm:$0xff] }
 0x686   : > { %v7009_v14 = vpop.f32.mrf.mxu3  ;;  %v9621_v45 = vld [vmem:[%s9886_s8 + $0x1a6] sm:$0xff]  ;;  %v7187_v61 = vpack.c.bf16 %v9521_v20, %v9471_v27 }
 0x687   : > { %v8045_v22 = vadd.f32 %v12136_v18, %v7945_v6  ;;  %v7082_v50 = vadd.f32 %v7009_v14, %v11920_v53  ;;  %v7873_v56 = vpop.f32.mrf.mxu2  ;;  %v7300_v15 = vpop.f32.mrf.mxu0 }
 0x688   : > { %v7588_v30 = vpop.f32.mrf.mxu1 }
 0x689   : > { %v8077_v13 = vmax.f32 %v8045_v22, 0.0  ;;  %v7370_v25 = vadd.f32 %v7297_v34, %v7082_v50  ;;  %9540 = vmatmul.msk.bf16.gmra.mxu0 %vm311_vm1, %v7186_v62  ;;  %v9570_v34 = vld [vmem:[%s9886_s8 + $0x19d] sm:$0xff]  ;;  %v7763_v22 = vpack.c.bf16 %v9621_v45, %v9620_v39 }
 0x68b   : > { %8109 = vst [vmem:[%s12149_s26 + $0x20] sm:$0xff] %v8077_v13  ;;  %v7658_v43 = vadd.f32 %v7585_v51, %v7370_v25  ;;  %9490 = vmatmul.msk.bf16.gmra.mxu3 %vm311_vm1, %v6898_v54  ;;  %9590 = vmatmul.msk.bf16.gmra.mxu1 %vm311_vm1, %v7474_v8  ;;  %v9571_v51 = vld [vmem:[%s9886_s8 + $0x1a5] sm:$0xff] }
 0x68c   : > { %9640 = vmatmul.msk.bf16.gmra.mxu2 %vm311_vm1, %v7762_v37  ;;  %v7475_v14 = vpack.c.bf16 %v9571_v51, %v9570_v34 }
 0x68d   : > { %v7946_v53 = vadd.f32 %v7873_v56, %v7658_v43 }
 0x68e   : > { %v7012_v52 = vpop.f32.mrf.mxu3 }
 0x68f   : > { %v8046_v23 = vadd.f32 %v12136_v18, %v7946_v53  ;;  %v7083_v46 = vadd.f32 %v7012_v52, %v11927_v36  ;;  %v7876_v10 = vpop.f32.mrf.mxu2  ;;  %v7302_v16 = vpop.f32.mrf.mxu0  ;;  %v9473_v52 = vld [vmem:[%s9886_s8 + $0x1ac] sm:$0xff] }
 0x690   : > { %v7590_v33 = vpop.f32.mrf.mxu1 }
 0x691   : > { %v8078_v24 = vmax.f32 %v8046_v23, 0.0  ;;  %v7371_v5 = vadd.f32 %v7300_v15, %v7083_v46  ;;  %v9523_v23 = vld [vmem:[%s9886_s8 + $0x1b4] sm:$0xff] }
 0x692   : > { %v9572_v46 = vld [vmem:[%s9886_s8 + $0x1ad] sm:$0xff] }
 0x693   : > { %8110 = vst [vmem:[%s12149_s26 + $0x28] sm:$0xff] %v8078_v24  ;;  %v7659_v17 = vadd.f32 %v7588_v30, %v7371_v5  ;;  %v9623_v24 = vld [vmem:[%s9886_s8 + $0x1b6] sm:$0xff] }
 0x695   : > { %v7947_v28 = vadd.f32 %v7876_v10, %v7659_v17  ;;  %v9573_v10 = vld [vmem:[%s9886_s8 + $0x1b5] sm:$0xff]  ;;  %v7188_v17 = vpack.c.bf16 %v9523_v23, %v9473_v52 }
 0x696   : > { %v7014_v58 = vpop.f32.mrf.mxu3  ;;  %v7476_v39 = vpack.c.bf16 %v9573_v10, %v9572_v46 }
 0x697   : > { %v8047_v48 = vadd.f32 %v12136_v18, %v7947_v28  ;;  %v7084_v36 = vadd.f32 %v7014_v58, %v11936_v59  ;;  %v7878_v6 = vpop.f32.mrf.mxu2  ;;  %v7305_v21 = vpop.f32.mrf.mxu0  ;;  %v6900_v28 = vpack.c.bf16 %v9473_v52, %v9521_v20 }
 0x698   : > { %v7593_v62 = vpop.f32.mrf.mxu1 }
 0x699   : > { %v8079_v50 = vmax.f32 %v8047_v48, 0.0  ;;  %v7372_v56 = vadd.f32 %v7302_v16, %v7084_v36  ;;  %9541 = vmatmul.msk.bf16.gmra.mxu0 %vm311_vm1, %v7187_v61 }
 0x69b   : > { %8111 = vst [vmem:[%s12149_s26 + $0x30] sm:$0xff] %v8079_v50  ;;  %v7660_v15 = vadd.f32 %v7590_v33, %v7372_v56  ;;  %9491 = vmatmul.msk.bf16.gmra.mxu3 %vm311_vm1, %v6899_v63  ;;  %9591 = vmatmul.msk.bf16.gmra.mxu1 %vm311_vm1, %v7475_v14  ;;  %v9622_v33 = vld [vmem:[%s9886_s8 + $0x1ae] sm:$0xff] }
 0x69c   : > { %9641 = vmatmul.msk.bf16.gmra.mxu2 %vm311_vm1, %v7763_v22  ;;  %v7764_v58 = vpack.c.bf16 %v9623_v24, %v9622_v33 }
 0x69d   : > { %v7948_v59 = vadd.f32 %v7878_v6, %v7660_v15  ;;  %v9475_v15 = vld [vmem:[%s9886_s8 + $0x1bc] sm:$0xff] }
 0x69e   : > { %v7017_v2 = vpop.f32.mrf.mxu3  ;;  %v6901_v46 = vpack.c.bf16 %v9475_v15, %v9523_v23 }
 0x69f   : > { %v8048_v54 = vadd.f32 %v12136_v18, %v7948_v59  ;;  %v7085_v8 = vadd.f32 %v7017_v2, %v11943_v32  ;;  %v7881_v30 = vpop.f32.mrf.mxu2  ;;  %v7307_v37 = vpop.f32.mrf.mxu0  ;;  %v9525_v59 = vld [vmem:[%s9886_s8 + $0x1c4] sm:$0xff] }
 0x6a0   : > { %v7595_v13 = vpop.f32.mrf.mxu1  ;;  %v9574_v2 = vld [vmem:[%s9886_s8 + $0x1bd] sm:$0xff] }
 0x6a1   : > { %v8080_v25 = vmax.f32 %v8048_v54, 0.0  ;;  %v7373_v43 = vadd.f32 %v7305_v21, %v7085_v8  ;;  %v9575_v54 = vld [vmem:[%s9886_s8 + $0x1c5] sm:$0xff] }
 0x6a2   : > { %v7477_v10 = vpack.c.bf16 %v9575_v54, %v9574_v2 }
 0x6a3   : > { %8112 = vst [vmem:[%s12149_s26 + $0x38] sm:$0xff] %v8080_v25  ;;  %v7661_v53 = vadd.f32 %v7593_v62, %v7373_v43  ;;  %v7189_v25 = vpack.c.bf16 %v9525_v59, %v9475_v15 }
 0x6a5   : > { %v7949_v16 = vadd.f32 %v7881_v30, %v7661_v53  ;;  %v9624_v30 = vld [vmem:[%s9886_s8 + $0x1be] sm:$0xff] }
 0x6a6   : > { %v7019_v5 = vpop.f32.mrf.mxu3 }
 0x6a7   : > { %v8049_v27 = vadd.f32 %v12136_v18, %v7949_v16  ;;  %v7086_v32 = vadd.f32 %v7019_v5, %v11952_v29  ;;  %v7883_v34 = vpop.f32.mrf.mxu2  ;;  %v7310_v51 = vpop.f32.mrf.mxu0 }
 0x6a8   : > { %v7598_v45 = vpop.f32.mrf.mxu1 }
 0x6a9   : > { %v8081_v61 = vmax.f32 %v8049_v27, 0.0  ;;  %v7374_v48 = vadd.f32 %v7307_v37, %v7086_v32  ;;  %9542 = vmatmul.msk.bf16.gmra.mxu0 %vm311_vm1, %v7188_v17  ;;  %v9625_v37 = vld [vmem:[%s9886_s8 + $0x1c6] sm:$0xff] }
 0x6aa   : > { %v7765_v33 = vpack.c.bf16 %v9625_v37, %v9624_v30 }
 0x6ab   : > { %8113 = vst [vmem:[%s12149_s26 + $0x40] sm:$0xff] %v8081_v61  ;;  %v7662_v36 = vadd.f32 %v7595_v13, %v7374_v48  ;;  %9492 = vmatmul.msk.bf16.gmra.mxu3 %vm311_vm1, %v6900_v28  ;;  %9592 = vmatmul.msk.bf16.gmra.mxu1 %vm311_vm1, %v7476_v39  ;;  %v9477_v61 = vld [vmem:[%s9886_s8 + $0x1cc] sm:$0xff]  ;;  %v9527_v48 = vld [vmem:[%s9886_s8 + $0x1d4] sm:$0xff] }
 0x6ac   : > { %9642 = vmatmul.msk.bf16.gmra.mxu2 %vm311_vm1, %v7764_v58 }
 0x6ad   : > { %v7950_v29 = vadd.f32 %v7883_v34, %v7662_v36  ;;  %v9576_v36 = vld [vmem:[%s9886_s8 + $0x1cd] sm:$0xff] }
 0x6ae   : > { %v7022_v20 = vpop.f32.mrf.mxu3 }
 0x6af   : > { %v8050_v6 = vadd.f32 %v12136_v18, %v7950_v29  ;;  %v7087_v21 = vadd.f32 %v7022_v20, %v11959_v19  ;;  %v7886_v63 = vpop.f32.mrf.mxu2  ;;  %v7312_v14 = vpop.f32.mrf.mxu0  ;;  %v9577_v29 = vld [vmem:[%s9886_s8 + $0x1d5] sm:$0xff] }
 0x6b0   : > { %v7600_v62 = vpop.f32.mrf.mxu1  ;;  %v7478_v15 = vpack.c.bf16 %v9577_v29, %v9576_v36 }
 0x6b1   : > { %v8082_v22 = vmax.f32 %v8050_v6, 0.0  ;;  %v7375_v50 = vadd.f32 %v7310_v51, %v7087_v21  ;;  %v9626_v6 = vld [vmem:[%s9886_s8 + $0x1ce] sm:$0xff]  ;;  %v9627_v21 = vld [vmem:[%s9886_s8 + $0x1d6] sm:$0xff] }
 0x6b2   : > { %v7766_v54 = vpack.c.bf16 %v9627_v21, %v9626_v6 }
 0x6b3   : > { %8114 = vst [vmem:[%s12149_s26 + $0x48] sm:$0xff] %v8082_v22  ;;  %v7663_v56 = vadd.f32 %v7598_v45, %v7375_v50 }
 0x6b5   : > { %v7951_v8 = vadd.f32 %v7886_v63, %v7663_v56  ;;  %v6902_v56 = vpack.c.bf16 %v9477_v61, %v9525_v59 }
 0x6b6   : > { %v7024_v13 = vpop.f32.mrf.mxu3 }
 0x6b7   : > { %v8051_v43 = vadd.f32 %v12136_v18, %v7951_v8  ;;  %v7088_v19 = vadd.f32 %v7024_v13, %v11968_v55  ;;  %v7888_v53 = vpop.f32.mrf.mxu2  ;;  %v7315_v52 = vpop.f32.mrf.mxu0 }
 0x6b8   : > { %v7603_v16 = vpop.f32.mrf.mxu1 }
 0x6b9   : > { %v8083_v24 = vmax.f32 %v8051_v43, 0.0  ;;  %v7376_v5 = vadd.f32 %v7312_v14, %v7088_v19  ;;  %9543 = vmatmul.msk.bf16.gmra.mxu0 %vm311_vm1, %v7189_v25  ;;  %v7190_v14 = vpack.c.bf16 %v9527_v48, %v9477_v61 }
 0x6bb   : > { %8115 = vst [vmem:[%s12149_s26 + $0x50] sm:$0xff] %v8083_v24  ;;  %v7664_v17 = vadd.f32 %v7600_v62, %v7376_v5  ;;  %9493 = vmatmul.msk.bf16.gmra.mxu3 %vm311_vm1, %v6901_v46  ;;  %9593 = vmatmul.msk.bf16.gmra.mxu1 %vm311_vm1, %v7477_v10 }
 0x6bc   : > { %9643 = vmatmul.msk.bf16.gmra.mxu2 %vm311_vm1, %v7765_v33 }
 0x6bd   : > { %v7952_v55 = vadd.f32 %v7888_v53, %v7664_v17 }
 0x6be   : > { %v7027_v23 = vpop.f32.mrf.mxu3 }
 0x6bf   : > { %v8052_v27 = vadd.f32 %v12136_v18, %v7952_v55  ;;  %v7089_v32 = vadd.f32 %v7027_v23, %v11975_v60  ;;  %v7891_v34 = vpop.f32.mrf.mxu2  ;;  %v7317_v51 = vpop.f32.mrf.mxu0 }
 0x6c0   : > { %v7605_v28 = vpop.f32.mrf.mxu1 }
 0x6c1   : > { %v8084_v39 = vmax.f32 %v8052_v27, 0.0  ;;  %v7377_v45 = vadd.f32 %v7315_v52, %v7089_v32 }
 0x6c3   : > { %8116 = vst [vmem:[%s12149_s26 + $0x58] sm:$0xff] %v8084_v39  ;;  %v7665_v58 = vadd.f32 %v7603_v16, %v7377_v45 }
 0x6c5   : > { %v7953_v20 = vadd.f32 %v7891_v34, %v7665_v58 }
 0x6c6   : > { %v7029_v63 = vpop.f32.mrf.mxu3 }
 0x6c7   : > { %v8053_v62 = vadd.f32 %v12136_v18, %v7953_v20  ;;  %v7090_v60 = vadd.f32 %v7029_v63, %v11984_v57  ;;  %v7893_v22 = vpop.f32.mrf.mxu2  ;;  %v7320_v50 = vpop.f32.mrf.mxu0 }
 0x6c8   : > { %v7608_v2 = vpop.f32.mrf.mxu1 }
 0x6c9   : > { %v8085_v8 = vmax.f32 %v8053_v62, 0.0  ;;  %v7378_v30 = vadd.f32 %v7317_v51, %v7090_v60  ;;  %9544 = vmatmul.msk.bf16.gmra.mxu0 %vm311_vm1, %v7190_v14 }
 0x6cb   : > { %8117 = vst [vmem:[%s12149_s26 + $0x60] sm:$0xff] %v8085_v8  ;;  %v7666_v37 = vadd.f32 %v7605_v28, %v7378_v30  ;;  %9494 = vmatmul.msk.bf16.gmra.mxu3 %vm311_vm1, %v6902_v56  ;;  %9594 = vmatmul.msk.bf16.gmra.mxu1 %vm311_vm1, %v7478_v15 }
 0x6cc   : > { %9644 = vmatmul.msk.bf16.gmra.mxu2 %vm311_vm1, %v7766_v54 }
 0x6cd   : > { %v7954_v57 = vadd.f32 %v7893_v22, %v7666_v37 }
 0x6ce   : > { %v7032_v13 = vpop.f32.mrf.mxu3 }
 0x6cf   : > { %v8054_v59 = vadd.f32 %v12136_v18, %v7954_v57  ;;  %v7091_v25 = vadd.f32 %v7032_v13, %v11992_v41  ;;  %v7896_v43 = vpop.f32.mrf.mxu2  ;;  %v7322_v19 = vpop.f32.mrf.mxu0 }
 0x6d0   : > { %v7610_v53 = vpop.f32.mrf.mxu1 }
 0x6d1   : > { %v8086_v52 = vmax.f32 %v8054_v59, 0.0  ;;  %v7379_v46 = vadd.f32 %v7320_v50, %v7091_v25 }
 0x6d3   : > { %8118 = vst [vmem:[%s12149_s26 + $0x68] sm:$0xff] %v8086_v52  ;;  %v7667_v10 = vadd.f32 %v7608_v2, %v7379_v46 }
 0x6d5   : > { %v7955_v16 = vadd.f32 %v7896_v43, %v7667_v10 }
 0x6d6   : > { %v7034_v33 = vpop.f32.mrf.mxu3 }
 0x6d7   : > { %v8055_v24 = vadd.f32 %v12136_v18, %v7955_v16  ;;  %v7092_v5 = vadd.f32 %v7034_v33, %v12001_v47  ;;  %v7898_v17 = vpop.f32.mrf.mxu2  ;;  %v7325_v55 = vpop.f32.mrf.mxu0 }
 0x6d8   : > { %v7613_v23 = vpop.f32.mrf.mxu1 }
 0x6d9   : > { %v8087_v27 = vmax.f32 %v8055_v24, 0.0  ;;  %v7380_v41 = vadd.f32 %v7322_v19, %v7092_v5 }
 0x6db   : > { %8119 = vst [vmem:[%s12149_s26 + $0x70] sm:$0xff] %v8087_v27  ;;  %v7668_v32 = vadd.f32 %v7610_v53, %v7380_v41 }
 0x6dd   : > { %v7956_v34 = vadd.f32 %v7898_v17, %v7668_v32 }
 0x6de   : > { %v7037_v51 = vpop.f32.mrf.mxu3 }
 0x6df   : > { %v8056_v28 = vadd.f32 %v12136_v18, %v7956_v34  ;;  %v7093_v39 = vadd.f32 %v7037_v51, %v12008_v38  ;;  %v7901_v45 = vpop.f32.mrf.mxu2  ;;  %v7327_v58 = vpop.f32.mrf.mxu0 }
 0x6e0   : > { %v7615_v61 = vpop.f32.mrf.mxu1 }
 0x6e1   : > { %v8088_v48 = vmax.f32 %v8056_v28, 0.0  ;;  %v7381_v47 = vadd.f32 %v7325_v55, %v7093_v39 }
 0x6e3   : > { %8120 = vst [vmem:[%s12149_s26 + $0x78] sm:$0xff] %v8088_v48  ;;  %v7669_v36 = vadd.f32 %v7613_v23, %v7381_v47 }
 0x6e5   : > { %v7957_v29 = vadd.f32 %v7901_v45, %v7669_v36 }
 0x6e6   : > { %v7039_v20 = vpop.f32.mrf.mxu3 }
 0x6e7   : > { %v8057_v6 = vadd.f32 %v12136_v18, %v7957_v29  ;;  %v7094_v21 = vadd.f32 %v7039_v20, %v12017_v1  ;;  %v7903_v63 = vpop.f32.mrf.mxu2  ;;  %v7330_v14 = vpop.f32.mrf.mxu0 }
 0x6e8   : > { %v7618_v62 = vpop.f32.mrf.mxu1 }
 0x6e9   : > { %v8089_v60 = vmax.f32 %v8057_v6, 0.0  ;;  %v7382_v38 = vadd.f32 %v7327_v58, %v7094_v21 }
 0x6eb   : > { %8121 = vst [vmem:[%s12149_s26 + $0x80] sm:$0xff] %v8089_v60  ;;  %v7670_v22 = vadd.f32 %v7615_v61, %v7382_v38 }
 0x6ed   : > { %v7958_v50 = vadd.f32 %v7903_v63, %v7670_v22 }
 0x6ee   : > { %v7042_v56 = vpop.f32.mrf.mxu3 }
 0x6ef   : > { %v8058_v15 = vadd.f32 %v12136_v18, %v7958_v50  ;;  %v7095_v2 = vadd.f32 %v7042_v56, %v12024_v40  ;;  %v7906_v54 = vpop.f32.mrf.mxu2  ;;  %v7332_v8 = vpop.f32.mrf.mxu0 }
 0x6f0   : > { %v7620_v30 = vpop.f32.mrf.mxu1 }
 0x6f1   : > { %v8090_v37 = vmax.f32 %v8058_v15, 0.0  ;;  %v7383_v1 = vadd.f32 %v7330_v14, %v7095_v2 }
 0x6f3   : > { %8122 = vst [vmem:[%s12149_s26 + $0x88] sm:$0xff] %v8090_v37  ;;  %v7671_v57 = vadd.f32 %v7618_v62, %v7383_v1 }
 0x6f5   : > { %v7959_v13 = vadd.f32 %v7906_v54, %v7671_v57 }
 0x6f6   : > { %v7044_v59 = vpop.f32.mrf.mxu3 }
 0x6f7   : > { %v8059_v25 = vadd.f32 %v12136_v18, %v7959_v13  ;;  %v7096_v43 = vadd.f32 %v7044_v59, %v12033_v11  ;;  %v7908_v19 = vpop.f32.mrf.mxu2  ;;  %v7335_v53 = vpop.f32.mrf.mxu0 }
 0x6f8   : > { %v7623_v52 = vpop.f32.mrf.mxu1 }
 0x6f9   : > { %v8091_v46 = vmax.f32 %v8059_v25, 0.0  ;;  %v7384_v40 = vadd.f32 %v7332_v8, %v7096_v43 }
 0x6fb   : > { %8123 = vst [vmem:[%s12149_s26 + $0x90] sm:$0xff] %v8091_v46  ;;  %v7672_v10 = vadd.f32 %v7620_v30, %v7384_v40 }
 0x6fd   : > { %v7960_v16 = vadd.f32 %v7908_v19, %v7672_v10 }
 0x6fe   : > { %v7047_v33 = vpop.f32.mrf.mxu3 }
 0x6ff   : > { %v8060_v24 = vadd.f32 %v12136_v18, %v7960_v16  ;;  %v7097_v5 = vadd.f32 %v7047_v33, %v12040_v9  ;;  %v7911_v17 = vpop.f32.mrf.mxu2  ;;  %v7337_v55 = vpop.f32.mrf.mxu0 }
 0x700   : > { %v7625_v23 = vpop.f32.mrf.mxu1 }
 0x701   : > { %v8092_v27 = vmax.f32 %v8060_v24, 0.0  ;;  %v7385_v11 = vadd.f32 %v7335_v53, %v7097_v5 }
 0x703   : > { %8124 = vst [vmem:[%s12149_s26 + $0x98] sm:$0xff] %v8092_v27  ;;  %v7673_v41 = vadd.f32 %v7623_v52, %v7385_v11 }
 0x705   : > { %v7961_v32 = vadd.f32 %v7911_v17, %v7673_v41 }
 0x706   : > { %v7049_v34 = vpop.f32.mrf.mxu3 }
 0x707   : > { %v8061_v51 = vadd.f32 %v12136_v18, %v7961_v32  ;;  %v7098_v28 = vadd.f32 %v7049_v34, %v12049_v0  ;;  %v7913_v39 = vpop.f32.mrf.mxu2  ;;  %v7340_v45 = vpop.f32.mrf.mxu0 }
 0x708   : > { %v7628_v58 = vpop.f32.mrf.mxu1 }
 0x709   : > { %v8093_v61 = vmax.f32 %v8061_v51, 0.0  ;;  %v7386_v9 = vadd.f32 %v7337_v55, %v7098_v28 }
 0x70b   : > { %8125 = vst [vmem:[%s12149_s26 + $0xa0] sm:$0xff] %v8093_v61  ;;  %v7674_v48 = vadd.f32 %v7625_v23, %v7386_v9 }
 0x70d   : > { %v7962_v47 = vadd.f32 %v7913_v39, %v7674_v48 }
 0x70e   : > { %v7052_v36 = vpop.f32.mrf.mxu3 }
 0x70f   : > { %v8062_v29 = vadd.f32 %v12136_v18, %v7962_v47  ;;  %v7099_v20 = vadd.f32 %v7052_v36, %v12056_v3  ;;  %v7916_v6 = vpop.f32.mrf.mxu2  ;;  %v7342_v21 = vpop.f32.mrf.mxu0 }
 0x710   : > { %v7630_v63 = vpop.f32.mrf.mxu1 }
 0x711   : > { %v8094_v14 = vmax.f32 %v8062_v29, 0.0  ;;  %v7387_v0 = vadd.f32 %v7340_v45, %v7099_v20 }
 0x713   : > { %8126 = vst [vmem:[%s12149_s26 + $0xa8] sm:$0xff] %v8094_v14  ;;  %v7675_v62 = vadd.f32 %v7628_v58, %v7387_v0 }
 0x715   : > { %v7963_v60 = vadd.f32 %v7916_v6, %v7675_v62 }
 0x716   : > { %v7054_v38 = vpop.f32.mrf.mxu3 }
 0x717   : > { %v8063_v22 = vadd.f32 %v12136_v18, %v7963_v60  ;;  %v7100_v50 = vadd.f32 %v7054_v38, %v12065_v12  ;;  %v7918_v56 = vpop.f32.mrf.mxu2  ;;  %v7345_v15 = vpop.f32.mrf.mxu0 }
 0x718   : > { %v7633_v2 = vpop.f32.mrf.mxu1 }
 0x719   : > { %v8095_v54 = vmax.f32 %v8063_v22, 0.0  ;;  %v7388_v3 = vadd.f32 %v7342_v21, %v7100_v50 }
 0x71b   : > { %8127 = vst [vmem:[%s12149_s26 + $0xb0] sm:$0xff] %v8095_v54  ;;  %v7676_v8 = vadd.f32 %v7630_v63, %v7388_v3 }
 0x71d   : > { %v7964_v30 = vadd.f32 %v7918_v56, %v7676_v8 }
 0x71e   : > { %v7057_v37 = vpop.f32.mrf.mxu3 }
 0x71f   : > { %v8064_v1 = vadd.f32 %v12136_v18, %v7964_v30  ;;  %v7101_v57 = vadd.f32 %v7057_v37, %v12072_v31  ;;  %v7921_v13 = vpop.f32.mrf.mxu2  ;;  %v7347_v59 = vpop.f32.mrf.mxu0 }
 0x720   : > { %v7635_v25 = vpop.f32.mrf.mxu1 }
 0x721   : > { %v8096_v43 = vmax.f32 %v8064_v1, 0.0  ;;  %v7389_v12 = vadd.f32 %v7345_v15, %v7101_v57 }
 0x723   : > { %8128 = vst [vmem:[%s12149_s26 + $0xb8] sm:$0xff] %v8096_v43  ;;  %v7677_v19 = vadd.f32 %v7633_v2, %v7389_v12 }
 0x725   : > { %v7965_v53 = vadd.f32 %v7921_v13, %v7677_v19 }
 0x726   : > { %v7059_v52 = vpop.f32.mrf.mxu3 }
 0x727   : > { %v8065_v46 = vadd.f32 %v12136_v18, %v7965_v53  ;;  %v7102_v40 = vadd.f32 %v7059_v52, %v12081_v4  ;;  %v7923_v10 = vpop.f32.mrf.mxu2  ;;  %v7350_v16 = vpop.f32.mrf.mxu0 }
 0x728   : > { %v7638_v33 = vpop.f32.mrf.mxu1 }
 0x729   : > { %v8097_v24 = vmax.f32 %v8065_v46, 0.0  ;;  %v7390_v31 = vadd.f32 %v7347_v59, %v7102_v40 }
 0x72b   : > { %8129 = vst [vmem:[%s12149_s26 + $0xc0] sm:$0xff] %v8097_v24  ;;  %v7678_v5 = vadd.f32 %v7635_v25, %v7390_v31 }
 0x72d   : > { %v7966_v17 = vadd.f32 %v7923_v10, %v7678_v5 }
 0x72e   : > { %v7062_v55 = vpop.f32.mrf.mxu3 }
 0x72f   : > { %v8066_v23 = vadd.f32 %v12136_v18, %v7966_v17  ;;  %v7103_v27 = vadd.f32 %v7062_v55, %v12088_v44  ;;  %v7926_v11 = vpop.f32.mrf.mxu2  ;;  %v7352_v41 = vpop.f32.mrf.mxu0 }
 0x730   : > { %v7640_v4 = vpop.f32.mrf.mxu1 }
 0x731   : > { %v8098_v32 = vmax.f32 %v8066_v23, 0.0  ;;  %v7391_v34 = vadd.f32 %v7350_v16, %v7103_v27 }
 0x733   : > { %8130 = vst [vmem:[%s12149_s26 + $0xc8] sm:$0xff] %v8098_v32  ;;  %v7679_v51 = vadd.f32 %v7638_v33, %v7391_v34 }
 0x735   : > { %v7967_v28 = vadd.f32 %v7926_v11, %v7679_v51 }
 0x736   : > { %v7064_v39 = vpop.f32.mrf.mxu3 }
 0x737   : > { %v8067_v45 = vadd.f32 %v12136_v18, %v7967_v28  ;;  %v7104_v58 = vadd.f32 %v7064_v39, %v12097_v35  ;;  %v7928_v61 = vpop.f32.mrf.mxu2  ;;  %v7355_v47 = vpop.f32.mrf.mxu0 }
 0x738   : > { %v7643_v36 = vpop.f32.mrf.mxu1 }
 0x739   : > { %v8099_v9 = vmax.f32 %v8067_v45, 0.0  ;;  %v7392_v48 = vadd.f32 %v7352_v41, %v7104_v58 }
 0x73b   : > { %8131 = vst [vmem:[%s12149_s26 + $0xd0] sm:$0xff] %v8099_v9  ;;  %v7680_v44 = vadd.f32 %v7640_v4, %v7392_v48 }
 0x73d   : > { %v7968_v29 = vadd.f32 %v7928_v61, %v7680_v44 }
 0x73e   : > { %v7067_v20 = vpop.f32.mrf.mxu3 }
 0x73f   : > { %v8068_v6 = vadd.f32 %v12136_v18, %v7968_v29  ;;  %v7105_v21 = vadd.f32 %v7067_v20, %v12104_v7  ;;  %v7931_v63 = vpop.f32.mrf.mxu2  ;;  %v7357_v35 = vpop.f32.mrf.mxu0 }
 0x740   : > { %v7645_v38 = vpop.f32.mrf.mxu1 }
 0x741   : > { %v8100_v14 = vmax.f32 %v8068_v6, 0.0  ;;  %v7393_v0 = vadd.f32 %v7355_v47, %v7105_v21 }
 0x743   : > { %8132 = vst [vmem:[%s12149_s26 + $0xd8] sm:$0xff] %v8100_v14  ;;  %v7681_v62 = vadd.f32 %v7643_v36, %v7393_v0 }
 0x745   : > { %v7969_v60 = vadd.f32 %v7931_v63, %v7681_v62 }
 0x746   : > { %v7069_v22 = vpop.f32.mrf.mxu3 }
 0x747   : > { %v8069_v50 = vadd.f32 %v12136_v18, %v7969_v60  ;;  %v7106_v56 = vadd.f32 %v7069_v22, %v12113_v49  ;;  %v7933_v15 = vpop.f32.mrf.mxu2  ;;  %v7360_v8 = vpop.f32.mrf.mxu0 }
 0x748   : > { %v7648_v57 = vpop.f32.mrf.mxu1 }
 0x749   : > { %v8101_v2 = vmax.f32 %v8069_v50, 0.0  ;;  %v7394_v54 = vadd.f32 %v7357_v35, %v7106_v56 }
 0x74b   : > { %8133 = vst [vmem:[%s12149_s26 + $0xe0] sm:$0xff] %v8101_v2  ;;  %v7682_v3 = vadd.f32 %v7645_v38, %v7394_v54 }
 0x74d   : > { %v7970_v7 = vadd.f32 %v7933_v15, %v7682_v3 }
 0x74e   : > { %v7072_v30 = vpop.f32.mrf.mxu3 }
 0x74f   : > { %v8070_v37 = vadd.f32 %v12136_v18, %v7970_v7  ;;  %v7107_v1 = vadd.f32 %v7072_v30, %v12120_v42  ;;  %v7936_v25 = vpop.f32.mrf.mxu2  ;;  %v7362_v52 = vpop.f32.mrf.mxu0 }
 0x750   : > { %v7650_v42 = vpop.f32.mrf.mxu1 }
 0x751   : > { %v8102_v13 = vmax.f32 %v8070_v37, 0.0  ;;  %v7395_v59 = vadd.f32 %v7360_v8, %v7107_v1 }
 0x753   : > { %8134 = vst [vmem:[%s12149_s26 + $0xe8] sm:$0xff] %v8102_v13  ;;  %v7683_v49 = vadd.f32 %v7648_v57, %v7395_v59 }
 0x755   : > { %v7971_v43 = vadd.f32 %v7936_v25, %v7683_v49 }
 0x756   : > { %v7074_v12 = vpop.f32.mrf.mxu3 }
 0x757   : > { %v8071_v19 = vadd.f32 %v12136_v18, %v7971_v43  ;;  %v7108_v53 = vadd.f32 %v7074_v12, %v12129_v26  ;;  %v7938_v16 = vpop.f32.mrf.mxu2 }
 0x759   : > { %v8103_v46 = vmax.f32 %v8071_v19, 0.0  ;;  %v7396_v40 = vadd.f32 %v7362_v52, %v7108_v53 }
 0x75b   : > { %8135 = vst [vmem:[%s12149_s26 + $0xf0] sm:$0xff] %v8103_v46  ;;  %v7684_v10 = vadd.f32 %v7650_v42, %v7396_v40 }
 0x75d   : > { %v7972_v33 = vadd.f32 %v7938_v16, %v7684_v10 }
 0x75f   : > { %v8072_v26 = vadd.f32 %v12136_v18, %v7972_v33 }
 0x761   : > { %v8104_v24 = vmax.f32 %v8072_v26, 0.0 }
 0x763   : > { %8136 = vst [vmem:[%s12149_s26 + $0xf8] sm:$0xff] %v8104_v24 }
 0x764   : > { %9739 = shalt.err (!%p9736_p3)
}
 0x765   : > { %s9792_s18 = smov 128   ;;  %s9793_s19 = smov 8  }
 0x766   : > { %9654 = dma.vmem_to_hbm [thread:$0]  (%p9854_p4), %s8152_s29, 4096, %s8154_s4, %s8138_s5, %s9792_s18, %s9792_s18, %s9793_s19  }
 0x767 PF: > { %p9660_p5 = scmp.ge.s32.totalorder %s9790_s17, 2  ;;  %s8168_s21 = sand.u32 1, %s9770_s12  }
 0x768   : > { %s8169_s23 = scalar_lea.sflag [#allocation4], %s8168_s21 }
 0x769   : > { %p9657_p6 = pnand %p9660_p5, %p9861_p8 }
 0x76b   : > { %p9658_p7 = pneg %p9657_p6 }
 0x76d   : > { %9765 = dma.done.wait (%p9658_p7), %s8169_s23, 4096  }
 0x76e   : > { %9767 = vsyncadd (%p9658_p7), %s8169_s23, 4294963200  ;;  %s16_s17 = sadd.s32 1, %s9790_s17   ;;  %s12518_s12 = smov %s9774_s13 }
 0x76f   : > { %p13_p9 = scmp.ge.s32.totalorder %s16_s17, 10   ;;  %s12519_s13 = smov %s9778_s14 }
 0x770   : > { %s12520_s14 = smov %s9867_s25  ;;  %s12521_s15 = smov %s9786_s16 }
 0x771   : > { %s12522_s16 = smov %s12524_s20  ;;  %15 = sbr.rel (!%p13_p9) target bundleno = 4 (0x4), region = 123 }
 0x776   :  { %8175 = vsyncpa [#allocation4], 1 }
 0x777   :  { %8177 = vsyncpa [#allocation4 + $0x1], 1 }

</bundles_post_ra>
